<compile_context>
chip_gen: v6e
topology: v6e:2x2x1
jax: 0.10.0
libtpu: 0.0.40
codegen_flags: <defaults>
</compile_context>

<pallas_src>
import jax
import jax.numpy as jnp
import numpy as np
from jax.experimental import pallas as pl
from jax.experimental.pallas import tpu as pltpu


# ------------------------------------------------------------------
# Fused kernel: input projection + BiLSTM + deferred emit linear + CRF NLL
# ------------------------------------------------------------------
def _bilstm_crf_kernel(x_ref, wih_ref, bcat_ref, whhblk_ref, wemit_ref,
                       bemit_ref, trans_ref, oh_ref, tgold_ref, len_ref,
                       loss_ref, hsf_scr, hsb_scr):
    T, BB, E = x_ref.shape
    K = trans_ref.shape[0]
    H = hsf_scr.shape[2]
    G = 4 * H                                    # per-direction gate width

    lengths = len_ref[...]                       # (BB, 1) int32

    # ---- fused input projection for BOTH directions: one bf16 MXU matmul.
    #      Column layout: [0:4H] fwd gates (i,f,g,o), [4H:8H] bwd gates.
    #      (reshape on f32 first -- 8-row slabs collapse as a no-op -- then cast)
    x2d = x_ref[...].reshape(T * BB, E).astype(jnp.bfloat16)
    xg = (jnp.dot(x2d, wih_ref[...], preferred_element_type=jnp.float32)
          + bcat_ref[...]).reshape(T, BB, 2 * G)         # f32, (T, BB, 8H)

    whh_blk = whhblk_ref[...]                    # (2H, 8H) bf16, block-diagonal

    def cell(gates, c_prev):                     # gate math stays f32 (v5e VPU/EUP)
        i_g = jax.nn.sigmoid(gates[:, 0 * H:1 * H])
        f_g = jax.nn.sigmoid(gates[:, 1 * H:2 * H])
        g_g = jnp.tanh(gates[:, 2 * H:3 * H])
        o_g = jax.nn.sigmoid(gates[:, 3 * H:4 * H])
        c_new = f_g * c_prev + i_g * g_g
        h_new = o_g * jnp.tanh(c_new)
        return h_new, c_new

    zeros = jnp.zeros((BB, H), jnp.float32)
    h_f, c_f, h_b, c_b = zeros, zeros, zeros, zeros

    # ---- bidirectional recurrence, fully unrolled (T small & static).
    #      fwd runs time t, bwd runs time T-1-t in the same pass; ONE fused
    #      MXU matmul per step covers both directions (block-diag W_hh).
    for t in range(T):
        tr = T - 1 - t
        m_f = lengths > t                        # (BB, 1) bool: t < length
        m_b = lengths > tr

        h_cat = jnp.concatenate([h_f, h_b], axis=1).astype(whh_blk.dtype)
        rec = jnp.dot(h_cat, whh_blk, preferred_element_type=jnp.float32)

        gates_f = xg[t, :, :G] + rec[:, :G]
        gates_b = xg[tr, :, G:] + rec[:, G:]

        hf_n, cf_n = cell(gates_f, c_f)
        hb_n, cb_n = cell(gates_b, c_b)

        # packed-sequence semantics: freeze state on padded steps
        h_f = jnp.where(m_f, hf_n, h_f)
        c_f = jnp.where(m_f, cf_n, c_f)
        h_b = jnp.where(m_b, hb_n, h_b)
        c_b = jnp.where(m_b, cb_n, c_b)

        # pad_packed_sequence semantics: padded outputs read back as zeros.
        # Only store here; the emit matmul is deferred out of the recurrence.
        hsf_scr[t] = jnp.where(m_f, h_f, 0.0)
        hsb_scr[tr] = jnp.where(m_b, h_b, 0.0)

    # ---- deferred emit projection: one batched matmul per direction over all
    #      T*BB rows, off the serial critical path.
    wem = wemit_ref[...]                                         # (2H, K) bf16
    emit2d = (jnp.dot(hsf_scr[...].reshape(T * BB, H).astype(wem.dtype),
                      wem[:H], preferred_element_type=jnp.float32)
              + jnp.dot(hsb_scr[...].reshape(T * BB, H).astype(wem.dtype),
                        wem[H:], preferred_element_type=jnp.float32)
              + bemit_ref[...])
    emit_all = emit2d.reshape(T, BB, K)                          # (T, BB, K) f32

    # ---- CRF gold-path score: emission via masked one-hot reduction
    #      (vectorized, outside the serial loops); transition part precomputed
    #      in the wrapper as (BB, 1).
    ge = jnp.sum(emit_all * oh_ref[...], axis=2, keepdims=True)  # (T, BB, 1)
    gold = jnp.sum(ge, axis=0) + tgold_ref[...]                  # (BB, 1)

    # ---- CRF forward (alpha) recursion, unrolled over T.
    trans = trans_ref[...]                                       # (K, K)
    d = emit_all[0]                   # (BB, K); caller guarantees length >= 1
    for i in range(1, T):
        e_i = emit_all[i]
        m_i = lengths > i
        log_sum = d[:, :, None] + trans[None, :, :] + e_i[:, None, :]   # (BB,K,K)
        max_v = jnp.max(log_sum, axis=1, keepdims=True)                 # (BB,1,K)
        d_new = max_v[:, 0, :] + jnp.log(
            jnp.sum(jnp.exp(log_sum - max_v), axis=1))                  # (BB, K)
        d = jnp.where(m_i, d_new, d)          # only "unfinished" rows advance

    max_d = jnp.max(d, axis=1, keepdims=True)                           # (BB, 1)
    log_z = max_d + jnp.log(
        jnp.sum(jnp.exp(d - max_d), axis=1, keepdims=True))             # (BB, 1)
    loss_ref[...] = log_z - gold               # loss = -(gold - logZ)


# ------------------------------------------------------------------
# Wrapper: plain-JAX glue (embedding gather, tag gathers, weight packing,
# batch padding), one pallas_call with a batch-block grid for everything else.
# ------------------------------------------------------------------
def bilstm_crf_forward(params, sentences, tags, pad_id, batch_block=8):
    B, T = sentences.shape
    H = params["w_hh_fwd"].shape[1]
    K = params["transition"].shape[0]

    # Pad the batch to a multiple of `batch_block` (>= 8 f32 sublanes) with
    # all-PAD rows (length 0); padded rows are sliced off the returned loss.
    # For multi-block batches pick batch_block as a multiple of 16 so bf16
    # batch-blocked inputs stay sublane-tile aligned.
    B_pad = ((B + batch_block - 1) // batch_block) * batch_block
    pad_rows = B_pad - B
    if pad_rows:
        sentences = jnp.concatenate(
            [sentences, jnp.full((pad_rows, T), pad_id, sentences.dtype)], axis=0)
        tags = jnp.concatenate(
            [tags, jnp.zeros((pad_rows, T), tags.dtype)], axis=0)

    mask_bt = sentences != pad_id                                     # (B_pad, T)
    mask_f = mask_bt.astype(jnp.float32)
    lengths = jnp.sum(mask_bt.astype(jnp.int32), axis=1,
                      keepdims=True)                                  # (B_pad, 1)

    # embedding lookup (gather; plain-JAX glue), time-major (T, B_pad, E)
    x_tm = params["embedding"][sentences.T].astype(jnp.float32)

    # fused input-projection weights for both directions: (E, 8H), bf16 MXU operand
    w_ih_cat = jnp.concatenate(
        [params["w_ih_fwd"].T, params["w_ih_bwd"].T], axis=1).astype(jnp.bfloat16)
    b_cat = jnp.concatenate(
        [params["b_ih_fwd"] + params["b_hh_fwd"],
         params["b_ih_bwd"] + params["b_hh_bwd"]]).reshape(1, 8 * H).astype(jnp.float32)

    # block-diagonal recurrent weights (2H, 8H): rows [0:H] (h_f) feed the fwd
    # gate columns, rows [H:2H] (h_b) feed the bwd gate columns.
    zero_hg = jnp.zeros((H, 4 * H), jnp.float32)
    whh_blk = jnp.concatenate([
        jnp.concatenate([params["w_hh_fwd"].T, zero_hg], axis=1),
        jnp.concatenate([zero_hg, params["w_hh_bwd"].T], axis=1)],
        axis=0).astype(jnp.bfloat16)                                  # (2H, 8H)

    w_emit_t = params["w_emit"].T.astype(jnp.bfloat16)                # (2H, K)
    b_emit = params["b_emit"].reshape(1, K).astype(jnp.float32)       # (1, K)
    trans = params["transition"].astype(jnp.float32)                  # (K, K)

    # masked one-hot gold tags, time-major (gold emission reduction)
    oh_tm = (jax.nn.one_hot(tags.T, K, dtype=jnp.float32)
             * mask_f.T[:, :, None])                                  # (T, B_pad, K)
    # gold transition score, tags-only: sum_{t>=1} mask[t]*trans[tag[t-1],tag[t]]
    trans_gold = jnp.sum(trans[tags[:, :-1], tags[:, 1:]] * mask_f[:, 1:],
                         axis=1, keepdims=True)                       # (B_pad, 1)

    BB = batch_block
    nb = B_pad // BB
    E = params["embedding"].shape[1]

    grid_spec = pltpu.PrefetchScalarGridSpec(
        num_scalar_prefetch=0,
        grid=(nb,),
        in_specs=[
            pl.BlockSpec((T, BB, E), lambda b: (0, b, 0)),       # x (time-major)
            pl.BlockSpec((E, 8 * H), lambda b: (0, 0)),          # fused W_ih
            pl.BlockSpec((1, 8 * H), lambda b: (0, 0)),          # fused bias
            pl.BlockSpec((2 * H, 8 * H), lambda b: (0, 0)),      # block-diag W_hh
            pl.BlockSpec((2 * H, K), lambda b: (0, 0)),          # W_emit^T
            pl.BlockSpec((1, K), lambda b: (0, 0)),              # b_emit
            pl.BlockSpec((K, K), lambda b: (0, 0)),              # transition
            pl.BlockSpec((T, BB, K), lambda b: (0, b, 0)),       # gold one-hot
            pl.BlockSpec((BB, 1), lambda b: (b, 0)),             # gold transition
            pl.BlockSpec((BB, 1), lambda b: (b, 0)),             # lengths
        ],
        out_specs=pl.BlockSpec((BB, 1), lambda b: (b, 0)),
        scratch_shapes=[
            pltpu.VMEM((T, BB, H), jnp.float32),   # fwd hidden outputs
            pltpu.VMEM((T, BB, H), jnp.float32),   # bwd hidden outputs
        ],
    )

    loss = pl.pallas_call(
        _bilstm_crf_kernel,
        out_shape=jax.ShapeDtypeStruct((B_pad, 1), jnp.float32),
        grid_spec=grid_spec,
        compiler_params=pltpu.CompilerParams(
            dimension_semantics=("parallel",)),     # v7x: shard blocks across TCs
    )(x_tm, w_ih_cat, b_cat, whh_blk, w_emit_t, b_emit, trans,
      oh_tm, trans_gold, lengths)
    return loss[:B, 0]


# ------------------------------------------------------------------
# Pure-JAX reference (for verification)
# ------------------------------------------------------------------
def reference_forward(params, sentences, tags, pad_id):
    B, T = sentences.shape
    H = params["w_hh_fwd"].shape[1]
    mask = (sentences != pad_id).astype(jnp.float32)
    x = params["embedding"][sentences.T]
    hi = jax.lax.Precision.HIGHEST

    def run_dir(x_seq, m_seq, w_ih, w_hh, b_ih, b_hh):
        def step(carry, inp):
            h, c = carry
            x_t, m_t = inp
            gates = (jnp.dot(x_t, w_ih.T, precision=hi) + b_ih + b_hh
                     + jnp.dot(h, w_hh.T, precision=hi))
            i_g = jax.nn.sigmoid(gates[:, :H])
            f_g = jax.nn.sigmoid(gates[:, H:2 * H])
            g_g = jnp.tanh(gates[:, 2 * H:3 * H])
            o_g = jax.nn.sigmoid(gates[:, 3 * H:])
            c_new = f_g * c + i_g * g_g
            h_new = o_g * jnp.tanh(c_new)
            mc = m_t[:, None]
            h2 = jnp.where(mc > 0, h_new, h)
            c2 = jnp.where(mc > 0, c_new, c)
            return (h2, c2), h2 * mc
        init = (jnp.zeros((B, H), jnp.float32), jnp.zeros((B, H), jnp.float32))
        _, hs = jax.lax.scan(step, init, (x_seq, m_seq))
        return hs

    m_tm = mask.T
    hs_f = run_dir(x, m_tm, params["w_ih_fwd"], params["w_hh_fwd"],
                   params["b_ih_fwd"], params["b_hh_fwd"])
    hs_b = run_dir(x[::-1], m_tm[::-1], params["w_ih_bwd"], params["w_hh_bwd"],
                   params["b_ih_bwd"], params["b_hh_bwd"])[::-1]
    hs = jnp.concatenate([hs_f, hs_b], axis=-1)
    hs_bt = jnp.transpose(hs, (1, 0, 2))
    emit = jnp.dot(hs_bt, params["w_emit"].T, precision=hi) + params["b_emit"]

    trans = params["transition"]
    score = jnp.take_along_axis(emit, tags[:, :, None], axis=2)[:, :, 0]
    score = score.at[:, 1:].add(trans[tags[:, :-1], tags[:, 1:]])
    total_score = jnp.sum(score * mask, axis=1)

    d = emit[:, 0, :]
    for i in range(1, T):
        log_sum = d[:, :, None] + trans[None, :, :] + emit[:, i, None, :]
        max_v = jnp.max(log_sum, axis=1, keepdims=True)
        d_new = max_v[:, 0, :] + jnp.log(jnp.sum(jnp.exp(log_sum - max_v), axis=1))
        d = jnp.where(mask[:, i][:, None] > 0, d_new, d)
    max_d = jnp.max(d, axis=1)
    log_z = max_d + jnp.log(jnp.sum(jnp.exp(d - max_d[:, None]), axis=1))
    return log_z - total_score


# ------------------------------------------------------------------
if __name__ == "__main__":
    PAD_ID = 0
    V, E, H, K = 50, 32, 32, 8        # vocab, embed_size, hidden_size, num_tags
    B, T = 4, 8                       # batch, max sequence length
    lengths = np.array([8, 7, 5, 3], dtype=np.int32)  # sorted (packed-seq style)

    key = jax.random.PRNGKey(0)
    ks = jax.random.split(key, 16)

    def nrm(k, shape, scale=0.1):
        return (scale * jax.random.normal(k, shape)).astype(jnp.float32)

    params = {
        "embedding": nrm(ks[0], (V, E), 1.0),
        "w_ih_fwd": nrm(ks[1], (4 * H, E)),
        "w_hh_fwd": nrm(ks[2], (4 * H, H)),
        "b_ih_fwd": nrm(ks[3], (4 * H,)),
        "b_hh_fwd": nrm(ks[4], (4 * H,)),
        "w_ih_bwd": nrm(ks[5], (4 * H, E)),
        "w_hh_bwd": nrm(ks[6], (4 * H, H)),
        "b_ih_bwd": nrm(ks[7], (4 * H,)),
        "b_hh_bwd": nrm(ks[8], (4 * H,)),
        "w_emit": nrm(ks[9], (K, 2 * H)),
        "b_emit": nrm(ks[10], (K,)),
        "transition": jax.random.normal(ks[11], (K, K)).astype(jnp.float32),
    }

    tokens = jax.random.randint(ks[12], (B, T), 1, V, dtype=jnp.int32)
    pos = jnp.arange(T)[None, :]
    sentences = jnp.where(pos < jnp.asarray(lengths)[:, None], tokens, PAD_ID)
    tags = jax.random.randint(ks[13], (B, T), 0, K, dtype=jnp.int32)

    run = jax.jit(lambda p, s, t: bilstm_crf_forward(p, s, t, PAD_ID))
    loss = run(params, sentences, tags)
    loss = jax.block_until_ready(loss)

    ref = jax.block_until_ready(reference_forward(params, sentences, tags, PAD_ID))
    np.testing.assert_allclose(np.asarray(loss), np.asarray(ref),
                               rtol=1e-2, atol=1e-2)
    print("KERNEL_OK")
</pallas_src>

<mosaic_0001>
module attributes {stable_mosaic.version = 11 : i64} {
  func.func @_bilstm_crf_kernel(%arg0: i32, %arg1: memref<8x8x32xf32, #tpu.memory_space<vmem>>, %arg2: memref<32x256xbf16, #tpu.memory_space<vmem>>, %arg3: memref<1x256xf32, #tpu.memory_space<vmem>>, %arg4: memref<64x256xbf16, #tpu.memory_space<vmem>>, %arg5: memref<64x8xbf16, #tpu.memory_space<vmem>>, %arg6: memref<1x8xf32, #tpu.memory_space<vmem>>, %arg7: memref<8x8xf32, #tpu.memory_space<vmem>>, %arg8: memref<8x8x8xf32, #tpu.memory_space<vmem>>, %arg9: memref<8x1xf32, #tpu.memory_space<vmem>>, %arg10: memref<8x1xi32, #tpu.memory_space<vmem>>, %arg11: memref<8x1xf32, #tpu.memory_space<vmem>>, %arg12: memref<8x8x32xf32, #tpu.memory_space<vmem>>, %arg13: memref<8x8x32xf32, #tpu.memory_space<vmem>>) attributes {dimension_semantics = [#tpu.dimension_semantics<parallel>], iteration_bounds = array<i64: 1>, scalar_prefetch = 0 : i64, scratch_operands = 2 : i64, tpu.core_type = #tpu.core_type<tc>, window_params = [{transform_indices = @transform_0, window_bounds = array<i64: 8, 8, 32>}, {pipeline_mode = #tpu.pipeline_mode<synchronous>, transform_indices = @transform_1, window_bounds = array<i64: 32, 256>}, {pipeline_mode = #tpu.pipeline_mode<synchronous>, transform_indices = @transform_2, window_bounds = array<i64: 1, 256>}, {pipeline_mode = #tpu.pipeline_mode<synchronous>, transform_indices = @transform_3, window_bounds = array<i64: 64, 256>}, {pipeline_mode = #tpu.pipeline_mode<synchronous>, transform_indices = @transform_4, window_bounds = array<i64: 64, 8>}, {pipeline_mode = #tpu.pipeline_mode<synchronous>, transform_indices = @transform_5, window_bounds = array<i64: 1, 8>}, {pipeline_mode = #tpu.pipeline_mode<synchronous>, transform_indices = @transform_6, window_bounds = array<i64: 8, 8>}, {transform_indices = @transform_7, window_bounds = array<i64: 8, 8, 8>}, {transform_indices = @transform_8, window_bounds = array<i64: 8, 1>}, {transform_indices = @transform_9, window_bounds = array<i64: 8, 1>}, {transform_indices = @transform_10, window_bounds = array<i64: 8, 1>}]} {
    %c0 = arith.constant 0 : index
    %c0_0 = arith.constant 0 : index
    %0 = vector.load %arg10[%c0, %c0_0] : memref<8x1xi32, #tpu.memory_space<vmem>>, vector<8x1xi32>
    %c0_1 = arith.constant 0 : index
    %c0_2 = arith.constant 0 : index
    %c0_3 = arith.constant 0 : index
    %1 = vector.load %arg1[%c0_1, %c0_2, %c0_3] : memref<8x8x32xf32, #tpu.memory_space<vmem>>, vector<8x8x32xf32>
    %2 = vector.shape_cast %1 : vector<8x8x32xf32> to vector<64x32xf32>
    %3 = arith.truncf %2 : vector<64x32xf32> to vector<64x32xbf16>
    %c0_4 = arith.constant 0 : index
    %c0_5 = arith.constant 0 : index
    %4 = vector.load %arg2[%c0_4, %c0_5] : memref<32x256xbf16, #tpu.memory_space<vmem>>, vector<32x256xbf16>
    %cst = arith.constant dense<0.000000e+00> : vector<64x256xf32>
    %5 = tpu.matmul %3, %4, %cst {dimension_numbers = #tpu.dot_dimension_numbers<[1], [0], [0], [1], [0, 0, 1, 1], [], []>} : vector<64x32xbf16>, vector<32x256xbf16>, vector<64x256xf32> -> vector<64x256xf32>
    %c0_6 = arith.constant 0 : index
    %c0_7 = arith.constant 0 : index
    %6 = vector.load %arg3[%c0_6, %c0_7] : memref<1x256xf32, #tpu.memory_space<vmem>>, vector<1x256xf32>
    %7 = vector.broadcast %6 : vector<1x256xf32> to vector<64x256xf32>
    %8 = arith.addf %5, %7 : vector<64x256xf32>
    %9 = vector.shape_cast %8 : vector<64x256xf32> to vector<8x8x256xf32>
    %c0_8 = arith.constant 0 : index
    %c0_9 = arith.constant 0 : index
    %10 = vector.load %arg4[%c0_8, %c0_9] : memref<64x256xbf16, #tpu.memory_space<vmem>>, vector<64x256xbf16>
    %cst_10 = arith.constant 0.000000e+00 : f32
    %11 = vector.broadcast %cst_10 : f32 to vector<8x32xf32>
    %c0_i32 = arith.constant 0 : i32
    %12 = vector.broadcast %c0_i32 : i32 to vector<8x1xi32>
    %13 = arith.cmpi sgt, %0, %12 : vector<8x1xi32>
    %c7_i32 = arith.constant 7 : i32
    %14 = vector.broadcast %c7_i32 : i32 to vector<8x1xi32>
    %15 = arith.cmpi sgt, %0, %14 : vector<8x1xi32>
    %16 = tpu.concatenate %11, %11 in 1 : vector<8x32xf32>, vector<8x32xf32> -> vector<8x64xf32>
    %17 = arith.truncf %16 : vector<8x64xf32> to vector<8x64xbf16>
    %cst_11 = arith.constant dense<0.000000e+00> : vector<8x256xf32>
    %18 = tpu.matmul %17, %10, %cst_11 {dimension_numbers = #tpu.dot_dimension_numbers<[1], [0], [0], [1], [0, 0, 1, 1], [], []>} : vector<8x64xbf16>, vector<64x256xbf16>, vector<8x256xf32> -> vector<8x256xf32>
    %19 = vector.extract_strided_slice %9 {offsets = [0, 0, 0], sizes = [1, 8, 128], strides = [1, 1, 1]} : vector<8x8x256xf32> to vector<1x8x128xf32>
    %20 = vector.shape_cast %19 : vector<1x8x128xf32> to vector<8x128xf32>
    %21 = vector.extract_strided_slice %18 {offsets = [0, 0], sizes = [8, 128], strides = [1, 1]} : vector<8x256xf32> to vector<8x128xf32>
    %22 = arith.addf %20, %21 : vector<8x128xf32>
    %23 = vector.extract_strided_slice %9 {offsets = [7, 0, 128], sizes = [1, 8, 128], strides = [1, 1, 1]} : vector<8x8x256xf32> to vector<1x8x128xf32>
    %24 = vector.shape_cast %23 : vector<1x8x128xf32> to vector<8x128xf32>
    %25 = vector.extract_strided_slice %18 {offsets = [0, 128], sizes = [8, 128], strides = [1, 1]} : vector<8x256xf32> to vector<8x128xf32>
    %26 = arith.addf %24, %25 : vector<8x128xf32>
    %27 = vector.extract_strided_slice %22 {offsets = [0, 0], sizes = [8, 32], strides = [1, 1]} : vector<8x128xf32> to vector<8x32xf32>
    %28 = arith.negf %27 : vector<8x32xf32>
    %29 = math.exp %28 : vector<8x32xf32>
    %cst_12 = arith.constant 1.000000e+00 : f32
    %30 = vector.broadcast %cst_12 : f32 to vector<8x32xf32>
    %31 = arith.addf %30, %29 : vector<8x32xf32>
    %32 = arith.divf %30, %31 : vector<8x32xf32>
    %33 = vector.extract_strided_slice %22 {offsets = [0, 32], sizes = [8, 32], strides = [1, 1]} : vector<8x128xf32> to vector<8x32xf32>
    %34 = arith.negf %33 : vector<8x32xf32>
    %35 = math.exp %34 : vector<8x32xf32>
    %cst_13 = arith.constant 1.000000e+00 : f32
    %36 = vector.broadcast %cst_13 : f32 to vector<8x32xf32>
    %37 = arith.addf %36, %35 : vector<8x32xf32>
    %38 = arith.divf %36, %37 : vector<8x32xf32>
    %39 = vector.extract_strided_slice %22 {offsets = [0, 64], sizes = [8, 32], strides = [1, 1]} : vector<8x128xf32> to vector<8x32xf32>
    %40 = math.tanh %39 : vector<8x32xf32>
    %41 = vector.extract_strided_slice %22 {offsets = [0, 96], sizes = [8, 32], strides = [1, 1]} : vector<8x128xf32> to vector<8x32xf32>
    %42 = arith.negf %41 : vector<8x32xf32>
    %43 = math.exp %42 : vector<8x32xf32>
    %cst_14 = arith.constant 1.000000e+00 : f32
    %44 = vector.broadcast %cst_14 : f32 to vector<8x32xf32>
    %45 = arith.addf %44, %43 : vector<8x32xf32>
    %46 = arith.divf %44, %45 : vector<8x32xf32>
    %47 = arith.mulf %38, %11 : vector<8x32xf32>
    %48 = arith.mulf %32, %40 : vector<8x32xf32>
    %49 = arith.addf %47, %48 : vector<8x32xf32>
    %50 = math.tanh %49 : vector<8x32xf32>
    %51 = arith.mulf %46, %50 : vector<8x32xf32>
    %52 = vector.extract_strided_slice %26 {offsets = [0, 0], sizes = [8, 32], strides = [1, 1]} : vector<8x128xf32> to vector<8x32xf32>
    %53 = arith.negf %52 : vector<8x32xf32>
    %54 = math.exp %53 : vector<8x32xf32>
    %cst_15 = arith.constant 1.000000e+00 : f32
    %55 = vector.broadcast %cst_15 : f32 to vector<8x32xf32>
    %56 = arith.addf %55, %54 : vector<8x32xf32>
    %57 = arith.divf %55, %56 : vector<8x32xf32>
    %58 = vector.extract_strided_slice %26 {offsets = [0, 32], sizes = [8, 32], strides = [1, 1]} : vector<8x128xf32> to vector<8x32xf32>
    %59 = arith.negf %58 : vector<8x32xf32>
    %60 = math.exp %59 : vector<8x32xf32>
    %cst_16 = arith.constant 1.000000e+00 : f32
    %61 = vector.broadcast %cst_16 : f32 to vector<8x32xf32>
    %62 = arith.addf %61, %60 : vector<8x32xf32>
    %63 = arith.divf %61, %62 : vector<8x32xf32>
    %64 = vector.extract_strided_slice %26 {offsets = [0, 64], sizes = [8, 32], strides = [1, 1]} : vector<8x128xf32> to vector<8x32xf32>
    %65 = math.tanh %64 : vector<8x32xf32>
    %66 = vector.extract_strided_slice %26 {offsets = [0, 96], sizes = [8, 32], strides = [1, 1]} : vector<8x128xf32> to vector<8x32xf32>
    %67 = arith.negf %66 : vector<8x32xf32>
    %68 = math.exp %67 : vector<8x32xf32>
    %cst_17 = arith.constant 1.000000e+00 : f32
    %69 = vector.broadcast %cst_17 : f32 to vector<8x32xf32>
    %70 = arith.addf %69, %68 : vector<8x32xf32>
    %71 = arith.divf %69, %70 : vector<8x32xf32>
    %72 = arith.mulf %63, %11 : vector<8x32xf32>
    %73 = arith.mulf %57, %65 : vector<8x32xf32>
    %74 = arith.addf %72, %73 : vector<8x32xf32>
    %75 = math.tanh %74 : vector<8x32xf32>
    %76 = arith.mulf %71, %75 : vector<8x32xf32>
    %77 = vector.shape_cast %13 : vector<8x1xi1> to vector<8x1xi1>
    %78 = vector.broadcast %77 : vector<8x1xi1> to vector<8x32xi1>
    %79 = arith.select %78, %51, %11 : vector<8x32xi1>, vector<8x32xf32>
    %80 = vector.shape_cast %13 : vector<8x1xi1> to vector<8x1xi1>
    %81 = vector.broadcast %80 : vector<8x1xi1> to vector<8x32xi1>
    %82 = arith.select %81, %49, %11 : vector<8x32xi1>, vector<8x32xf32>
    %83 = vector.shape_cast %15 : vector<8x1xi1> to vector<8x1xi1>
    %84 = vector.broadcast %83 : vector<8x1xi1> to vector<8x32xi1>
    %85 = arith.select %84, %76, %11 : vector<8x32xi1>, vector<8x32xf32>
    %86 = vector.shape_cast %15 : vector<8x1xi1> to vector<8x1xi1>
    %87 = vector.broadcast %86 : vector<8x1xi1> to vector<8x32xi1>
    %88 = arith.select %87, %74, %11 : vector<8x32xi1>, vector<8x32xf32>
    %cst_18 = arith.constant 0.000000e+00 : f32
    %89 = vector.shape_cast %13 : vector<8x1xi1> to vector<8x1xi1>
    %90 = vector.broadcast %89 : vector<8x1xi1> to vector<8x32xi1>
    %91 = vector.broadcast %cst_18 : f32 to vector<8x32xf32>
    %92 = arith.select %90, %79, %91 : vector<8x32xi1>, vector<8x32xf32>
    %c0_19 = arith.constant 0 : index
    %c0_20 = arith.constant 0 : index
    %c0_21 = arith.constant 0 : index
    %93 = vector.load %arg12[%c0_19, %c0_20, %c0_21] : memref<8x8x32xf32, #tpu.memory_space<vmem>>, vector<1x8x32xf32>
    %94 = vector.shape_cast %93 : vector<1x8x32xf32> to vector<8x32xf32>
    %95 = vector.shape_cast %92 : vector<8x32xf32> to vector<1x8x32xf32>
    tpu.vector_store %arg12[%c0_19, %c0_20, %c0_21], %95 {strides = array<i32>} : memref<8x8x32xf32, #tpu.memory_space<vmem>>, vector<1x8x32xf32>,
    %cst_22 = arith.constant 0.000000e+00 : f32
    %96 = vector.shape_cast %15 : vector<8x1xi1> to vector<8x1xi1>
    %97 = vector.broadcast %96 : vector<8x1xi1> to vector<8x32xi1>
    %98 = vector.broadcast %cst_22 : f32 to vector<8x32xf32>
    %99 = arith.select %97, %85, %98 : vector<8x32xi1>, vector<8x32xf32>
    %c7 = arith.constant 7 : index
    %c0_23 = arith.constant 0 : index
    %c0_24 = arith.constant 0 : index
    %100 = vector.load %arg13[%c7, %c0_23, %c0_24] : memref<8x8x32xf32, #tpu.memory_space<vmem>>, vector<1x8x32xf32>
    %101 = vector.shape_cast %100 : vector<1x8x32xf32> to vector<8x32xf32>
    %102 = vector.shape_cast %99 : vector<8x32xf32> to vector<1x8x32xf32>
    tpu.vector_store %arg13[%c7, %c0_23, %c0_24], %102 {strides = array<i32>} : memref<8x8x32xf32, #tpu.memory_space<vmem>>, vector<1x8x32xf32>,
    %c1_i32 = arith.constant 1 : i32
    %103 = vector.broadcast %c1_i32 : i32 to vector<8x1xi32>
    %104 = arith.cmpi sgt, %0, %103 : vector<8x1xi32>
    %c6_i32 = arith.constant 6 : i32
    %105 = vector.broadcast %c6_i32 : i32 to vector<8x1xi32>
    %106 = arith.cmpi sgt, %0, %105 : vector<8x1xi32>
    %107 = tpu.concatenate %79, %85 in 1 : vector<8x32xf32>, vector<8x32xf32> -> vector<8x64xf32>
    %108 = arith.truncf %107 : vector<8x64xf32> to vector<8x64xbf16>
    %cst_25 = arith.constant dense<0.000000e+00> : vector<8x256xf32>
    %109 = tpu.matmul %108, %10, %cst_25 {dimension_numbers = #tpu.dot_dimension_numbers<[1], [0], [0], [1], [0, 0, 1, 1], [], []>} : vector<8x64xbf16>, vector<64x256xbf16>, vector<8x256xf32> -> vector<8x256xf32>
    %110 = vector.extract_strided_slice %9 {offsets = [1, 0, 0], sizes = [1, 8, 128], strides = [1, 1, 1]} : vector<8x8x256xf32> to vector<1x8x128xf32>
    %111 = vector.shape_cast %110 : vector<1x8x128xf32> to vector<8x128xf32>
    %112 = vector.extract_strided_slice %109 {offsets = [0, 0], sizes = [8, 128], strides = [1, 1]} : vector<8x256xf32> to vector<8x128xf32>
    %113 = arith.addf %111, %112 : vector<8x128xf32>
    %114 = vector.extract_strided_slice %9 {offsets = [6, 0, 128], sizes = [1, 8, 128], strides = [1, 1, 1]} : vector<8x8x256xf32> to vector<1x8x128xf32>
    %115 = vector.shape_cast %114 : vector<1x8x128xf32> to vector<8x128xf32>
    %116 = vector.extract_strided_slice %109 {offsets = [0, 128], sizes = [8, 128], strides = [1, 1]} : vector<8x256xf32> to vector<8x128xf32>
    %117 = arith.addf %115, %116 : vector<8x128xf32>
    %118 = vector.extract_strided_slice %113 {offsets = [0, 0], sizes = [8, 32], strides = [1, 1]} : vector<8x128xf32> to vector<8x32xf32>
    %119 = arith.negf %118 : vector<8x32xf32>
    %120 = math.exp %119 : vector<8x32xf32>
    %cst_26 = arith.constant 1.000000e+00 : f32
    %121 = vector.broadcast %cst_26 : f32 to vector<8x32xf32>
    %122 = arith.addf %121, %120 : vector<8x32xf32>
    %123 = arith.divf %121, %122 : vector<8x32xf32>
    %124 = vector.extract_strided_slice %113 {offsets = [0, 32], sizes = [8, 32], strides = [1, 1]} : vector<8x128xf32> to vector<8x32xf32>
    %125 = arith.negf %124 : vector<8x32xf32>
    %126 = math.exp %125 : vector<8x32xf32>
    %cst_27 = arith.constant 1.000000e+00 : f32
    %127 = vector.broadcast %cst_27 : f32 to vector<8x32xf32>
    %128 = arith.addf %127, %126 : vector<8x32xf32>
    %129 = arith.divf %127, %128 : vector<8x32xf32>
    %130 = vector.extract_strided_slice %113 {offsets = [0, 64], sizes = [8, 32], strides = [1, 1]} : vector<8x128xf32> to vector<8x32xf32>
    %131 = math.tanh %130 : vector<8x32xf32>
    %132 = vector.extract_strided_slice %113 {offsets = [0, 96], sizes = [8, 32], strides = [1, 1]} : vector<8x128xf32> to vector<8x32xf32>
    %133 = arith.negf %132 : vector<8x32xf32>
    %134 = math.exp %133 : vector<8x32xf32>
    %cst_28 = arith.constant 1.000000e+00 : f32
    %135 = vector.broadcast %cst_28 : f32 to vector<8x32xf32>
    %136 = arith.addf %135, %134 : vector<8x32xf32>
    %137 = arith.divf %135, %136 : vector<8x32xf32>
    %138 = arith.mulf %129, %82 : vector<8x32xf32>
    %139 = arith.mulf %123, %131 : vector<8x32xf32>
    %140 = arith.addf %138, %139 : vector<8x32xf32>
    %141 = math.tanh %140 : vector<8x32xf32>
    %142 = arith.mulf %137, %141 : vector<8x32xf32>
    %143 = vector.extract_strided_slice %117 {offsets = [0, 0], sizes = [8, 32], strides = [1, 1]} : vector<8x128xf32> to vector<8x32xf32>
    %144 = arith.negf %143 : vector<8x32xf32>
    %145 = math.exp %144 : vector<8x32xf32>
    %cst_29 = arith.constant 1.000000e+00 : f32
    %146 = vector.broadcast %cst_29 : f32 to vector<8x32xf32>
    %147 = arith.addf %146, %145 : vector<8x32xf32>
    %148 = arith.divf %146, %147 : vector<8x32xf32>
    %149 = vector.extract_strided_slice %117 {offsets = [0, 32], sizes = [8, 32], strides = [1, 1]} : vector<8x128xf32> to vector<8x32xf32>
    %150 = arith.negf %149 : vector<8x32xf32>
    %151 = math.exp %150 : vector<8x32xf32>
    %cst_30 = arith.constant 1.000000e+00 : f32
    %152 = vector.broadcast %cst_30 : f32 to vector<8x32xf32>
    %153 = arith.addf %152, %151 : vector<8x32xf32>
    %154 = arith.divf %152, %153 : vector<8x32xf32>
    %155 = vector.extract_strided_slice %117 {offsets = [0, 64], sizes = [8, 32], strides = [1, 1]} : vector<8x128xf32> to vector<8x32xf32>
    %156 = math.tanh %155 : vector<8x32xf32>
    %157 = vector.extract_strided_slice %117 {offsets = [0, 96], sizes = [8, 32], strides = [1, 1]} : vector<8x128xf32> to vector<8x32xf32>
    %158 = arith.negf %157 : vector<8x32xf32>
    %159 = math.exp %158 : vector<8x32xf32>
    %cst_31 = arith.constant 1.000000e+00 : f32
    %160 = vector.broadcast %cst_31 : f32 to vector<8x32xf32>
    %161 = arith.addf %160, %159 : vector<8x32xf32>
    %162 = arith.divf %160, %161 : vector<8x32xf32>
    %163 = arith.mulf %154, %88 : vector<8x32xf32>
    %164 = arith.mulf %148, %156 : vector<8x32xf32>
    %165 = arith.addf %163, %164 : vector<8x32xf32>
    %166 = math.tanh %165 : vector<8x32xf32>
    %167 = arith.mulf %162, %166 : vector<8x32xf32>
    %168 = vector.shape_cast %104 : vector<8x1xi1> to vector<8x1xi1>
    %169 = vector.broadcast %168 : vector<8x1xi1> to vector<8x32xi1>
    %170 = arith.select %169, %142, %79 : vector<8x32xi1>, vector<8x32xf32>
    %171 = vector.shape_cast %104 : vector<8x1xi1> to vector<8x1xi1>
    %172 = vector.broadcast %171 : vector<8x1xi1> to vector<8x32xi1>
    %173 = arith.select %172, %140, %82 : vector<8x32xi1>, vector<8x32xf32>
    %174 = vector.shape_cast %106 : vector<8x1xi1> to vector<8x1xi1>
    %175 = vector.broadcast %174 : vector<8x1xi1> to vector<8x32xi1>
    %176 = arith.select %175, %167, %85 : vector<8x32xi1>, vector<8x32xf32>
    %177 = vector.shape_cast %106 : vector<8x1xi1> to vector<8x1xi1>
    %178 = vector.broadcast %177 : vector<8x1xi1> to vector<8x32xi1>
    %179 = arith.select %178, %165, %88 : vector<8x32xi1>, vector<8x32xf32>
    %cst_32 = arith.constant 0.000000e+00 : f32
    %180 = vector.shape_cast %104 : vector<8x1xi1> to vector<8x1xi1>
    %181 = vector.broadcast %180 : vector<8x1xi1> to vector<8x32xi1>
    %182 = vector.broadcast %cst_32 : f32 to vector<8x32xf32>
    %183 = arith.select %181, %170, %182 : vector<8x32xi1>, vector<8x32xf32>
    %c1 = arith.constant 1 : index
    %c0_33 = arith.constant 0 : index
    %c0_34 = arith.constant 0 : index
    %184 = vector.load %arg12[%c1, %c0_33, %c0_34] : memref<8x8x32xf32, #tpu.memory_space<vmem>>, vector<1x8x32xf32>
    %185 = vector.shape_cast %184 : vector<1x8x32xf32> to vector<8x32xf32>
    %186 = vector.shape_cast %183 : vector<8x32xf32> to vector<1x8x32xf32>
    tpu.vector_store %arg12[%c1, %c0_33, %c0_34], %186 {strides = array<i32>} : memref<8x8x32xf32, #tpu.memory_space<vmem>>, vector<1x8x32xf32>,
    %cst_35 = arith.constant 0.000000e+00 : f32
    %187 = vector.shape_cast %106 : vector<8x1xi1> to vector<8x1xi1>
    %188 = vector.broadcast %187 : vector<8x1xi1> to vector<8x32xi1>
    %189 = vector.broadcast %cst_35 : f32 to vector<8x32xf32>
    %190 = arith.select %188, %176, %189 : vector<8x32xi1>, vector<8x32xf32>
    %c6 = arith.constant 6 : index
    %c0_36 = arith.constant 0 : index
    %c0_37 = arith.constant 0 : index
    %191 = vector.load %arg13[%c6, %c0_36, %c0_37] : memref<8x8x32xf32, #tpu.memory_space<vmem>>, vector<1x8x32xf32>
    %192 = vector.shape_cast %191 : vector<1x8x32xf32> to vector<8x32xf32>
    %193 = vector.shape_cast %190 : vector<8x32xf32> to vector<1x8x32xf32>
    tpu.vector_store %arg13[%c6, %c0_36, %c0_37], %193 {strides = array<i32>} : memref<8x8x32xf32, #tpu.memory_space<vmem>>, vector<1x8x32xf32>,
    %c2_i32 = arith.constant 2 : i32
    %194 = vector.broadcast %c2_i32 : i32 to vector<8x1xi32>
    %195 = arith.cmpi sgt, %0, %194 : vector<8x1xi32>
    %c5_i32 = arith.constant 5 : i32
    %196 = vector.broadcast %c5_i32 : i32 to vector<8x1xi32>
    %197 = arith.cmpi sgt, %0, %196 : vector<8x1xi32>
    %198 = tpu.concatenate %170, %176 in 1 : vector<8x32xf32>, vector<8x32xf32> -> vector<8x64xf32>
    %199 = arith.truncf %198 : vector<8x64xf32> to vector<8x64xbf16>
    %cst_38 = arith.constant dense<0.000000e+00> : vector<8x256xf32>
    %200 = tpu.matmul %199, %10, %cst_38 {dimension_numbers = #tpu.dot_dimension_numbers<[1], [0], [0], [1], [0, 0, 1, 1], [], []>} : vector<8x64xbf16>, vector<64x256xbf16>, vector<8x256xf32> -> vector<8x256xf32>
    %201 = vector.extract_strided_slice %9 {offsets = [2, 0, 0], sizes = [1, 8, 128], strides = [1, 1, 1]} : vector<8x8x256xf32> to vector<1x8x128xf32>
    %202 = vector.shape_cast %201 : vector<1x8x128xf32> to vector<8x128xf32>
    %203 = vector.extract_strided_slice %200 {offsets = [0, 0], sizes = [8, 128], strides = [1, 1]} : vector<8x256xf32> to vector<8x128xf32>
    %204 = arith.addf %202, %203 : vector<8x128xf32>
    %205 = vector.extract_strided_slice %9 {offsets = [5, 0, 128], sizes = [1, 8, 128], strides = [1, 1, 1]} : vector<8x8x256xf32> to vector<1x8x128xf32>
    %206 = vector.shape_cast %205 : vector<1x8x128xf32> to vector<8x128xf32>
    %207 = vector.extract_strided_slice %200 {offsets = [0, 128], sizes = [8, 128], strides = [1, 1]} : vector<8x256xf32> to vector<8x128xf32>
    %208 = arith.addf %206, %207 : vector<8x128xf32>
    %209 = vector.extract_strided_slice %204 {offsets = [0, 0], sizes = [8, 32], strides = [1, 1]} : vector<8x128xf32> to vector<8x32xf32>
    %210 = arith.negf %209 : vector<8x32xf32>
    %211 = math.exp %210 : vector<8x32xf32>
    %cst_39 = arith.constant 1.000000e+00 : f32
    %212 = vector.broadcast %cst_39 : f32 to vector<8x32xf32>
    %213 = arith.addf %212, %211 : vector<8x32xf32>
    %214 = arith.divf %212, %213 : vector<8x32xf32>
    %215 = vector.extract_strided_slice %204 {offsets = [0, 32], sizes = [8, 32], strides = [1, 1]} : vector<8x128xf32> to vector<8x32xf32>
    %216 = arith.negf %215 : vector<8x32xf32>
    %217 = math.exp %216 : vector<8x32xf32>
    %cst_40 = arith.constant 1.000000e+00 : f32
    %218 = vector.broadcast %cst_40 : f32 to vector<8x32xf32>
    %219 = arith.addf %218, %217 : vector<8x32xf32>
    %220 = arith.divf %218, %219 : vector<8x32xf32>
    %221 = vector.extract_strided_slice %204 {offsets = [0, 64], sizes = [8, 32], strides = [1, 1]} : vector<8x128xf32> to vector<8x32xf32>
    %222 = math.tanh %221 : vector<8x32xf32>
    %223 = vector.extract_strided_slice %204 {offsets = [0, 96], sizes = [8, 32], strides = [1, 1]} : vector<8x128xf32> to vector<8x32xf32>
    %224 = arith.negf %223 : vector<8x32xf32>
    %225 = math.exp %224 : vector<8x32xf32>
    %cst_41 = arith.constant 1.000000e+00 : f32
    %226 = vector.broadcast %cst_41 : f32 to vector<8x32xf32>
    %227 = arith.addf %226, %225 : vector<8x32xf32>
    %228 = arith.divf %226, %227 : vector<8x32xf32>
    %229 = arith.mulf %220, %173 : vector<8x32xf32>
    %230 = arith.mulf %214, %222 : vector<8x32xf32>
    %231 = arith.addf %229, %230 : vector<8x32xf32>
    %232 = math.tanh %231 : vector<8x32xf32>
    %233 = arith.mulf %228, %232 : vector<8x32xf32>
    %234 = vector.extract_strided_slice %208 {offsets = [0, 0], sizes = [8, 32], strides = [1, 1]} : vector<8x128xf32> to vector<8x32xf32>
    %235 = arith.negf %234 : vector<8x32xf32>
    %236 = math.exp %235 : vector<8x32xf32>
    %cst_42 = arith.constant 1.000000e+00 : f32
    %237 = vector.broadcast %cst_42 : f32 to vector<8x32xf32>
    %238 = arith.addf %237, %236 : vector<8x32xf32>
    %239 = arith.divf %237, %238 : vector<8x32xf32>
    %240 = vector.extract_strided_slice %208 {offsets = [0, 32], sizes = [8, 32], strides = [1, 1]} : vector<8x128xf32> to vector<8x32xf32>
    %241 = arith.negf %240 : vector<8x32xf32>
    %242 = math.exp %241 : vector<8x32xf32>
    %cst_43 = arith.constant 1.000000e+00 : f32
    %243 = vector.broadcast %cst_43 : f32 to vector<8x32xf32>
    %244 = arith.addf %243, %242 : vector<8x32xf32>
    %245 = arith.divf %243, %244 : vector<8x32xf32>
    %246 = vector.extract_strided_slice %208 {offsets = [0, 64], sizes = [8, 32], strides = [1, 1]} : vector<8x128xf32> to vector<8x32xf32>
    %247 = math.tanh %246 : vector<8x32xf32>
    %248 = vector.extract_strided_slice %208 {offsets = [0, 96], sizes = [8, 32], strides = [1, 1]} : vector<8x128xf32> to vector<8x32xf32>
    %249 = arith.negf %248 : vector<8x32xf32>
    %250 = math.exp %249 : vector<8x32xf32>
    %cst_44 = arith.constant 1.000000e+00 : f32
    %251 = vector.broadcast %cst_44 : f32 to vector<8x32xf32>
    %252 = arith.addf %251, %250 : vector<8x32xf32>
    %253 = arith.divf %251, %252 : vector<8x32xf32>
    %254 = arith.mulf %245, %179 : vector<8x32xf32>
    %255 = arith.mulf %239, %247 : vector<8x32xf32>
    %256 = arith.addf %254, %255 : vector<8x32xf32>
    %257 = math.tanh %256 : vector<8x32xf32>
    %258 = arith.mulf %253, %257 : vector<8x32xf32>
    %259 = vector.shape_cast %195 : vector<8x1xi1> to vector<8x1xi1>
    %260 = vector.broadcast %259 : vector<8x1xi1> to vector<8x32xi1>
    %261 = arith.select %260, %233, %170 : vector<8x32xi1>, vector<8x32xf32>
    %262 = vector.shape_cast %195 : vector<8x1xi1> to vector<8x1xi1>
    %263 = vector.broadcast %262 : vector<8x1xi1> to vector<8x32xi1>
    %264 = arith.select %263, %231, %173 : vector<8x32xi1>, vector<8x32xf32>
    %265 = vector.shape_cast %197 : vector<8x1xi1> to vector<8x1xi1>
    %266 = vector.broadcast %265 : vector<8x1xi1> to vector<8x32xi1>
    %267 = arith.select %266, %258, %176 : vector<8x32xi1>, vector<8x32xf32>
    %268 = vector.shape_cast %197 : vector<8x1xi1> to vector<8x1xi1>
    %269 = vector.broadcast %268 : vector<8x1xi1> to vector<8x32xi1>
    %270 = arith.select %269, %256, %179 : vector<8x32xi1>, vector<8x32xf32>
    %cst_45 = arith.constant 0.000000e+00 : f32
    %271 = vector.shape_cast %195 : vector<8x1xi1> to vector<8x1xi1>
    %272 = vector.broadcast %271 : vector<8x1xi1> to vector<8x32xi1>
    %273 = vector.broadcast %cst_45 : f32 to vector<8x32xf32>
    %274 = arith.select %272, %261, %273 : vector<8x32xi1>, vector<8x32xf32>
    %c2 = arith.constant 2 : index
    %c0_46 = arith.constant 0 : index
    %c0_47 = arith.constant 0 : index
    %275 = vector.load %arg12[%c2, %c0_46, %c0_47] : memref<8x8x32xf32, #tpu.memory_space<vmem>>, vector<1x8x32xf32>
    %276 = vector.shape_cast %275 : vector<1x8x32xf32> to vector<8x32xf32>
    %277 = vector.shape_cast %274 : vector<8x32xf32> to vector<1x8x32xf32>
    tpu.vector_store %arg12[%c2, %c0_46, %c0_47], %277 {strides = array<i32>} : memref<8x8x32xf32, #tpu.memory_space<vmem>>, vector<1x8x32xf32>,
    %cst_48 = arith.constant 0.000000e+00 : f32
    %278 = vector.shape_cast %197 : vector<8x1xi1> to vector<8x1xi1>
    %279 = vector.broadcast %278 : vector<8x1xi1> to vector<8x32xi1>
    %280 = vector.broadcast %cst_48 : f32 to vector<8x32xf32>
    %281 = arith.select %279, %267, %280 : vector<8x32xi1>, vector<8x32xf32>
    %c5 = arith.constant 5 : index
    %c0_49 = arith.constant 0 : index
    %c0_50 = arith.constant 0 : index
    %282 = vector.load %arg13[%c5, %c0_49, %c0_50] : memref<8x8x32xf32, #tpu.memory_space<vmem>>, vector<1x8x32xf32>
    %283 = vector.shape_cast %282 : vector<1x8x32xf32> to vector<8x32xf32>
    %284 = vector.shape_cast %281 : vector<8x32xf32> to vector<1x8x32xf32>
    tpu.vector_store %arg13[%c5, %c0_49, %c0_50], %284 {strides = array<i32>} : memref<8x8x32xf32, #tpu.memory_space<vmem>>, vector<1x8x32xf32>,
    %c3_i32 = arith.constant 3 : i32
    %285 = vector.broadcast %c3_i32 : i32 to vector<8x1xi32>
    %286 = arith.cmpi sgt, %0, %285 : vector<8x1xi32>
    %c4_i32 = arith.constant 4 : i32
    %287 = vector.broadcast %c4_i32 : i32 to vector<8x1xi32>
    %288 = arith.cmpi sgt, %0, %287 : vector<8x1xi32>
    %289 = tpu.concatenate %261, %267 in 1 : vector<8x32xf32>, vector<8x32xf32> -> vector<8x64xf32>
    %290 = arith.truncf %289 : vector<8x64xf32> to vector<8x64xbf16>
    %cst_51 = arith.constant dense<0.000000e+00> : vector<8x256xf32>
    %291 = tpu.matmul %290, %10, %cst_51 {dimension_numbers = #tpu.dot_dimension_numbers<[1], [0], [0], [1], [0, 0, 1, 1], [], []>} : vector<8x64xbf16>, vector<64x256xbf16>, vector<8x256xf32> -> vector<8x256xf32>
    %292 = vector.extract_strided_slice %9 {offsets = [3, 0, 0], sizes = [1, 8, 128], strides = [1, 1, 1]} : vector<8x8x256xf32> to vector<1x8x128xf32>
    %293 = vector.shape_cast %292 : vector<1x8x128xf32> to vector<8x128xf32>
    %294 = vector.extract_strided_slice %291 {offsets = [0, 0], sizes = [8, 128], strides = [1, 1]} : vector<8x256xf32> to vector<8x128xf32>
    %295 = arith.addf %293, %294 : vector<8x128xf32>
    %296 = vector.extract_strided_slice %9 {offsets = [4, 0, 128], sizes = [1, 8, 128], strides = [1, 1, 1]} : vector<8x8x256xf32> to vector<1x8x128xf32>
    %297 = vector.shape_cast %296 : vector<1x8x128xf32> to vector<8x128xf32>
    %298 = vector.extract_strided_slice %291 {offsets = [0, 128], sizes = [8, 128], strides = [1, 1]} : vector<8x256xf32> to vector<8x128xf32>
    %299 = arith.addf %297, %298 : vector<8x128xf32>
    %300 = vector.extract_strided_slice %295 {offsets = [0, 0], sizes = [8, 32], strides = [1, 1]} : vector<8x128xf32> to vector<8x32xf32>
    %301 = arith.negf %300 : vector<8x32xf32>
    %302 = math.exp %301 : vector<8x32xf32>
    %cst_52 = arith.constant 1.000000e+00 : f32
    %303 = vector.broadcast %cst_52 : f32 to vector<8x32xf32>
    %304 = arith.addf %303, %302 : vector<8x32xf32>
    %305 = arith.divf %303, %304 : vector<8x32xf32>
    %306 = vector.extract_strided_slice %295 {offsets = [0, 32], sizes = [8, 32], strides = [1, 1]} : vector<8x128xf32> to vector<8x32xf32>
    %307 = arith.negf %306 : vector<8x32xf32>
    %308 = math.exp %307 : vector<8x32xf32>
    %cst_53 = arith.constant 1.000000e+00 : f32
    %309 = vector.broadcast %cst_53 : f32 to vector<8x32xf32>
    %310 = arith.addf %309, %308 : vector<8x32xf32>
    %311 = arith.divf %309, %310 : vector<8x32xf32>
    %312 = vector.extract_strided_slice %295 {offsets = [0, 64], sizes = [8, 32], strides = [1, 1]} : vector<8x128xf32> to vector<8x32xf32>
    %313 = math.tanh %312 : vector<8x32xf32>
    %314 = vector.extract_strided_slice %295 {offsets = [0, 96], sizes = [8, 32], strides = [1, 1]} : vector<8x128xf32> to vector<8x32xf32>
    %315 = arith.negf %314 : vector<8x32xf32>
    %316 = math.exp %315 : vector<8x32xf32>
    %cst_54 = arith.constant 1.000000e+00 : f32
    %317 = vector.broadcast %cst_54 : f32 to vector<8x32xf32>
    %318 = arith.addf %317, %316 : vector<8x32xf32>
    %319 = arith.divf %317, %318 : vector<8x32xf32>
    %320 = arith.mulf %311, %264 : vector<8x32xf32>
    %321 = arith.mulf %305, %313 : vector<8x32xf32>
    %322 = arith.addf %320, %321 : vector<8x32xf32>
    %323 = math.tanh %322 : vector<8x32xf32>
    %324 = arith.mulf %319, %323 : vector<8x32xf32>
    %325 = vector.extract_strided_slice %299 {offsets = [0, 0], sizes = [8, 32], strides = [1, 1]} : vector<8x128xf32> to vector<8x32xf32>
    %326 = arith.negf %325 : vector<8x32xf32>
    %327 = math.exp %326 : vector<8x32xf32>
    %cst_55 = arith.constant 1.000000e+00 : f32
    %328 = vector.broadcast %cst_55 : f32 to vector<8x32xf32>
    %329 = arith.addf %328, %327 : vector<8x32xf32>
    %330 = arith.divf %328, %329 : vector<8x32xf32>
    %331 = vector.extract_strided_slice %299 {offsets = [0, 32], sizes = [8, 32], strides = [1, 1]} : vector<8x128xf32> to vector<8x32xf32>
    %332 = arith.negf %331 : vector<8x32xf32>
    %333 = math.exp %332 : vector<8x32xf32>
    %cst_56 = arith.constant 1.000000e+00 : f32
    %334 = vector.broadcast %cst_56 : f32 to vector<8x32xf32>
    %335 = arith.addf %334, %333 : vector<8x32xf32>
    %336 = arith.divf %334, %335 : vector<8x32xf32>
    %337 = vector.extract_strided_slice %299 {offsets = [0, 64], sizes = [8, 32], strides = [1, 1]} : vector<8x128xf32> to vector<8x32xf32>
    %338 = math.tanh %337 : vector<8x32xf32>
    %339 = vector.extract_strided_slice %299 {offsets = [0, 96], sizes = [8, 32], strides = [1, 1]} : vector<8x128xf32> to vector<8x32xf32>
    %340 = arith.negf %339 : vector<8x32xf32>
    %341 = math.exp %340 : vector<8x32xf32>
    %cst_57 = arith.constant 1.000000e+00 : f32
    %342 = vector.broadcast %cst_57 : f32 to vector<8x32xf32>
    %343 = arith.addf %342, %341 : vector<8x32xf32>
    %344 = arith.divf %342, %343 : vector<8x32xf32>
    %345 = arith.mulf %336, %270 : vector<8x32xf32>
    %346 = arith.mulf %330, %338 : vector<8x32xf32>
    %347 = arith.addf %345, %346 : vector<8x32xf32>
    %348 = math.tanh %347 : vector<8x32xf32>
    %349 = arith.mulf %344, %348 : vector<8x32xf32>
    %350 = vector.shape_cast %286 : vector<8x1xi1> to vector<8x1xi1>
    %351 = vector.broadcast %350 : vector<8x1xi1> to vector<8x32xi1>
    %352 = arith.select %351, %324, %261 : vector<8x32xi1>, vector<8x32xf32>
    %353 = vector.shape_cast %286 : vector<8x1xi1> to vector<8x1xi1>
    %354 = vector.broadcast %353 : vector<8x1xi1> to vector<8x32xi1>
    %355 = arith.select %354, %322, %264 : vector<8x32xi1>, vector<8x32xf32>
    %356 = vector.shape_cast %288 : vector<8x1xi1> to vector<8x1xi1>
    %357 = vector.broadcast %356 : vector<8x1xi1> to vector<8x32xi1>
    %358 = arith.select %357, %349, %267 : vector<8x32xi1>, vector<8x32xf32>
    %359 = vector.shape_cast %288 : vector<8x1xi1> to vector<8x1xi1>
    %360 = vector.broadcast %359 : vector<8x1xi1> to vector<8x32xi1>
    %361 = arith.select %360, %347, %270 : vector<8x32xi1>, vector<8x32xf32>
    %cst_58 = arith.constant 0.000000e+00 : f32
    %362 = vector.shape_cast %286 : vector<8x1xi1> to vector<8x1xi1>
    %363 = vector.broadcast %362 : vector<8x1xi1> to vector<8x32xi1>
    %364 = vector.broadcast %cst_58 : f32 to vector<8x32xf32>
    %365 = arith.select %363, %352, %364 : vector<8x32xi1>, vector<8x32xf32>
    %c3 = arith.constant 3 : index
    %c0_59 = arith.constant 0 : index
    %c0_60 = arith.constant 0 : index
    %366 = vector.load %arg12[%c3, %c0_59, %c0_60] : memref<8x8x32xf32, #tpu.memory_space<vmem>>, vector<1x8x32xf32>
    %367 = vector.shape_cast %366 : vector<1x8x32xf32> to vector<8x32xf32>
    %368 = vector.shape_cast %365 : vector<8x32xf32> to vector<1x8x32xf32>
    tpu.vector_store %arg12[%c3, %c0_59, %c0_60], %368 {strides = array<i32>} : memref<8x8x32xf32, #tpu.memory_space<vmem>>, vector<1x8x32xf32>,
    %cst_61 = arith.constant 0.000000e+00 : f32
    %369 = vector.shape_cast %288 : vector<8x1xi1> to vector<8x1xi1>
    %370 = vector.broadcast %369 : vector<8x1xi1> to vector<8x32xi1>
    %371 = vector.broadcast %cst_61 : f32 to vector<8x32xf32>
    %372 = arith.select %370, %358, %371 : vector<8x32xi1>, vector<8x32xf32>
    %c4 = arith.constant 4 : index
    %c0_62 = arith.constant 0 : index
    %c0_63 = arith.constant 0 : index
    %373 = vector.load %arg13[%c4, %c0_62, %c0_63] : memref<8x8x32xf32, #tpu.memory_space<vmem>>, vector<1x8x32xf32>
    %374 = vector.shape_cast %373 : vector<1x8x32xf32> to vector<8x32xf32>
    %375 = vector.shape_cast %372 : vector<8x32xf32> to vector<1x8x32xf32>
    tpu.vector_store %arg13[%c4, %c0_62, %c0_63], %375 {strides = array<i32>} : memref<8x8x32xf32, #tpu.memory_space<vmem>>, vector<1x8x32xf32>,
    %c4_i32_64 = arith.constant 4 : i32
    %376 = vector.broadcast %c4_i32_64 : i32 to vector<8x1xi32>
    %377 = arith.cmpi sgt, %0, %376 : vector<8x1xi32>
    %c3_i32_65 = arith.constant 3 : i32
    %378 = vector.broadcast %c3_i32_65 : i32 to vector<8x1xi32>
    %379 = arith.cmpi sgt, %0, %378 : vector<8x1xi32>
    %380 = tpu.concatenate %352, %358 in 1 : vector<8x32xf32>, vector<8x32xf32> -> vector<8x64xf32>
    %381 = arith.truncf %380 : vector<8x64xf32> to vector<8x64xbf16>
    %cst_66 = arith.constant dense<0.000000e+00> : vector<8x256xf32>
    %382 = tpu.matmul %381, %10, %cst_66 {dimension_numbers = #tpu.dot_dimension_numbers<[1], [0], [0], [1], [0, 0, 1, 1], [], []>} : vector<8x64xbf16>, vector<64x256xbf16>, vector<8x256xf32> -> vector<8x256xf32>
    %383 = vector.extract_strided_slice %9 {offsets = [4, 0, 0], sizes = [1, 8, 128], strides = [1, 1, 1]} : vector<8x8x256xf32> to vector<1x8x128xf32>
    %384 = vector.shape_cast %383 : vector<1x8x128xf32> to vector<8x128xf32>
    %385 = vector.extract_strided_slice %382 {offsets = [0, 0], sizes = [8, 128], strides = [1, 1]} : vector<8x256xf32> to vector<8x128xf32>
    %386 = arith.addf %384, %385 : vector<8x128xf32>
    %387 = vector.extract_strided_slice %9 {offsets = [3, 0, 128], sizes = [1, 8, 128], strides = [1, 1, 1]} : vector<8x8x256xf32> to vector<1x8x128xf32>
    %388 = vector.shape_cast %387 : vector<1x8x128xf32> to vector<8x128xf32>
    %389 = vector.extract_strided_slice %382 {offsets = [0, 128], sizes = [8, 128], strides = [1, 1]} : vector<8x256xf32> to vector<8x128xf32>
    %390 = arith.addf %388, %389 : vector<8x128xf32>
    %391 = vector.extract_strided_slice %386 {offsets = [0, 0], sizes = [8, 32], strides = [1, 1]} : vector<8x128xf32> to vector<8x32xf32>
    %392 = arith.negf %391 : vector<8x32xf32>
    %393 = math.exp %392 : vector<8x32xf32>
    %cst_67 = arith.constant 1.000000e+00 : f32
    %394 = vector.broadcast %cst_67 : f32 to vector<8x32xf32>
    %395 = arith.addf %394, %393 : vector<8x32xf32>
    %396 = arith.divf %394, %395 : vector<8x32xf32>
    %397 = vector.extract_strided_slice %386 {offsets = [0, 32], sizes = [8, 32], strides = [1, 1]} : vector<8x128xf32> to vector<8x32xf32>
    %398 = arith.negf %397 : vector<8x32xf32>
    %399 = math.exp %398 : vector<8x32xf32>
    %cst_68 = arith.constant 1.000000e+00 : f32
    %400 = vector.broadcast %cst_68 : f32 to vector<8x32xf32>
    %401 = arith.addf %400, %399 : vector<8x32xf32>
    %402 = arith.divf %400, %401 : vector<8x32xf32>
    %403 = vector.extract_strided_slice %386 {offsets = [0, 64], sizes = [8, 32], strides = [1, 1]} : vector<8x128xf32> to vector<8x32xf32>
    %404 = math.tanh %403 : vector<8x32xf32>
    %405 = vector.extract_strided_slice %386 {offsets = [0, 96], sizes = [8, 32], strides = [1, 1]} : vector<8x128xf32> to vector<8x32xf32>
    %406 = arith.negf %405 : vector<8x32xf32>
    %407 = math.exp %406 : vector<8x32xf32>
    %cst_69 = arith.constant 1.000000e+00 : f32
    %408 = vector.broadcast %cst_69 : f32 to vector<8x32xf32>
    %409 = arith.addf %408, %407 : vector<8x32xf32>
    %410 = arith.divf %408, %409 : vector<8x32xf32>
    %411 = arith.mulf %402, %355 : vector<8x32xf32>
    %412 = arith.mulf %396, %404 : vector<8x32xf32>
    %413 = arith.addf %411, %412 : vector<8x32xf32>
    %414 = math.tanh %413 : vector<8x32xf32>
    %415 = arith.mulf %410, %414 : vector<8x32xf32>
    %416 = vector.extract_strided_slice %390 {offsets = [0, 0], sizes = [8, 32], strides = [1, 1]} : vector<8x128xf32> to vector<8x32xf32>
    %417 = arith.negf %416 : vector<8x32xf32>
    %418 = math.exp %417 : vector<8x32xf32>
    %cst_70 = arith.constant 1.000000e+00 : f32
    %419 = vector.broadcast %cst_70 : f32 to vector<8x32xf32>
    %420 = arith.addf %419, %418 : vector<8x32xf32>
    %421 = arith.divf %419, %420 : vector<8x32xf32>
    %422 = vector.extract_strided_slice %390 {offsets = [0, 32], sizes = [8, 32], strides = [1, 1]} : vector<8x128xf32> to vector<8x32xf32>
    %423 = arith.negf %422 : vector<8x32xf32>
    %424 = math.exp %423 : vector<8x32xf32>
    %cst_71 = arith.constant 1.000000e+00 : f32
    %425 = vector.broadcast %cst_71 : f32 to vector<8x32xf32>
    %426 = arith.addf %425, %424 : vector<8x32xf32>
    %427 = arith.divf %425, %426 : vector<8x32xf32>
    %428 = vector.extract_strided_slice %390 {offsets = [0, 64], sizes = [8, 32], strides = [1, 1]} : vector<8x128xf32> to vector<8x32xf32>
    %429 = math.tanh %428 : vector<8x32xf32>
    %430 = vector.extract_strided_slice %390 {offsets = [0, 96], sizes = [8, 32], strides = [1, 1]} : vector<8x128xf32> to vector<8x32xf32>
    %431 = arith.negf %430 : vector<8x32xf32>
    %432 = math.exp %431 : vector<8x32xf32>
    %cst_72 = arith.constant 1.000000e+00 : f32
    %433 = vector.broadcast %cst_72 : f32 to vector<8x32xf32>
    %434 = arith.addf %433, %432 : vector<8x32xf32>
    %435 = arith.divf %433, %434 : vector<8x32xf32>
    %436 = arith.mulf %427, %361 : vector<8x32xf32>
    %437 = arith.mulf %421, %429 : vector<8x32xf32>
    %438 = arith.addf %436, %437 : vector<8x32xf32>
    %439 = math.tanh %438 : vector<8x32xf32>
    %440 = arith.mulf %435, %439 : vector<8x32xf32>
    %441 = vector.shape_cast %377 : vector<8x1xi1> to vector<8x1xi1>
    %442 = vector.broadcast %441 : vector<8x1xi1> to vector<8x32xi1>
    %443 = arith.select %442, %415, %352 : vector<8x32xi1>, vector<8x32xf32>
    %444 = vector.shape_cast %377 : vector<8x1xi1> to vector<8x1xi1>
    %445 = vector.broadcast %444 : vector<8x1xi1> to vector<8x32xi1>
    %446 = arith.select %445, %413, %355 : vector<8x32xi1>, vector<8x32xf32>
    %447 = vector.shape_cast %379 : vector<8x1xi1> to vector<8x1xi1>
    %448 = vector.broadcast %447 : vector<8x1xi1> to vector<8x32xi1>
    %449 = arith.select %448, %440, %358 : vector<8x32xi1>, vector<8x32xf32>
    %450 = vector.shape_cast %379 : vector<8x1xi1> to vector<8x1xi1>
    %451 = vector.broadcast %450 : vector<8x1xi1> to vector<8x32xi1>
    %452 = arith.select %451, %438, %361 : vector<8x32xi1>, vector<8x32xf32>
    %cst_73 = arith.constant 0.000000e+00 : f32
    %453 = vector.shape_cast %377 : vector<8x1xi1> to vector<8x1xi1>
    %454 = vector.broadcast %453 : vector<8x1xi1> to vector<8x32xi1>
    %455 = vector.broadcast %cst_73 : f32 to vector<8x32xf32>
    %456 = arith.select %454, %443, %455 : vector<8x32xi1>, vector<8x32xf32>
    %c4_74 = arith.constant 4 : index
    %c0_75 = arith.constant 0 : index
    %c0_76 = arith.constant 0 : index
    %457 = vector.load %arg12[%c4_74, %c0_75, %c0_76] : memref<8x8x32xf32, #tpu.memory_space<vmem>>, vector<1x8x32xf32>
    %458 = vector.shape_cast %457 : vector<1x8x32xf32> to vector<8x32xf32>
    %459 = vector.shape_cast %456 : vector<8x32xf32> to vector<1x8x32xf32>
    tpu.vector_store %arg12[%c4_74, %c0_75, %c0_76], %459 {strides = array<i32>} : memref<8x8x32xf32, #tpu.memory_space<vmem>>, vector<1x8x32xf32>,
    %cst_77 = arith.constant 0.000000e+00 : f32
    %460 = vector.shape_cast %379 : vector<8x1xi1> to vector<8x1xi1>
    %461 = vector.broadcast %460 : vector<8x1xi1> to vector<8x32xi1>
    %462 = vector.broadcast %cst_77 : f32 to vector<8x32xf32>
    %463 = arith.select %461, %449, %462 : vector<8x32xi1>, vector<8x32xf32>
    %c3_78 = arith.constant 3 : index
    %c0_79 = arith.constant 0 : index
    %c0_80 = arith.constant 0 : index
    %464 = vector.load %arg13[%c3_78, %c0_79, %c0_80] : memref<8x8x32xf32, #tpu.memory_space<vmem>>, vector<1x8x32xf32>
    %465 = vector.shape_cast %464 : vector<1x8x32xf32> to vector<8x32xf32>
    %466 = vector.shape_cast %463 : vector<8x32xf32> to vector<1x8x32xf32>
    tpu.vector_store %arg13[%c3_78, %c0_79, %c0_80], %466 {strides = array<i32>} : memref<8x8x32xf32, #tpu.memory_space<vmem>>, vector<1x8x32xf32>,
    %c5_i32_81 = arith.constant 5 : i32
    %467 = vector.broadcast %c5_i32_81 : i32 to vector<8x1xi32>
    %468 = arith.cmpi sgt, %0, %467 : vector<8x1xi32>
    %c2_i32_82 = arith.constant 2 : i32
    %469 = vector.broadcast %c2_i32_82 : i32 to vector<8x1xi32>
    %470 = arith.cmpi sgt, %0, %469 : vector<8x1xi32>
    %471 = tpu.concatenate %443, %449 in 1 : vector<8x32xf32>, vector<8x32xf32> -> vector<8x64xf32>
    %472 = arith.truncf %471 : vector<8x64xf32> to vector<8x64xbf16>
    %cst_83 = arith.constant dense<0.000000e+00> : vector<8x256xf32>
    %473 = tpu.matmul %472, %10, %cst_83 {dimension_numbers = #tpu.dot_dimension_numbers<[1], [0], [0], [1], [0, 0, 1, 1], [], []>} : vector<8x64xbf16>, vector<64x256xbf16>, vector<8x256xf32> -> vector<8x256xf32>
    %474 = vector.extract_strided_slice %9 {offsets = [5, 0, 0], sizes = [1, 8, 128], strides = [1, 1, 1]} : vector<8x8x256xf32> to vector<1x8x128xf32>
    %475 = vector.shape_cast %474 : vector<1x8x128xf32> to vector<8x128xf32>
    %476 = vector.extract_strided_slice %473 {offsets = [0, 0], sizes = [8, 128], strides = [1, 1]} : vector<8x256xf32> to vector<8x128xf32>
    %477 = arith.addf %475, %476 : vector<8x128xf32>
    %478 = vector.extract_strided_slice %9 {offsets = [2, 0, 128], sizes = [1, 8, 128], strides = [1, 1, 1]} : vector<8x8x256xf32> to vector<1x8x128xf32>
    %479 = vector.shape_cast %478 : vector<1x8x128xf32> to vector<8x128xf32>
    %480 = vector.extract_strided_slice %473 {offsets = [0, 128], sizes = [8, 128], strides = [1, 1]} : vector<8x256xf32> to vector<8x128xf32>
    %481 = arith.addf %479, %480 : vector<8x128xf32>
    %482 = vector.extract_strided_slice %477 {offsets = [0, 0], sizes = [8, 32], strides = [1, 1]} : vector<8x128xf32> to vector<8x32xf32>
    %483 = arith.negf %482 : vector<8x32xf32>
    %484 = math.exp %483 : vector<8x32xf32>
    %cst_84 = arith.constant 1.000000e+00 : f32
    %485 = vector.broadcast %cst_84 : f32 to vector<8x32xf32>
    %486 = arith.addf %485, %484 : vector<8x32xf32>
    %487 = arith.divf %485, %486 : vector<8x32xf32>
    %488 = vector.extract_strided_slice %477 {offsets = [0, 32], sizes = [8, 32], strides = [1, 1]} : vector<8x128xf32> to vector<8x32xf32>
    %489 = arith.negf %488 : vector<8x32xf32>
    %490 = math.exp %489 : vector<8x32xf32>
    %cst_85 = arith.constant 1.000000e+00 : f32
    %491 = vector.broadcast %cst_85 : f32 to vector<8x32xf32>
    %492 = arith.addf %491, %490 : vector<8x32xf32>
    %493 = arith.divf %491, %492 : vector<8x32xf32>
    %494 = vector.extract_strided_slice %477 {offsets = [0, 64], sizes = [8, 32], strides = [1, 1]} : vector<8x128xf32> to vector<8x32xf32>
    %495 = math.tanh %494 : vector<8x32xf32>
    %496 = vector.extract_strided_slice %477 {offsets = [0, 96], sizes = [8, 32], strides = [1, 1]} : vector<8x128xf32> to vector<8x32xf32>
    %497 = arith.negf %496 : vector<8x32xf32>
    %498 = math.exp %497 : vector<8x32xf32>
    %cst_86 = arith.constant 1.000000e+00 : f32
    %499 = vector.broadcast %cst_86 : f32 to vector<8x32xf32>
    %500 = arith.addf %499, %498 : vector<8x32xf32>
    %501 = arith.divf %499, %500 : vector<8x32xf32>
    %502 = arith.mulf %493, %446 : vector<8x32xf32>
    %503 = arith.mulf %487, %495 : vector<8x32xf32>
    %504 = arith.addf %502, %503 : vector<8x32xf32>
    %505 = math.tanh %504 : vector<8x32xf32>
    %506 = arith.mulf %501, %505 : vector<8x32xf32>
    %507 = vector.extract_strided_slice %481 {offsets = [0, 0], sizes = [8, 32], strides = [1, 1]} : vector<8x128xf32> to vector<8x32xf32>
    %508 = arith.negf %507 : vector<8x32xf32>
    %509 = math.exp %508 : vector<8x32xf32>
    %cst_87 = arith.constant 1.000000e+00 : f32
    %510 = vector.broadcast %cst_87 : f32 to vector<8x32xf32>
    %511 = arith.addf %510, %509 : vector<8x32xf32>
    %512 = arith.divf %510, %511 : vector<8x32xf32>
    %513 = vector.extract_strided_slice %481 {offsets = [0, 32], sizes = [8, 32], strides = [1, 1]} : vector<8x128xf32> to vector<8x32xf32>
    %514 = arith.negf %513 : vector<8x32xf32>
    %515 = math.exp %514 : vector<8x32xf32>
    %cst_88 = arith.constant 1.000000e+00 : f32
    %516 = vector.broadcast %cst_88 : f32 to vector<8x32xf32>
    %517 = arith.addf %516, %515 : vector<8x32xf32>
    %518 = arith.divf %516, %517 : vector<8x32xf32>
    %519 = vector.extract_strided_slice %481 {offsets = [0, 64], sizes = [8, 32], strides = [1, 1]} : vector<8x128xf32> to vector<8x32xf32>
    %520 = math.tanh %519 : vector<8x32xf32>
    %521 = vector.extract_strided_slice %481 {offsets = [0, 96], sizes = [8, 32], strides = [1, 1]} : vector<8x128xf32> to vector<8x32xf32>
    %522 = arith.negf %521 : vector<8x32xf32>
    %523 = math.exp %522 : vector<8x32xf32>
    %cst_89 = arith.constant 1.000000e+00 : f32
    %524 = vector.broadcast %cst_89 : f32 to vector<8x32xf32>
    %525 = arith.addf %524, %523 : vector<8x32xf32>
    %526 = arith.divf %524, %525 : vector<8x32xf32>
    %527 = arith.mulf %518, %452 : vector<8x32xf32>
    %528 = arith.mulf %512, %520 : vector<8x32xf32>
    %529 = arith.addf %527, %528 : vector<8x32xf32>
    %530 = math.tanh %529 : vector<8x32xf32>
    %531 = arith.mulf %526, %530 : vector<8x32xf32>
    %532 = vector.shape_cast %468 : vector<8x1xi1> to vector<8x1xi1>
    %533 = vector.broadcast %532 : vector<8x1xi1> to vector<8x32xi1>
    %534 = arith.select %533, %506, %443 : vector<8x32xi1>, vector<8x32xf32>
    %535 = vector.shape_cast %468 : vector<8x1xi1> to vector<8x1xi1>
    %536 = vector.broadcast %535 : vector<8x1xi1> to vector<8x32xi1>
    %537 = arith.select %536, %504, %446 : vector<8x32xi1>, vector<8x32xf32>
    %538 = vector.shape_cast %470 : vector<8x1xi1> to vector<8x1xi1>
    %539 = vector.broadcast %538 : vector<8x1xi1> to vector<8x32xi1>
    %540 = arith.select %539, %531, %449 : vector<8x32xi1>, vector<8x32xf32>
    %541 = vector.shape_cast %470 : vector<8x1xi1> to vector<8x1xi1>
    %542 = vector.broadcast %541 : vector<8x1xi1> to vector<8x32xi1>
    %543 = arith.select %542, %529, %452 : vector<8x32xi1>, vector<8x32xf32>
    %cst_90 = arith.constant 0.000000e+00 : f32
    %544 = vector.shape_cast %468 : vector<8x1xi1> to vector<8x1xi1>
    %545 = vector.broadcast %544 : vector<8x1xi1> to vector<8x32xi1>
    %546 = vector.broadcast %cst_90 : f32 to vector<8x32xf32>
    %547 = arith.select %545, %534, %546 : vector<8x32xi1>, vector<8x32xf32>
    %c5_91 = arith.constant 5 : index
    %c0_92 = arith.constant 0 : index
    %c0_93 = arith.constant 0 : index
    %548 = vector.load %arg12[%c5_91, %c0_92, %c0_93] : memref<8x8x32xf32, #tpu.memory_space<vmem>>, vector<1x8x32xf32>
    %549 = vector.shape_cast %548 : vector<1x8x32xf32> to vector<8x32xf32>
    %550 = vector.shape_cast %547 : vector<8x32xf32> to vector<1x8x32xf32>
    tpu.vector_store %arg12[%c5_91, %c0_92, %c0_93], %550 {strides = array<i32>} : memref<8x8x32xf32, #tpu.memory_space<vmem>>, vector<1x8x32xf32>,
    %cst_94 = arith.constant 0.000000e+00 : f32
    %551 = vector.shape_cast %470 : vector<8x1xi1> to vector<8x1xi1>
    %552 = vector.broadcast %551 : vector<8x1xi1> to vector<8x32xi1>
    %553 = vector.broadcast %cst_94 : f32 to vector<8x32xf32>
    %554 = arith.select %552, %540, %553 : vector<8x32xi1>, vector<8x32xf32>
    %c2_95 = arith.constant 2 : index
    %c0_96 = arith.constant 0 : index
    %c0_97 = arith.constant 0 : index
    %555 = vector.load %arg13[%c2_95, %c0_96, %c0_97] : memref<8x8x32xf32, #tpu.memory_space<vmem>>, vector<1x8x32xf32>
    %556 = vector.shape_cast %555 : vector<1x8x32xf32> to vector<8x32xf32>
    %557 = vector.shape_cast %554 : vector<8x32xf32> to vector<1x8x32xf32>
    tpu.vector_store %arg13[%c2_95, %c0_96, %c0_97], %557 {strides = array<i32>} : memref<8x8x32xf32, #tpu.memory_space<vmem>>, vector<1x8x32xf32>,
    %c6_i32_98 = arith.constant 6 : i32
    %558 = vector.broadcast %c6_i32_98 : i32 to vector<8x1xi32>
    %559 = arith.cmpi sgt, %0, %558 : vector<8x1xi32>
    %c1_i32_99 = arith.constant 1 : i32
    %560 = vector.broadcast %c1_i32_99 : i32 to vector<8x1xi32>
    %561 = arith.cmpi sgt, %0, %560 : vector<8x1xi32>
    %562 = tpu.concatenate %534, %540 in 1 : vector<8x32xf32>, vector<8x32xf32> -> vector<8x64xf32>
    %563 = arith.truncf %562 : vector<8x64xf32> to vector<8x64xbf16>
    %cst_100 = arith.constant dense<0.000000e+00> : vector<8x256xf32>
    %564 = tpu.matmul %563, %10, %cst_100 {dimension_numbers = #tpu.dot_dimension_numbers<[1], [0], [0], [1], [0, 0, 1, 1], [], []>} : vector<8x64xbf16>, vector<64x256xbf16>, vector<8x256xf32> -> vector<8x256xf32>
    %565 = vector.extract_strided_slice %9 {offsets = [6, 0, 0], sizes = [1, 8, 128], strides = [1, 1, 1]} : vector<8x8x256xf32> to vector<1x8x128xf32>
    %566 = vector.shape_cast %565 : vector<1x8x128xf32> to vector<8x128xf32>
    %567 = vector.extract_strided_slice %564 {offsets = [0, 0], sizes = [8, 128], strides = [1, 1]} : vector<8x256xf32> to vector<8x128xf32>
    %568 = arith.addf %566, %567 : vector<8x128xf32>
    %569 = vector.extract_strided_slice %9 {offsets = [1, 0, 128], sizes = [1, 8, 128], strides = [1, 1, 1]} : vector<8x8x256xf32> to vector<1x8x128xf32>
    %570 = vector.shape_cast %569 : vector<1x8x128xf32> to vector<8x128xf32>
    %571 = vector.extract_strided_slice %564 {offsets = [0, 128], sizes = [8, 128], strides = [1, 1]} : vector<8x256xf32> to vector<8x128xf32>
    %572 = arith.addf %570, %571 : vector<8x128xf32>
    %573 = vector.extract_strided_slice %568 {offsets = [0, 0], sizes = [8, 32], strides = [1, 1]} : vector<8x128xf32> to vector<8x32xf32>
    %574 = arith.negf %573 : vector<8x32xf32>
    %575 = math.exp %574 : vector<8x32xf32>
    %cst_101 = arith.constant 1.000000e+00 : f32
    %576 = vector.broadcast %cst_101 : f32 to vector<8x32xf32>
    %577 = arith.addf %576, %575 : vector<8x32xf32>
    %578 = arith.divf %576, %577 : vector<8x32xf32>
    %579 = vector.extract_strided_slice %568 {offsets = [0, 32], sizes = [8, 32], strides = [1, 1]} : vector<8x128xf32> to vector<8x32xf32>
    %580 = arith.negf %579 : vector<8x32xf32>
    %581 = math.exp %580 : vector<8x32xf32>
    %cst_102 = arith.constant 1.000000e+00 : f32
    %582 = vector.broadcast %cst_102 : f32 to vector<8x32xf32>
    %583 = arith.addf %582, %581 : vector<8x32xf32>
    %584 = arith.divf %582, %583 : vector<8x32xf32>
    %585 = vector.extract_strided_slice %568 {offsets = [0, 64], sizes = [8, 32], strides = [1, 1]} : vector<8x128xf32> to vector<8x32xf32>
    %586 = math.tanh %585 : vector<8x32xf32>
    %587 = vector.extract_strided_slice %568 {offsets = [0, 96], sizes = [8, 32], strides = [1, 1]} : vector<8x128xf32> to vector<8x32xf32>
    %588 = arith.negf %587 : vector<8x32xf32>
    %589 = math.exp %588 : vector<8x32xf32>
    %cst_103 = arith.constant 1.000000e+00 : f32
    %590 = vector.broadcast %cst_103 : f32 to vector<8x32xf32>
    %591 = arith.addf %590, %589 : vector<8x32xf32>
    %592 = arith.divf %590, %591 : vector<8x32xf32>
    %593 = arith.mulf %584, %537 : vector<8x32xf32>
    %594 = arith.mulf %578, %586 : vector<8x32xf32>
    %595 = arith.addf %593, %594 : vector<8x32xf32>
    %596 = math.tanh %595 : vector<8x32xf32>
    %597 = arith.mulf %592, %596 : vector<8x32xf32>
    %598 = vector.extract_strided_slice %572 {offsets = [0, 0], sizes = [8, 32], strides = [1, 1]} : vector<8x128xf32> to vector<8x32xf32>
    %599 = arith.negf %598 : vector<8x32xf32>
    %600 = math.exp %599 : vector<8x32xf32>
    %cst_104 = arith.constant 1.000000e+00 : f32
    %601 = vector.broadcast %cst_104 : f32 to vector<8x32xf32>
    %602 = arith.addf %601, %600 : vector<8x32xf32>
    %603 = arith.divf %601, %602 : vector<8x32xf32>
    %604 = vector.extract_strided_slice %572 {offsets = [0, 32], sizes = [8, 32], strides = [1, 1]} : vector<8x128xf32> to vector<8x32xf32>
    %605 = arith.negf %604 : vector<8x32xf32>
    %606 = math.exp %605 : vector<8x32xf32>
    %cst_105 = arith.constant 1.000000e+00 : f32
    %607 = vector.broadcast %cst_105 : f32 to vector<8x32xf32>
    %608 = arith.addf %607, %606 : vector<8x32xf32>
    %609 = arith.divf %607, %608 : vector<8x32xf32>
    %610 = vector.extract_strided_slice %572 {offsets = [0, 64], sizes = [8, 32], strides = [1, 1]} : vector<8x128xf32> to vector<8x32xf32>
    %611 = math.tanh %610 : vector<8x32xf32>
    %612 = vector.extract_strided_slice %572 {offsets = [0, 96], sizes = [8, 32], strides = [1, 1]} : vector<8x128xf32> to vector<8x32xf32>
    %613 = arith.negf %612 : vector<8x32xf32>
    %614 = math.exp %613 : vector<8x32xf32>
    %cst_106 = arith.constant 1.000000e+00 : f32
    %615 = vector.broadcast %cst_106 : f32 to vector<8x32xf32>
    %616 = arith.addf %615, %614 : vector<8x32xf32>
    %617 = arith.divf %615, %616 : vector<8x32xf32>
    %618 = arith.mulf %609, %543 : vector<8x32xf32>
    %619 = arith.mulf %603, %611 : vector<8x32xf32>
    %620 = arith.addf %618, %619 : vector<8x32xf32>
    %621 = math.tanh %620 : vector<8x32xf32>
    %622 = arith.mulf %617, %621 : vector<8x32xf32>
    %623 = vector.shape_cast %559 : vector<8x1xi1> to vector<8x1xi1>
    %624 = vector.broadcast %623 : vector<8x1xi1> to vector<8x32xi1>
    %625 = arith.select %624, %597, %534 : vector<8x32xi1>, vector<8x32xf32>
    %626 = vector.shape_cast %559 : vector<8x1xi1> to vector<8x1xi1>
    %627 = vector.broadcast %626 : vector<8x1xi1> to vector<8x32xi1>
    %628 = arith.select %627, %595, %537 : vector<8x32xi1>, vector<8x32xf32>
    %629 = vector.shape_cast %561 : vector<8x1xi1> to vector<8x1xi1>
    %630 = vector.broadcast %629 : vector<8x1xi1> to vector<8x32xi1>
    %631 = arith.select %630, %622, %540 : vector<8x32xi1>, vector<8x32xf32>
    %632 = vector.shape_cast %561 : vector<8x1xi1> to vector<8x1xi1>
    %633 = vector.broadcast %632 : vector<8x1xi1> to vector<8x32xi1>
    %634 = arith.select %633, %620, %543 : vector<8x32xi1>, vector<8x32xf32>
    %cst_107 = arith.constant 0.000000e+00 : f32
    %635 = vector.shape_cast %559 : vector<8x1xi1> to vector<8x1xi1>
    %636 = vector.broadcast %635 : vector<8x1xi1> to vector<8x32xi1>
    %637 = vector.broadcast %cst_107 : f32 to vector<8x32xf32>
    %638 = arith.select %636, %625, %637 : vector<8x32xi1>, vector<8x32xf32>
    %c6_108 = arith.constant 6 : index
    %c0_109 = arith.constant 0 : index
    %c0_110 = arith.constant 0 : index
    %639 = vector.load %arg12[%c6_108, %c0_109, %c0_110] : memref<8x8x32xf32, #tpu.memory_space<vmem>>, vector<1x8x32xf32>
    %640 = vector.shape_cast %639 : vector<1x8x32xf32> to vector<8x32xf32>
    %641 = vector.shape_cast %638 : vector<8x32xf32> to vector<1x8x32xf32>
    tpu.vector_store %arg12[%c6_108, %c0_109, %c0_110], %641 {strides = array<i32>} : memref<8x8x32xf32, #tpu.memory_space<vmem>>, vector<1x8x32xf32>,
    %cst_111 = arith.constant 0.000000e+00 : f32
    %642 = vector.shape_cast %561 : vector<8x1xi1> to vector<8x1xi1>
    %643 = vector.broadcast %642 : vector<8x1xi1> to vector<8x32xi1>
    %644 = vector.broadcast %cst_111 : f32 to vector<8x32xf32>
    %645 = arith.select %643, %631, %644 : vector<8x32xi1>, vector<8x32xf32>
    %c1_112 = arith.constant 1 : index
    %c0_113 = arith.constant 0 : index
    %c0_114 = arith.constant 0 : index
    %646 = vector.load %arg13[%c1_112, %c0_113, %c0_114] : memref<8x8x32xf32, #tpu.memory_space<vmem>>, vector<1x8x32xf32>
    %647 = vector.shape_cast %646 : vector<1x8x32xf32> to vector<8x32xf32>
    %648 = vector.shape_cast %645 : vector<8x32xf32> to vector<1x8x32xf32>
    tpu.vector_store %arg13[%c1_112, %c0_113, %c0_114], %648 {strides = array<i32>} : memref<8x8x32xf32, #tpu.memory_space<vmem>>, vector<1x8x32xf32>,
    %c7_i32_115 = arith.constant 7 : i32
    %649 = vector.broadcast %c7_i32_115 : i32 to vector<8x1xi32>
    %650 = arith.cmpi sgt, %0, %649 : vector<8x1xi32>
    %c0_i32_116 = arith.constant 0 : i32
    %651 = vector.broadcast %c0_i32_116 : i32 to vector<8x1xi32>
    %652 = arith.cmpi sgt, %0, %651 : vector<8x1xi32>
    %653 = tpu.concatenate %625, %631 in 1 : vector<8x32xf32>, vector<8x32xf32> -> vector<8x64xf32>
    %654 = arith.truncf %653 : vector<8x64xf32> to vector<8x64xbf16>
    %cst_117 = arith.constant dense<0.000000e+00> : vector<8x256xf32>
    %655 = tpu.matmul %654, %10, %cst_117 {dimension_numbers = #tpu.dot_dimension_numbers<[1], [0], [0], [1], [0, 0, 1, 1], [], []>} : vector<8x64xbf16>, vector<64x256xbf16>, vector<8x256xf32> -> vector<8x256xf32>
    %656 = vector.extract_strided_slice %9 {offsets = [7, 0, 0], sizes = [1, 8, 128], strides = [1, 1, 1]} : vector<8x8x256xf32> to vector<1x8x128xf32>
    %657 = vector.shape_cast %656 : vector<1x8x128xf32> to vector<8x128xf32>
    %658 = vector.extract_strided_slice %655 {offsets = [0, 0], sizes = [8, 128], strides = [1, 1]} : vector<8x256xf32> to vector<8x128xf32>
    %659 = arith.addf %657, %658 : vector<8x128xf32>
    %660 = vector.extract_strided_slice %9 {offsets = [0, 0, 128], sizes = [1, 8, 128], strides = [1, 1, 1]} : vector<8x8x256xf32> to vector<1x8x128xf32>
    %661 = vector.shape_cast %660 : vector<1x8x128xf32> to vector<8x128xf32>
    %662 = vector.extract_strided_slice %655 {offsets = [0, 128], sizes = [8, 128], strides = [1, 1]} : vector<8x256xf32> to vector<8x128xf32>
    %663 = arith.addf %661, %662 : vector<8x128xf32>
    %664 = vector.extract_strided_slice %659 {offsets = [0, 0], sizes = [8, 32], strides = [1, 1]} : vector<8x128xf32> to vector<8x32xf32>
    %665 = arith.negf %664 : vector<8x32xf32>
    %666 = math.exp %665 : vector<8x32xf32>
    %cst_118 = arith.constant 1.000000e+00 : f32
    %667 = vector.broadcast %cst_118 : f32 to vector<8x32xf32>
    %668 = arith.addf %667, %666 : vector<8x32xf32>
    %669 = arith.divf %667, %668 : vector<8x32xf32>
    %670 = vector.extract_strided_slice %659 {offsets = [0, 32], sizes = [8, 32], strides = [1, 1]} : vector<8x128xf32> to vector<8x32xf32>
    %671 = arith.negf %670 : vector<8x32xf32>
    %672 = math.exp %671 : vector<8x32xf32>
    %cst_119 = arith.constant 1.000000e+00 : f32
    %673 = vector.broadcast %cst_119 : f32 to vector<8x32xf32>
    %674 = arith.addf %673, %672 : vector<8x32xf32>
    %675 = arith.divf %673, %674 : vector<8x32xf32>
    %676 = vector.extract_strided_slice %659 {offsets = [0, 64], sizes = [8, 32], strides = [1, 1]} : vector<8x128xf32> to vector<8x32xf32>
    %677 = math.tanh %676 : vector<8x32xf32>
    %678 = vector.extract_strided_slice %659 {offsets = [0, 96], sizes = [8, 32], strides = [1, 1]} : vector<8x128xf32> to vector<8x32xf32>
    %679 = arith.negf %678 : vector<8x32xf32>
    %680 = math.exp %679 : vector<8x32xf32>
    %cst_120 = arith.constant 1.000000e+00 : f32
    %681 = vector.broadcast %cst_120 : f32 to vector<8x32xf32>
    %682 = arith.addf %681, %680 : vector<8x32xf32>
    %683 = arith.divf %681, %682 : vector<8x32xf32>
    %684 = arith.mulf %675, %628 : vector<8x32xf32>
    %685 = arith.mulf %669, %677 : vector<8x32xf32>
    %686 = arith.addf %684, %685 : vector<8x32xf32>
    %687 = math.tanh %686 : vector<8x32xf32>
    %688 = arith.mulf %683, %687 : vector<8x32xf32>
    %689 = vector.extract_strided_slice %663 {offsets = [0, 0], sizes = [8, 32], strides = [1, 1]} : vector<8x128xf32> to vector<8x32xf32>
    %690 = arith.negf %689 : vector<8x32xf32>
    %691 = math.exp %690 : vector<8x32xf32>
    %cst_121 = arith.constant 1.000000e+00 : f32
    %692 = vector.broadcast %cst_121 : f32 to vector<8x32xf32>
    %693 = arith.addf %692, %691 : vector<8x32xf32>
    %694 = arith.divf %692, %693 : vector<8x32xf32>
    %695 = vector.extract_strided_slice %663 {offsets = [0, 32], sizes = [8, 32], strides = [1, 1]} : vector<8x128xf32> to vector<8x32xf32>
    %696 = arith.negf %695 : vector<8x32xf32>
    %697 = math.exp %696 : vector<8x32xf32>
    %cst_122 = arith.constant 1.000000e+00 : f32
    %698 = vector.broadcast %cst_122 : f32 to vector<8x32xf32>
    %699 = arith.addf %698, %697 : vector<8x32xf32>
    %700 = arith.divf %698, %699 : vector<8x32xf32>
    %701 = vector.extract_strided_slice %663 {offsets = [0, 64], sizes = [8, 32], strides = [1, 1]} : vector<8x128xf32> to vector<8x32xf32>
    %702 = math.tanh %701 : vector<8x32xf32>
    %703 = vector.extract_strided_slice %663 {offsets = [0, 96], sizes = [8, 32], strides = [1, 1]} : vector<8x128xf32> to vector<8x32xf32>
    %704 = arith.negf %703 : vector<8x32xf32>
    %705 = math.exp %704 : vector<8x32xf32>
    %cst_123 = arith.constant 1.000000e+00 : f32
    %706 = vector.broadcast %cst_123 : f32 to vector<8x32xf32>
    %707 = arith.addf %706, %705 : vector<8x32xf32>
    %708 = arith.divf %706, %707 : vector<8x32xf32>
    %709 = arith.mulf %700, %634 : vector<8x32xf32>
    %710 = arith.mulf %694, %702 : vector<8x32xf32>
    %711 = arith.addf %709, %710 : vector<8x32xf32>
    %712 = math.tanh %711 : vector<8x32xf32>
    %713 = arith.mulf %708, %712 : vector<8x32xf32>
    %714 = vector.shape_cast %650 : vector<8x1xi1> to vector<8x1xi1>
    %715 = vector.broadcast %714 : vector<8x1xi1> to vector<8x32xi1>
    %716 = arith.select %715, %688, %625 : vector<8x32xi1>, vector<8x32xf32>
    %717 = vector.shape_cast %652 : vector<8x1xi1> to vector<8x1xi1>
    %718 = vector.broadcast %717 : vector<8x1xi1> to vector<8x32xi1>
    %719 = arith.select %718, %713, %631 : vector<8x32xi1>, vector<8x32xf32>
    %cst_124 = arith.constant 0.000000e+00 : f32
    %720 = vector.shape_cast %650 : vector<8x1xi1> to vector<8x1xi1>
    %721 = vector.broadcast %720 : vector<8x1xi1> to vector<8x32xi1>
    %722 = vector.broadcast %cst_124 : f32 to vector<8x32xf32>
    %723 = arith.select %721, %716, %722 : vector<8x32xi1>, vector<8x32xf32>
    %c7_125 = arith.constant 7 : index
    %c0_126 = arith.constant 0 : index
    %c0_127 = arith.constant 0 : index
    %724 = vector.load %arg12[%c7_125, %c0_126, %c0_127] : memref<8x8x32xf32, #tpu.memory_space<vmem>>, vector<1x8x32xf32>
    %725 = vector.shape_cast %724 : vector<1x8x32xf32> to vector<8x32xf32>
    %726 = vector.shape_cast %723 : vector<8x32xf32> to vector<1x8x32xf32>
    tpu.vector_store %arg12[%c7_125, %c0_126, %c0_127], %726 {strides = array<i32>} : memref<8x8x32xf32, #tpu.memory_space<vmem>>, vector<1x8x32xf32>,
    %cst_128 = arith.constant 0.000000e+00 : f32
    %727 = vector.shape_cast %652 : vector<8x1xi1> to vector<8x1xi1>
    %728 = vector.broadcast %727 : vector<8x1xi1> to vector<8x32xi1>
    %729 = vector.broadcast %cst_128 : f32 to vector<8x32xf32>
    %730 = arith.select %728, %719, %729 : vector<8x32xi1>, vector<8x32xf32>
    %c0_129 = arith.constant 0 : index
    %c0_130 = arith.constant 0 : index
    %c0_131 = arith.constant 0 : index
    %731 = vector.load %arg13[%c0_129, %c0_130, %c0_131] : memref<8x8x32xf32, #tpu.memory_space<vmem>>, vector<1x8x32xf32>
    %732 = vector.shape_cast %731 : vector<1x8x32xf32> to vector<8x32xf32>
    %733 = vector.shape_cast %730 : vector<8x32xf32> to vector<1x8x32xf32>
    tpu.vector_store %arg13[%c0_129, %c0_130, %c0_131], %733 {strides = array<i32>} : memref<8x8x32xf32, #tpu.memory_space<vmem>>, vector<1x8x32xf32>,
    %c0_132 = arith.constant 0 : index
    %c0_133 = arith.constant 0 : index
    %734 = vector.load %arg5[%c0_132, %c0_133] : memref<64x8xbf16, #tpu.memory_space<vmem>>, vector<64x8xbf16>
    %c0_134 = arith.constant 0 : index
    %c0_135 = arith.constant 0 : index
    %c0_136 = arith.constant 0 : index
    %735 = vector.load %arg12[%c0_134, %c0_135, %c0_136] : memref<8x8x32xf32, #tpu.memory_space<vmem>>, vector<8x8x32xf32>
    %736 = vector.shape_cast %735 : vector<8x8x32xf32> to vector<64x32xf32>
    %737 = arith.truncf %736 : vector<64x32xf32> to vector<64x32xbf16>
    %738 = vector.extract_strided_slice %734 {offsets = [0, 0], sizes = [32, 8], strides = [1, 1]} : vector<64x8xbf16> to vector<32x8xbf16>
    %cst_137 = arith.constant dense<0.000000e+00> : vector<64x8xf32>
    %739 = tpu.matmul %737, %738, %cst_137 {dimension_numbers = #tpu.dot_dimension_numbers<[1], [0], [0], [1], [0, 0, 1, 1], [], []>} : vector<64x32xbf16>, vector<32x8xbf16>, vector<64x8xf32> -> vector<64x8xf32>
    %c0_138 = arith.constant 0 : index
    %c0_139 = arith.constant 0 : index
    %c0_140 = arith.constant 0 : index
    %740 = vector.load %arg13[%c0_138, %c0_139, %c0_140] : memref<8x8x32xf32, #tpu.memory_space<vmem>>, vector<8x8x32xf32>
    %741 = vector.shape_cast %740 : vector<8x8x32xf32> to vector<64x32xf32>
    %742 = arith.truncf %741 : vector<64x32xf32> to vector<64x32xbf16>
    %743 = vector.extract_strided_slice %734 {offsets = [32, 0], sizes = [32, 8], strides = [1, 1]} : vector<64x8xbf16> to vector<32x8xbf16>
    %cst_141 = arith.constant dense<0.000000e+00> : vector<64x8xf32>
    %744 = tpu.matmul %742, %743, %cst_141 {dimension_numbers = #tpu.dot_dimension_numbers<[1], [0], [0], [1], [0, 0, 1, 1], [], []>} : vector<64x32xbf16>, vector<32x8xbf16>, vector<64x8xf32> -> vector<64x8xf32>
    %745 = arith.addf %739, %744 : vector<64x8xf32>
    %c0_142 = arith.constant 0 : index
    %c0_143 = arith.constant 0 : index
    %746 = vector.load %arg6[%c0_142, %c0_143] : memref<1x8xf32, #tpu.memory_space<vmem>>, vector<1x8xf32>
    %747 = vector.broadcast %746 : vector<1x8xf32> to vector<64x8xf32>
    %748 = arith.addf %745, %747 : vector<64x8xf32>
    %749 = vector.shape_cast %748 : vector<64x8xf32> to vector<8x8x8xf32>
    %c0_144 = arith.constant 0 : index
    %c0_145 = arith.constant 0 : index
    %c0_146 = arith.constant 0 : index
    %750 = vector.load %arg8[%c0_144, %c0_145, %c0_146] : memref<8x8x8xf32, #tpu.memory_space<vmem>>, vector<8x8x8xf32>
    %751 = arith.mulf %749, %750 : vector<8x8x8xf32>
    %cst_147 = arith.constant dense<0.000000e+00> : vector<8x8xf32>
    %752 = vector.multi_reduction <add>, %751, %cst_147 [2] : vector<8x8x8xf32> to vector<8x8xf32>
    %753 = vector.shape_cast %752 : vector<8x8xf32> to vector<8x8x1xf32>
    %cst_148 = arith.constant dense<0.000000e+00> : vector<8x1xf32>
    %754 = vector.multi_reduction <add>, %753, %cst_148 [0] : vector<8x8x1xf32> to vector<8x1xf32>
    %c0_149 = arith.constant 0 : index
    %c0_150 = arith.constant 0 : index
    %755 = vector.load %arg9[%c0_149, %c0_150] : memref<8x1xf32, #tpu.memory_space<vmem>>, vector<8x1xf32>
    %756 = arith.addf %754, %755 : vector<8x1xf32>
    %c0_151 = arith.constant 0 : index
    %c0_152 = arith.constant 0 : index
    %757 = vector.load %arg7[%c0_151, %c0_152] : memref<8x8xf32, #tpu.memory_space<vmem>>, vector<8x8xf32>
    %758 = vector.extract_strided_slice %749 {offsets = [0, 0, 0], sizes = [1, 8, 8], strides = [1, 1, 1]} : vector<8x8x8xf32> to vector<1x8x8xf32>
    %759 = vector.shape_cast %758 : vector<1x8x8xf32> to vector<8x8xf32>
    %760 = vector.extract_strided_slice %749 {offsets = [1, 0, 0], sizes = [1, 8, 8], strides = [1, 1, 1]} : vector<8x8x8xf32> to vector<1x8x8xf32>
    %761 = vector.shape_cast %760 : vector<1x8x8xf32> to vector<8x8xf32>
    %c1_i32_153 = arith.constant 1 : i32
    %762 = vector.broadcast %c1_i32_153 : i32 to vector<8x1xi32>
    %763 = arith.cmpi sgt, %0, %762 : vector<8x1xi32>
    %764 = vector.shape_cast %759 : vector<8x8xf32> to vector<8x8x1xf32>
    %765 = vector.shape_cast %757 : vector<8x8xf32> to vector<1x8x8xf32>
    %766 = vector.broadcast %764 : vector<8x8x1xf32> to vector<8x8x8xf32>
    %767 = vector.broadcast %765 : vector<1x8x8xf32> to vector<8x8x8xf32>
    %768 = arith.addf %766, %767 : vector<8x8x8xf32>
    %769 = vector.shape_cast %761 : vector<8x8xf32> to vector<8x1x8xf32>
    %770 = vector.broadcast %769 : vector<8x1x8xf32> to vector<8x8x8xf32>
    %771 = arith.addf %768, %770 : vector<8x8x8xf32>
    %cst_154 = arith.constant dense<0xFF800000> : vector<8x8xf32>
    %772 = vector.multi_reduction <maximumf>, %771, %cst_154 [1] : vector<8x8x8xf32> to vector<8x8xf32>
    %773 = vector.shape_cast %772 : vector<8x8xf32> to vector<8x1x8xf32>
    %774 = vector.shape_cast %773 : vector<8x1x8xf32> to vector<8x8xf32>
    %775 = vector.broadcast %773 : vector<8x1x8xf32> to vector<8x8x8xf32>
    %776 = arith.subf %771, %775 : vector<8x8x8xf32>
    %777 = math.exp %776 : vector<8x8x8xf32>
    %cst_155 = arith.constant dense<0.000000e+00> : vector<8x8xf32>
    %778 = vector.multi_reduction <add>, %777, %cst_155 [1] : vector<8x8x8xf32> to vector<8x8xf32>
    %779 = math.log %778 : vector<8x8xf32>
    %780 = arith.addf %774, %779 : vector<8x8xf32>
    %781 = vector.shape_cast %763 : vector<8x1xi1> to vector<8x1xi1>
    %782 = vector.broadcast %781 : vector<8x1xi1> to vector<8x8xi1>
    %783 = arith.select %782, %780, %759 : vector<8x8xi1>, vector<8x8xf32>
    %784 = vector.extract_strided_slice %749 {offsets = [2, 0, 0], sizes = [1, 8, 8], strides = [1, 1, 1]} : vector<8x8x8xf32> to vector<1x8x8xf32>
    %785 = vector.shape_cast %784 : vector<1x8x8xf32> to vector<8x8xf32>
    %c2_i32_156 = arith.constant 2 : i32
    %786 = vector.broadcast %c2_i32_156 : i32 to vector<8x1xi32>
    %787 = arith.cmpi sgt, %0, %786 : vector<8x1xi32>
    %788 = vector.shape_cast %783 : vector<8x8xf32> to vector<8x8x1xf32>
    %789 = vector.shape_cast %757 : vector<8x8xf32> to vector<1x8x8xf32>
    %790 = vector.broadcast %788 : vector<8x8x1xf32> to vector<8x8x8xf32>
    %791 = vector.broadcast %789 : vector<1x8x8xf32> to vector<8x8x8xf32>
    %792 = arith.addf %790, %791 : vector<8x8x8xf32>
    %793 = vector.shape_cast %785 : vector<8x8xf32> to vector<8x1x8xf32>
    %794 = vector.broadcast %793 : vector<8x1x8xf32> to vector<8x8x8xf32>
    %795 = arith.addf %792, %794 : vector<8x8x8xf32>
    %cst_157 = arith.constant dense<0xFF800000> : vector<8x8xf32>
    %796 = vector.multi_reduction <maximumf>, %795, %cst_157 [1] : vector<8x8x8xf32> to vector<8x8xf32>
    %797 = vector.shape_cast %796 : vector<8x8xf32> to vector<8x1x8xf32>
    %798 = vector.shape_cast %797 : vector<8x1x8xf32> to vector<8x8xf32>
    %799 = vector.broadcast %797 : vector<8x1x8xf32> to vector<8x8x8xf32>
    %800 = arith.subf %795, %799 : vector<8x8x8xf32>
    %801 = math.exp %800 : vector<8x8x8xf32>
    %cst_158 = arith.constant dense<0.000000e+00> : vector<8x8xf32>
    %802 = vector.multi_reduction <add>, %801, %cst_158 [1] : vector<8x8x8xf32> to vector<8x8xf32>
    %803 = math.log %802 : vector<8x8xf32>
    %804 = arith.addf %798, %803 : vector<8x8xf32>
    %805 = vector.shape_cast %787 : vector<8x1xi1> to vector<8x1xi1>
    %806 = vector.broadcast %805 : vector<8x1xi1> to vector<8x8xi1>
    %807 = arith.select %806, %804, %783 : vector<8x8xi1>, vector<8x8xf32>
    %808 = vector.extract_strided_slice %749 {offsets = [3, 0, 0], sizes = [1, 8, 8], strides = [1, 1, 1]} : vector<8x8x8xf32> to vector<1x8x8xf32>
    %809 = vector.shape_cast %808 : vector<1x8x8xf32> to vector<8x8xf32>
    %c3_i32_159 = arith.constant 3 : i32
    %810 = vector.broadcast %c3_i32_159 : i32 to vector<8x1xi32>
    %811 = arith.cmpi sgt, %0, %810 : vector<8x1xi32>
    %812 = vector.shape_cast %807 : vector<8x8xf32> to vector<8x8x1xf32>
    %813 = vector.shape_cast %757 : vector<8x8xf32> to vector<1x8x8xf32>
    %814 = vector.broadcast %812 : vector<8x8x1xf32> to vector<8x8x8xf32>
    %815 = vector.broadcast %813 : vector<1x8x8xf32> to vector<8x8x8xf32>
    %816 = arith.addf %814, %815 : vector<8x8x8xf32>
    %817 = vector.shape_cast %809 : vector<8x8xf32> to vector<8x1x8xf32>
    %818 = vector.broadcast %817 : vector<8x1x8xf32> to vector<8x8x8xf32>
    %819 = arith.addf %816, %818 : vector<8x8x8xf32>
    %cst_160 = arith.constant dense<0xFF800000> : vector<8x8xf32>
    %820 = vector.multi_reduction <maximumf>, %819, %cst_160 [1] : vector<8x8x8xf32> to vector<8x8xf32>
    %821 = vector.shape_cast %820 : vector<8x8xf32> to vector<8x1x8xf32>
    %822 = vector.shape_cast %821 : vector<8x1x8xf32> to vector<8x8xf32>
    %823 = vector.broadcast %821 : vector<8x1x8xf32> to vector<8x8x8xf32>
    %824 = arith.subf %819, %823 : vector<8x8x8xf32>
    %825 = math.exp %824 : vector<8x8x8xf32>
    %cst_161 = arith.constant dense<0.000000e+00> : vector<8x8xf32>
    %826 = vector.multi_reduction <add>, %825, %cst_161 [1] : vector<8x8x8xf32> to vector<8x8xf32>
    %827 = math.log %826 : vector<8x8xf32>
    %828 = arith.addf %822, %827 : vector<8x8xf32>
    %829 = vector.shape_cast %811 : vector<8x1xi1> to vector<8x1xi1>
    %830 = vector.broadcast %829 : vector<8x1xi1> to vector<8x8xi1>
    %831 = arith.select %830, %828, %807 : vector<8x8xi1>, vector<8x8xf32>
    %832 = vector.extract_strided_slice %749 {offsets = [4, 0, 0], sizes = [1, 8, 8], strides = [1, 1, 1]} : vector<8x8x8xf32> to vector<1x8x8xf32>
    %833 = vector.shape_cast %832 : vector<1x8x8xf32> to vector<8x8xf32>
    %c4_i32_162 = arith.constant 4 : i32
    %834 = vector.broadcast %c4_i32_162 : i32 to vector<8x1xi32>
    %835 = arith.cmpi sgt, %0, %834 : vector<8x1xi32>
    %836 = vector.shape_cast %831 : vector<8x8xf32> to vector<8x8x1xf32>
    %837 = vector.shape_cast %757 : vector<8x8xf32> to vector<1x8x8xf32>
    %838 = vector.broadcast %836 : vector<8x8x1xf32> to vector<8x8x8xf32>
    %839 = vector.broadcast %837 : vector<1x8x8xf32> to vector<8x8x8xf32>
    %840 = arith.addf %838, %839 : vector<8x8x8xf32>
    %841 = vector.shape_cast %833 : vector<8x8xf32> to vector<8x1x8xf32>
    %842 = vector.broadcast %841 : vector<8x1x8xf32> to vector<8x8x8xf32>
    %843 = arith.addf %840, %842 : vector<8x8x8xf32>
    %cst_163 = arith.constant dense<0xFF800000> : vector<8x8xf32>
    %844 = vector.multi_reduction <maximumf>, %843, %cst_163 [1] : vector<8x8x8xf32> to vector<8x8xf32>
    %845 = vector.shape_cast %844 : vector<8x8xf32> to vector<8x1x8xf32>
    %846 = vector.shape_cast %845 : vector<8x1x8xf32> to vector<8x8xf32>
    %847 = vector.broadcast %845 : vector<8x1x8xf32> to vector<8x8x8xf32>
    %848 = arith.subf %843, %847 : vector<8x8x8xf32>
    %849 = math.exp %848 : vector<8x8x8xf32>
    %cst_164 = arith.constant dense<0.000000e+00> : vector<8x8xf32>
    %850 = vector.multi_reduction <add>, %849, %cst_164 [1] : vector<8x8x8xf32> to vector<8x8xf32>
    %851 = math.log %850 : vector<8x8xf32>
    %852 = arith.addf %846, %851 : vector<8x8xf32>
    %853 = vector.shape_cast %835 : vector<8x1xi1> to vector<8x1xi1>
    %854 = vector.broadcast %853 : vector<8x1xi1> to vector<8x8xi1>
    %855 = arith.select %854, %852, %831 : vector<8x8xi1>, vector<8x8xf32>
    %856 = vector.extract_strided_slice %749 {offsets = [5, 0, 0], sizes = [1, 8, 8], strides = [1, 1, 1]} : vector<8x8x8xf32> to vector<1x8x8xf32>
    %857 = vector.shape_cast %856 : vector<1x8x8xf32> to vector<8x8xf32>
    %c5_i32_165 = arith.constant 5 : i32
    %858 = vector.broadcast %c5_i32_165 : i32 to vector<8x1xi32>
    %859 = arith.cmpi sgt, %0, %858 : vector<8x1xi32>
    %860 = vector.shape_cast %855 : vector<8x8xf32> to vector<8x8x1xf32>
    %861 = vector.shape_cast %757 : vector<8x8xf32> to vector<1x8x8xf32>
    %862 = vector.broadcast %860 : vector<8x8x1xf32> to vector<8x8x8xf32>
    %863 = vector.broadcast %861 : vector<1x8x8xf32> to vector<8x8x8xf32>
    %864 = arith.addf %862, %863 : vector<8x8x8xf32>
    %865 = vector.shape_cast %857 : vector<8x8xf32> to vector<8x1x8xf32>
    %866 = vector.broadcast %865 : vector<8x1x8xf32> to vector<8x8x8xf32>
    %867 = arith.addf %864, %866 : vector<8x8x8xf32>
    %cst_166 = arith.constant dense<0xFF800000> : vector<8x8xf32>
    %868 = vector.multi_reduction <maximumf>, %867, %cst_166 [1] : vector<8x8x8xf32> to vector<8x8xf32>
    %869 = vector.shape_cast %868 : vector<8x8xf32> to vector<8x1x8xf32>
    %870 = vector.shape_cast %869 : vector<8x1x8xf32> to vector<8x8xf32>
    %871 = vector.broadcast %869 : vector<8x1x8xf32> to vector<8x8x8xf32>
    %872 = arith.subf %867, %871 : vector<8x8x8xf32>
    %873 = math.exp %872 : vector<8x8x8xf32>
    %cst_167 = arith.constant dense<0.000000e+00> : vector<8x8xf32>
    %874 = vector.multi_reduction <add>, %873, %cst_167 [1] : vector<8x8x8xf32> to vector<8x8xf32>
    %875 = math.log %874 : vector<8x8xf32>
    %876 = arith.addf %870, %875 : vector<8x8xf32>
    %877 = vector.shape_cast %859 : vector<8x1xi1> to vector<8x1xi1>
    %878 = vector.broadcast %877 : vector<8x1xi1> to vector<8x8xi1>
    %879 = arith.select %878, %876, %855 : vector<8x8xi1>, vector<8x8xf32>
    %880 = vector.extract_strided_slice %749 {offsets = [6, 0, 0], sizes = [1, 8, 8], strides = [1, 1, 1]} : vector<8x8x8xf32> to vector<1x8x8xf32>
    %881 = vector.shape_cast %880 : vector<1x8x8xf32> to vector<8x8xf32>
    %c6_i32_168 = arith.constant 6 : i32
    %882 = vector.broadcast %c6_i32_168 : i32 to vector<8x1xi32>
    %883 = arith.cmpi sgt, %0, %882 : vector<8x1xi32>
    %884 = vector.shape_cast %879 : vector<8x8xf32> to vector<8x8x1xf32>
    %885 = vector.shape_cast %757 : vector<8x8xf32> to vector<1x8x8xf32>
    %886 = vector.broadcast %884 : vector<8x8x1xf32> to vector<8x8x8xf32>
    %887 = vector.broadcast %885 : vector<1x8x8xf32> to vector<8x8x8xf32>
    %888 = arith.addf %886, %887 : vector<8x8x8xf32>
    %889 = vector.shape_cast %881 : vector<8x8xf32> to vector<8x1x8xf32>
    %890 = vector.broadcast %889 : vector<8x1x8xf32> to vector<8x8x8xf32>
    %891 = arith.addf %888, %890 : vector<8x8x8xf32>
    %cst_169 = arith.constant dense<0xFF800000> : vector<8x8xf32>
    %892 = vector.multi_reduction <maximumf>, %891, %cst_169 [1] : vector<8x8x8xf32> to vector<8x8xf32>
    %893 = vector.shape_cast %892 : vector<8x8xf32> to vector<8x1x8xf32>
    %894 = vector.shape_cast %893 : vector<8x1x8xf32> to vector<8x8xf32>
    %895 = vector.broadcast %893 : vector<8x1x8xf32> to vector<8x8x8xf32>
    %896 = arith.subf %891, %895 : vector<8x8x8xf32>
    %897 = math.exp %896 : vector<8x8x8xf32>
    %cst_170 = arith.constant dense<0.000000e+00> : vector<8x8xf32>
    %898 = vector.multi_reduction <add>, %897, %cst_170 [1] : vector<8x8x8xf32> to vector<8x8xf32>
    %899 = math.log %898 : vector<8x8xf32>
    %900 = arith.addf %894, %899 : vector<8x8xf32>
    %901 = vector.shape_cast %883 : vector<8x1xi1> to vector<8x1xi1>
    %902 = vector.broadcast %901 : vector<8x1xi1> to vector<8x8xi1>
    %903 = arith.select %902, %900, %879 : vector<8x8xi1>, vector<8x8xf32>
    %904 = vector.extract_strided_slice %749 {offsets = [7, 0, 0], sizes = [1, 8, 8], strides = [1, 1, 1]} : vector<8x8x8xf32> to vector<1x8x8xf32>
    %905 = vector.shape_cast %904 : vector<1x8x8xf32> to vector<8x8xf32>
    %c7_i32_171 = arith.constant 7 : i32
    %906 = vector.broadcast %c7_i32_171 : i32 to vector<8x1xi32>
    %907 = arith.cmpi sgt, %0, %906 : vector<8x1xi32>
    %908 = vector.shape_cast %903 : vector<8x8xf32> to vector<8x8x1xf32>
    %909 = vector.shape_cast %757 : vector<8x8xf32> to vector<1x8x8xf32>
    %910 = vector.broadcast %908 : vector<8x8x1xf32> to vector<8x8x8xf32>
    %911 = vector.broadcast %909 : vector<1x8x8xf32> to vector<8x8x8xf32>
    %912 = arith.addf %910, %911 : vector<8x8x8xf32>
    %913 = vector.shape_cast %905 : vector<8x8xf32> to vector<8x1x8xf32>
    %914 = vector.broadcast %913 : vector<8x1x8xf32> to vector<8x8x8xf32>
    %915 = arith.addf %912, %914 : vector<8x8x8xf32>
    %cst_172 = arith.constant dense<0xFF800000> : vector<8x8xf32>
    %916 = vector.multi_reduction <maximumf>, %915, %cst_172 [1] : vector<8x8x8xf32> to vector<8x8xf32>
    %917 = vector.shape_cast %916 : vector<8x8xf32> to vector<8x1x8xf32>
    %918 = vector.shape_cast %917 : vector<8x1x8xf32> to vector<8x8xf32>
    %919 = vector.broadcast %917 : vector<8x1x8xf32> to vector<8x8x8xf32>
    %920 = arith.subf %915, %919 : vector<8x8x8xf32>
    %921 = math.exp %920 : vector<8x8x8xf32>
    %cst_173 = arith.constant dense<0.000000e+00> : vector<8x8xf32>
    %922 = vector.multi_reduction <add>, %921, %cst_173 [1] : vector<8x8x8xf32> to vector<8x8xf32>
    %923 = math.log %922 : vector<8x8xf32>
    %924 = arith.addf %918, %923 : vector<8x8xf32>
    %925 = vector.shape_cast %907 : vector<8x1xi1> to vector<8x1xi1>
    %926 = vector.broadcast %925 : vector<8x1xi1> to vector<8x8xi1>
    %927 = arith.select %926, %924, %903 : vector<8x8xi1>, vector<8x8xf32>
    %cst_174 = arith.constant dense<0xFF800000> : vector<8xf32>
    %928 = vector.multi_reduction <maximumf>, %927, %cst_174 [1] : vector<8x8xf32> to vector<8xf32>
    %929 = vector.shape_cast %928 : vector<8xf32> to vector<8x1xf32>
    %930 = vector.broadcast %929 : vector<8x1xf32> to vector<8x8xf32>
    %931 = arith.subf %927, %930 : vector<8x8xf32>
    %932 = math.exp %931 : vector<8x8xf32>
    %cst_175 = arith.constant dense<0.000000e+00> : vector<8xf32>
    %933 = vector.multi_reduction <add>, %932, %cst_175 [1] : vector<8x8xf32> to vector<8xf32>
    %934 = vector.shape_cast %933 : vector<8xf32> to vector<8x1xf32>
    %935 = math.log %934 : vector<8x1xf32>
    %936 = arith.addf %929, %935 : vector<8x1xf32>
    %937 = arith.subf %936, %756 : vector<8x1xf32>
    %c0_176 = arith.constant 0 : index
    %c0_177 = arith.constant 0 : index
    %938 = vector.load %arg11[%c0_176, %c0_177] : memref<8x1xf32, #tpu.memory_space<vmem>>, vector<8x1xf32>
    tpu.vector_store %arg11[%c0_176, %c0_177], %937 {strides = array<i32>} : memref<8x1xf32, #tpu.memory_space<vmem>>, vector<8x1xf32>,
    return
  }
  func.func @transform_0(%arg0: i32) -> (i32, i32, i32) {
    %c0_i32 = arith.constant 0 : i32
    %c0_i32_0 = arith.constant 0 : i32
    %c0_i32_1 = arith.constant 0 : i32
    return %c0_i32, %arg0, %c0_i32_0 : i32, i32, i32
  }
  func.func @transform_1(%arg0: i32) -> (i32, i32) {
    %c0_i32 = arith.constant 0 : i32
    %c0_i32_0 = arith.constant 0 : i32
    %c0_i32_1 = arith.constant 0 : i32
    return %c0_i32, %c0_i32_0 : i32, i32
  }
  func.func @transform_2(%arg0: i32) -> (i32, i32) {
    %c0_i32 = arith.constant 0 : i32
    %c0_i32_0 = arith.constant 0 : i32
    %c0_i32_1 = arith.constant 0 : i32
    return %c0_i32, %c0_i32_0 : i32, i32
  }
  func.func @transform_3(%arg0: i32) -> (i32, i32) {
    %c0_i32 = arith.constant 0 : i32
    %c0_i32_0 = arith.constant 0 : i32
    %c0_i32_1 = arith.constant 0 : i32
    return %c0_i32, %c0_i32_0 : i32, i32
  }
  func.func @transform_4(%arg0: i32) -> (i32, i32) {
    %c0_i32 = arith.constant 0 : i32
    %c0_i32_0 = arith.constant 0 : i32
    %c0_i32_1 = arith.constant 0 : i32
    return %c0_i32, %c0_i32_0 : i32, i32
  }
  func.func @transform_5(%arg0: i32) -> (i32, i32) {
    %c0_i32 = arith.constant 0 : i32
    %c0_i32_0 = arith.constant 0 : i32
    %c0_i32_1 = arith.constant 0 : i32
    return %c0_i32, %c0_i32_0 : i32, i32
  }
  func.func @transform_6(%arg0: i32) -> (i32, i32) {
    %c0_i32 = arith.constant 0 : i32
    %c0_i32_0 = arith.constant 0 : i32
    %c0_i32_1 = arith.constant 0 : i32
    return %c0_i32, %c0_i32_0 : i32, i32
  }
  func.func @transform_7(%arg0: i32) -> (i32, i32, i32) {
    %c0_i32 = arith.constant 0 : i32
    %c0_i32_0 = arith.constant 0 : i32
    %c0_i32_1 = arith.constant 0 : i32
    return %c0_i32, %arg0, %c0_i32_0 : i32, i32, i32
  }
  func.func @transform_8(%arg0: i32) -> (i32, i32) {
    %c0_i32 = arith.constant 0 : i32
    %c0_i32_0 = arith.constant 0 : i32
    return %arg0, %c0_i32 : i32, i32
  }
  func.func @transform_9(%arg0: i32) -> (i32, i32) {
    %c0_i32 = arith.constant 0 : i32
    %c0_i32_0 = arith.constant 0 : i32
    return %arg0, %c0_i32 : i32, i32
  }
  func.func @transform_10(%arg0: i32) -> (i32, i32) {
    %c0_i32 = arith.constant 0 : i32
    %c0_i32_0 = arith.constant 0 : i32
    return %arg0, %c0_i32 : i32, i32
  }
}

</mosaic_0001>

<bundles_post_ra>
// kernel: _lambda_.1
= control target key start
LH: loop header
LB: loop body
LE: loop exit
PB: predicated region body
PF: predicated region fallthrough
CT: control target
= control target key end

     0   :  { %v4375_v1 = vmov 0   ;;  %vm85_vm0 = vcmask 261120   ;;  %v4376_v19 = vmov 0.0|0.0   ;;  %v55_v26 = vlaneseq  ;;  %s6100_s1 = inlined_call_operand.vmem [shape: bf16[32,256], index: 1, kind: input, shape index: {}]   ;;  %s6101_s3 = inlined_call_operand.vmem [shape: bf16[64,256], index: 3, kind: input, shape index: {}]   ;;  %s6102_s0 = inlined_call_operand.vmem [shape: f32[8,8,32], index: 0, kind: input, shape index: {}]   ;;  %s6103_s2 = inlined_call_operand.vmem [shape: f32[1,256], index: 2, kind: input, shape index: {}]   ;;  %s6104_s9 = inlined_call_operand.vmem [shape: s32[8,1], index: 9, kind: input, shape index: {}]   ;;  %s6105_s4 = inlined_call_operand.vmem [shape: bf16[64,8], index: 4, kind: input, shape index: {}]   ;;  %s6106_s5 = inlined_call_operand.vmem [shape: f32[1,8], index: 5, kind: input, shape index: {}]   ;;  %s6107_s6 = inlined_call_operand.vmem [shape: f32[8,8], index: 6, kind: input, shape index: {}]   ;;  %s6108_s7 = inlined_call_operand.vmem [shape: f32[8,8,8], index: 7, kind: input, shape index: {}]   ;;  %s6109_s8 = inlined_call_operand.vmem [shape: f32[8,1], index: 8, kind: input, shape index: {}]   ;;  %s6110_s10 = inlined_call_operand.vmem [shape: f32[8,1], index: 10, kind: output, shape index: {}]  }
   0x1   :  { %v3992_v0 = vld [vmem:[%s6100_s1 + $0x14] ss:$8 sps:$4 sm:$0xff]   ;;  %130 = vmatprep.mubr.bf16.mxu0 %v4375_v1  ;;  %258 = vmatprep.mubr.bf16.mxu1 %v4375_v1  ;;  %v3996_v3 = vld [vmem:[%s6100_s1 + $0x10] ss:$8 sps:$4 sm:$0xff]   ;;  %v3998_v5 = vld [vmem:[%s6100_s1 + $0x4] ss:$8 sps:$4 sm:$0xff]  }
   0x2   :  { %v4443_v2 = vld [vmem:[%s6101_s3 + $0x34] ss:$8 sps:$4 sm:$0xff]   ;;  %3990 = vset.pattern.permute.xlu0 %v4375_v1  ;;  %3991 = vset.pattern.permute.xlu1 %v4375_v1  ;;  %v4453_v4 = vld [vmem:[%s6101_s3 + $0x30] ss:$8 sps:$4 sm:$0xff]   ;;  %v4463_v6 = vld [vmem:[%s6101_s3 + $0x24] ss:$8 sps:$4 sm:$0xff]  }
   0x3   :  { %110 = vmatprep.subr.bf16.mxu0 %v3992_v0  ;;  %234 = vmatprep.subr.bf16.mxu1 %v4443_v2  ;;  %v4002_v7 = vld [vmem:[%s6100_s1] ss:$8 sps:$4 sm:$0xff]   ;;  %v4483_v11 = vld [vmem:[%s6101_s3 + $0x14] ss:$8 sps:$4 sm:$0xff]   ;;  %v4489_v13 = vld [vmem:[%s6101_s3 + $0x10] ss:$8 sps:$4 sm:$0xff]  }
   0x4   :  { %111 = vmatpush1.bf16.msra.mxu0 %v3996_v3  ;;  %235 = vmatpush1.bf16.msra.mxu1 %v4453_v4  ;;  %v4471_v8 = vld [vmem:[%s6101_s3 + $0x20] ss:$8 sps:$4 sm:$0xff]   ;;  %v4495_v14 = vld [vmem:[%s6101_s3 + $0x4] ss:$8 sps:$4 sm:$0xff]   ;;  %v39_v16 = vld [vmem:[%s6102_s0 + $0x10] sm:$0xff]  ;;  %v4550_v27 = vshrl.u32 %v55_v26, 7 }
   0x5   :  { %112 = vmatprep.subr.bf16.mxu0 %v3998_v5  ;;  %v37_v9 = vld [vmem:[%s6102_s0] sm:$0xff]  ;;  %v38_v10 = vld [vmem:[%s6102_s0 + $0x8] sm:$0xff]  ;;  %236 = vmatprep.subr.bf16.mxu1 %v4463_v6  ;;  %v40_v17 = vld [vmem:[%s6102_s0 + $0x18] sm:$0xff]  ;;  %vm222_vm5 = vcmask 523264  }
   0x6   :  { %v45_v12 = vpack.c.bf16 %v38_v10, %v37_v9  ;;  %v4503_v15 = vld [vmem:[%s6101_s3] ss:$8 sps:$4 sm:$0xff]   ;;  %v46_v18 = vpack.c.bf16 %v40_v17, %v39_v16  ;;  %v43_v23 = vld [vmem:[%s6102_s0 + $0x30] sm:$0xff]  ;;  %v44_v24 = vld [vmem:[%s6102_s0 + $0x38] sm:$0xff]  ;;  %v4553_v28 = vsub.s32 1, %v4550_v27  ;;  %v4559_v30 = vsub.s32 0, %v4550_v27 }
   0x7   :  { %v41_v20 = vld [vmem:[%s6102_s0 + $0x20] sm:$0xff]  ;;  %v42_v21 = vld [vmem:[%s6102_s0 + $0x28] sm:$0xff]  ;;  %v48_v25 = vpack.c.bf16 %v44_v24, %v43_v23 }
   0x8   :  { %113 = vmatpush1.bf16.msra.mxu0 %v4002_v7  ;;  %237 = vmatpush1.bf16.msra.mxu1 %v4471_v8  ;;  %v47_v22 = vpack.c.bf16 %v42_v21, %v41_v20  ;;  %v53_v29 = vld [vmem:[%s6103_s2] sm:$0x3]  ;;  %s4377_s2 = smov 64  }
   0x9   :  { %238 = vmatprep.subr.bf16.mxu1 %v4483_v11  ;;  %494 = vmatprep.subr.bf16.mxu0 %v4443_v2  ;;  %v62_v31 = vrot.slane %v53_v29, %v4553_v28  ;;  %v58_v34 = vrot.slane %v53_v29, %v4559_v30  ;;  %v4595_v17 = vld [vmem:[%s6104_s9] sm:$0xff]  ;;  %s4378_s9 = smov 32  }
   0xa   :  { %vm179_vm1 = vcmp.gt.s32.totalorder %v4595_v17, 0  ;;  %vm180_vm2 = vcmp.gt.s32.totalorder %v4595_v17, 7  ;;  %vm342_vm6 = vcmp.gt.s32.totalorder %v4595_v17, 1  ;;  %vm343_vm7 = vcmp.gt.s32.totalorder %v4595_v17, 6 }
   0xb   :  { %3901 = vmatmul.mubr.msk.bf16.vlgmr.msra.gmra.mxu0 %vm85_vm0, %v45_v12  ;;  %vm471_vm10 = vcmp.gt.s32.totalorder %v4595_v17, 2  ;;  %vm472_vm11 = vcmp.gt.s32.totalorder %v4595_v17, 5  ;;  %vm605_vm14 = vcmp.gt.s32.totalorder %v4595_v17, 3  ;;  %vm606_vm15 = vcmp.gt.s32.totalorder %v4595_v17, 4 }
   0xc   :  { %239 = vmatpush1.bf16.msra.mxu1 %v4489_v13  ;;  %140 = vmatprep.mubr.bf16.mxu0 %v4375_v1 }
   0xd   :  { %240 = vmatprep.subr.bf16.mxu1 %v4495_v14  ;;  %495 = vmatpush1.bf16.msra.mxu0 %v4453_v4 }
   0xe   :  { %496 = vmatprep.subr.bf16.mxu0 %v4463_v6 }
  0x10   :  { %241 = vmatpush1.bf16.msra.mxu1 %v4503_v15 }
  0x11   :  { %360 = vmatprep.subr.bf16.mxu1 %v4443_v2  ;;  %497 = vmatpush1.bf16.msra.mxu0 %v4471_v8 }
  0x12   :  { %498 = vmatprep.subr.bf16.mxu0 %v4483_v11 }
  0x13   :  { %3902 = vmatmul.mubr.msk.bf16.gmra.mxu0 %vm85_vm0, %v46_v18  ;;  %259 = vmatmul.mubr.bf16.vlgmr.msra.gmra.mxu1 %v4376_v19  ;;  %v317_v19 = vsel %vm179_vm1, 1, %v4375_v1 }
  0x14   :  { %150 = vmatprep.mubr.bf16.mxu0 %v4375_v1  ;;  %361 = vmatpush1.bf16.msra.mxu1 %v4453_v4 }
  0x15   :  { %362 = vmatprep.subr.bf16.mxu1 %v4463_v6  ;;  %384 = vmatprep.mubr.bf16.mxu1 %v4375_v1 }
  0x16   :  { %499 = vmatpush1.bf16.msra.mxu0 %v4489_v13 }
  0x17   :  { %500 = vmatprep.subr.bf16.mxu0 %v4495_v14 }
  0x18   :  { %363 = vmatpush1.bf16.msra.mxu1 %v4471_v8 }
  0x19   :  { %364 = vmatprep.subr.bf16.mxu1 %v4483_v11 }
  0x1a   :  { %501 = vmatpush1.bf16.msra.mxu0 %v4503_v15 }
  0x1b   :  { %3903 = vmatmul.mubr.msk.bf16.gmra.mxu0 %vm85_vm0, %v47_v22  ;;  %760 = vmatprep.subr.bf16.mxu0 %v4443_v2 }
  0x1c   :  { %160 = vmatprep.mubr.bf16.mxu0 %v4375_v1  ;;  %365 = vmatpush1.bf16.msra.mxu1 %v4489_v13 }
  0x1d   :  { %366 = vmatprep.subr.bf16.mxu1 %v4495_v14 }
  0x20   :  { %367 = vmatpush1.bf16.msra.mxu1 %v4503_v15 }
  0x21   :  { %628 = vmatprep.subr.bf16.mxu1 %v4443_v2 }
  0x23   :  { %3904 = vmatmul.mubr.msk.bf16.gmra.mxu0 %vm85_vm0, %v48_v25 }
  0x24   :  { %518 = vmatprep.mubr.bf16.mxu0 %v4375_v1 }
  0xcb   :  { %v132_v32 = vpop.f32.mrf.mxu0 }
  0xcc   :  { %v133_v39 = vadd.f32 %v132_v32, %v58_v34 }
  0xcd   :  { %v134_v33 = vpop.f32.mrf.mxu0 }
  0xce   :  { %v4563_v35 = vadd.f32 %v134_v33, %v62_v31 }
  0xcf   :  { %v136_v36 = vpop.f32.mrf.mxu0 }
  0xd0   :  { %v4565_v37 = vadd.f32 %v136_v36, %v58_v34  ;;  %v324_v36 = vsel %vm180_vm2, 1, %v4375_v1 }
  0xd1   :  { %v138_v38 = vpop.f32.mrf.mxu0 }
  0xd2   :  { %v4567_v40 = vadd.f32 %v138_v38, %v62_v31 }
  0xd3   :  { %v142_v41 = vpop.f32.mrf.mxu0  ;;  %v260_v42 = vpop.f32.mrf.mxu1 }
  0xd4   :  { %v4569_v43 = vadd.f32 %v142_v41, %v58_v34  ;;  %v267_v44 = vadd.f32 %v260_v42, %v133_v39 }
  0xd5   :  { %v144_v45 = vpop.f32.mrf.mxu0  ;;  %v262_v46 = vpop.f32.mrf.mxu1 }
  0xd6   :  { %4014 = vtanh.f32 %v267_v44  ;;  %v4571_v47 = vadd.f32 %v144_v45, %v62_v31  ;;  %v3913_v20 = vmul.f32 -1.442695, %v267_v44 }
  0xd7   :  { %v146_v48 = vpop.f32.mrf.mxu0  ;;  %v264_v49 = vpop.f32.mrf.mxu1 }
  0xd8   :  { %v4573_v50 = vadd.f32 %v146_v48, %v58_v34 }
  0xd9   :  { %v148_v51 = vpop.f32.mrf.mxu0  ;;  %v265_v52 = vpop.f32.mrf.mxu1 }
  0xda   :  { %v4575_v53 = vadd.f32 %v148_v51, %v62_v31 }
  0xdb   :  { %v152_v54 = vpop.f32.mrf.mxu0 }
  0xdc   :  { %v4577_v55 = vadd.f32 %v152_v54, %v58_v34 }
  0xdd   :  { %v154_v56 = vpop.f32.mrf.mxu0 }
  0xde   :  { %v4579_v57 = vadd.f32 %v154_v56, %v62_v31 }
  0xdf   :  { %v156_v58 = vpop.f32.mrf.mxu0 }
  0xe0   :  { %v4581_v59 = vadd.f32 %v156_v58, %v58_v34 }
  0xe1   :  { %v158_v60 = vpop.f32.mrf.mxu0 }
  0xe2   :  { %v4583_v61 = vadd.f32 %v158_v60, %v62_v31 }
  0xe3   :  { %v4015_v62 = vpop.eup %4014  ;;  %v162_v63 = vpop.f32.mrf.mxu0 }
  0xe4   :  { %v4585_v0 = vadd.f32 %v162_v63, %v58_v34  ;;  %278 = vrot.lane.b32.xlu0 %v4015_v62, %s4377_s2 }
  0xe5   :  { %v164_v3 = vpop.f32.mrf.mxu0 }
  0xe6   :  { %v4588_v5 = vadd.f32 %v164_v3, %v62_v31 }
  0xe7   :  { %v166_v7 = vpop.f32.mrf.mxu0 }
  0xe8   :  { %v4590_v9 = vadd.f32 %v166_v7, %v58_v34 }
  0xe9   :  { %v168_v10 = vpop.f32.mrf.mxu0 }
  0xea   :  { %v169_v12 = vadd.f32 %v168_v10, %v62_v31 }
  0xec   :  { %v268_v16 = vadd.f32 %v262_v46, %v169_v12 }
  0xee   :  { %4016 = vtanh.f32 %v268_v16  ;;  %v3914_v23 = vmul.f32 -1.442695, %v268_v16 }
  0xef   :  { %4018 = vpow2.f32 %v3913_v20 }
  0xfb   :  { %v4017_v18 = vpop.eup %4016 }
  0xfc   :  { %302 = vrot.lane.b32.xlu0 %v4017_v18, %s4377_s2  ;;  %v4019_v21 = vpop.eup %4018 }
  0xfd   :  { %v272_v22 = vadd.f32 1.0, %v4019_v21 }
  0xff   :  { %4020 = vrcp.f32 %v272_v22 }
 0x100   :  { %319 = vperm.xlu0 %3990, %v317_v19   ;;  %4022 = vpow2.f32 %v3914_v23 }
 0x10c   :  { %v4021_v24 = vpop.eup %4020 }
 0x10d   :  { %v4023_v29 = vpop.eup %4022  ;;  %v276_v38 = vmul.f32 0.0, %v4021_v24 }
 0x10e   :  { %v296_v31 = vadd.f32 1.0, %v4023_v29 }
 0x110   :  { %4024 = vrcp.f32 %v296_v31 }
 0x11d   :  { %v4025_v32 = vpop.eup %4024 }
 0x11e   :  { %v300_v44 = vmul.f32 0.0, %v4025_v32 }
 0x156   :  { %v279_v25 = vpop.permute.xlu0 %278 }
 0x157   :  { %v281_v26 = vmul.f32 %v4021_v24, %v279_v25 }
 0x159   :  { %283 = vrot.lane.b32.xlu1 %v281_v26, %s4378_s9 }
 0x16e   :  { %v303_v33 = vpop.permute.xlu0 %302 }
 0x16f   :  { %v305_v34 = vmul.f32 %v4025_v32, %v303_v33 }
 0x171   :  { %307 = vrot.lane.b32.xlu1 %v305_v34, %s4378_s9 }
 0x175   :  { %326 = vperm.xlu1 %3991, %v324_v36  }
 0x17b   :  { %v4614_v51 = vpop.permute.xlu0 %319 }
 0x17c   :  { %vm321_vm3 = vcmp.eq.s32.totalorder %v4614_v51, 1 }
 0x1cb   :  { %v284_v39 = vpop.permute.xlu1 %283 }
 0x1cc   :  { %v4604_v41 = vadd.f32 %v284_v39, %v276_v38  ;;  %v443_v39 = vsel %vm342_vm6, 1, %v4375_v1  ;;  %vm1830_vm6 = vcmask 1042434  }
 0x1ce   :  { %4026 = vtanh.f32 %v4604_v41 }
 0x1db   :  { %v4027_v42 = vpop.eup %4026 }
 0x1dc   :  { %289 = vrot.lane.b32.xlu1 %v4027_v42, %s4377_s2  ;;  %v450_v42 = vsel %vm343_vm7, 1, %v4375_v1  ;;  %vm1832_vm7 = vcmask 1043459  }
 0x1e3   :  { %v308_v45 = vpop.permute.xlu1 %307 }
 0x1e4   :  { %v4608_v46 = vadd.f32 %v308_v45, %v300_v44  ;;  %v4655_v44 = vsel %vm321_vm3, %v4604_v41, 0.0 }
 0x1e6   :  { %4028 = vtanh.f32 %v4608_v46 }
 0x1f0   :  { %v4612_v49 = vpop.permute.xlu1 %326 }
 0x1f1   :  { %vm328_vm4 = vcmp.eq.s32.totalorder %v4612_v49, 1 }
 0x1f3   :  { %v4029_v48 = vpop.eup %4028 }
 0x1f4   :  { %313 = vrot.lane.b32.xlu0 %v4029_v48, %s4377_s2 }
 0x24e   :  { %v290_v52 = vpop.permute.xlu1 %289 }
 0x24f   :  { %v292_v54 = vmul.f32 %v4021_v24, %v290_v52 }
 0x251   :  { %v4619_v56 = vsel %vm321_vm3, %v292_v54, 0.0  ;;  %v4663_v54 = vsel %vm328_vm4, %v4608_v46, 0.0 }
 0x252   :  { %332 = vrot.lane.b32.xlu1 %v4619_v56, %s4378_s9 }
 0x266   :  { %v314_v58 = vpop.permute.xlu0 %313 }
 0x267   :  { %v316_v60 = vmul.f32 %v4025_v32, %v314_v58 }
 0x269   :  { %v4626_v62 = vsel %vm328_vm4, %v316_v60, 0.0 }
 0x26a   :  { %344 = vrot.lane.b32.xlu0 %v4626_v62, %s4377_s2 }
 0x2c4   :  { %v333_v63 = vpop.permute.xlu1 %332 }
 0x2c5   :  { %335 = vst.msk [vmem:[#allocation2] sm:$0xff] %vm85_vm0, %v333_v63 }
 0x2dc   :  { %v345_v3 = vpop.permute.xlu0 %344 }
 0x2dd   :  { %v347_v7 = vsel %vm85_vm0, %v333_v63, %v345_v3 }
 0x2de   :  { %v348_v10 = vpack.c.bf16 %v347_v7, %v347_v7 }
 0x2e0   :  { %3915 = vmatmul.mubr.msk.bf16.vlgmr.msra.gmra.mxu1 %vm222_vm5, %v348_v10 }
 0x2e1   :  { %629 = vmatpush1.bf16.msra.mxu1 %v4453_v4  ;;  %652 = vmatprep.mubr.bf16.mxu1 %v4375_v1 }
 0x2e2   :  { %630 = vmatprep.subr.bf16.mxu1 %v4463_v6 }
 0x2e5   :  { %631 = vmatpush1.bf16.msra.mxu1 %v4471_v8 }
 0x2e6   :  { %632 = vmatprep.subr.bf16.mxu1 %v4483_v11 }
 0x2e9   :  { %633 = vmatpush1.bf16.msra.mxu1 %v4489_v13 }
 0x2ea   :  { %634 = vmatprep.subr.bf16.mxu1 %v4495_v14 }
 0x2ed   :  { %635 = vmatpush1.bf16.msra.mxu1 %v4503_v15 }
 0x2ee   :  { %882 = vmatprep.subr.bf16.mxu1 %v4443_v2 }
 0x3a0   :  { %v386_v12 = vpop.f32.mrf.mxu1 }
 0x3a1   :  { %v393_v16 = vadd.f32 %v386_v12, %v4565_v37 }
 0x3a2   :  { %v388_v18 = vpop.f32.mrf.mxu1 }
 0x3a3   :  { %4030 = vtanh.f32 %v393_v16  ;;  %v394_v19 = vadd.f32 %v388_v18, %v4588_v5  ;;  %v3916_v24 = vmul.f32 -1.442695, %v393_v16 }
 0x3a4   :  { %v390_v20 = vpop.f32.mrf.mxu1 }
 0x3a5   :  { %4032 = vtanh.f32 %v394_v19  ;;  %v3917_v25 = vmul.f32 -1.442695, %v394_v19 }
 0x3a6   :  { %v391_v21 = vpop.f32.mrf.mxu1  ;;  %4034 = vpow2.f32 %v3916_v24 }
 0x3a7   :  { %4036 = vpow2.f32 %v3917_v25 }
 0x3b0   :  { %v4031_v22 = vpop.eup %4030 }
 0x3b1   :  { %404 = vrot.lane.b32.xlu1 %v4031_v22, %s4377_s2 }
 0x3b2   :  { %v4033_v23 = vpop.eup %4032 }
 0x3b3   :  { %428 = vrot.lane.b32.xlu0 %v4033_v23, %s4377_s2  ;;  %v4035_v26 = vpop.eup %4034 }
 0x3b4   :  { %v4037_v29 = vpop.eup %4036  ;;  %v398_v37 = vadd.f32 1.0, %v4035_v26 }
 0x3b5   :  { %v422_v31 = vadd.f32 1.0, %v4037_v29 }
 0x3b6   :  { %4038 = vrcp.f32 %v398_v37 }
 0x3b7   :  { %4040 = vrcp.f32 %v422_v31 }
 0x3c3   :  { %v4039_v5 = vpop.eup %4038 }
 0x3c4   :  { %v4041_v34 = vpop.eup %4040  ;;  %v402_v45 = vmul.f32 %v4039_v5, %v4655_v44 }
 0x3c5   :  { %v426_v58 = vmul.f32 %v4041_v34, %v4663_v54 }
 0x423   :  { %v405_v32 = vpop.permute.xlu1 %404 }
 0x424   :  { %v407_v33 = vmul.f32 %v4039_v5, %v405_v32 }
 0x425   :  { %v429_v36 = vpop.permute.xlu0 %428 }
 0x426   :  { %409 = vrot.lane.b32.xlu1 %v407_v33, %s4378_s9  ;;  %v431_v38 = vmul.f32 %v4041_v34, %v429_v36 }
 0x428   :  { %433 = vrot.lane.b32.xlu0 %v431_v38, %s4378_s9 }
 0x42a   :  { %445 = vperm.xlu1 %3991, %v443_v39  }
 0x42c   :  { %452 = vperm.xlu0 %3990, %v450_v42  }
 0x498   :  { %v410_v48 = vpop.permute.xlu1 %409 }
 0x499   :  { %v4658_v52 = vadd.f32 %v410_v48, %v402_v45 }
 0x49a   :  { %v434_v60 = vpop.permute.xlu0 %433 }
 0x49b   :  { %4042 = vtanh.f32 %v4658_v52  ;;  %v4667_v63 = vadd.f32 %v434_v60, %v426_v58 }
 0x49d   :  { %4044 = vtanh.f32 %v4667_v63 }
 0x4a5   :  { %v4672_v7 = vpop.permute.xlu1 %445 }
 0x4a6   :  { %vm447_vm8 = vcmp.eq.s32.totalorder %v4672_v7, 1 }
 0x4a7   :  { %v4674_v10 = vpop.permute.xlu0 %452 }
 0x4a8   :  { %v4043_v41 = vpop.eup %4042  ;;  %vm454_vm9 = vcmp.eq.s32.totalorder %v4674_v10, 1 }
 0x4a9   :  { %415 = vrot.lane.b32.xlu1 %v4043_v41, %s4377_s2  ;;  %v577_v41 = vsel %vm471_vm10, 1, %v4375_v1  ;;  %vm1834_vm10 = vcmask 1044484  }
 0x4aa   :  { %v4045_v3 = vpop.eup %4044 }
 0x4ab   :  { %439 = vrot.lane.b32.xlu0 %v4045_v3, %s4377_s2  ;;  %v584_v3 = vsel %vm472_vm11, 1, %v4375_v1  ;;  %vm1836_vm11 = vcmask 1045509  }
 0x51b   :  { %v416_v46 = vpop.permute.xlu1 %415 }
 0x51c   :  { %v4676_v12 = vmul.f32 %v4039_v5, %v416_v46  ;;  %v4723_v46 = vsel %vm447_vm8, %v4658_v52, %v4655_v44 }
 0x51d   :  { %v440_v16 = vpop.permute.xlu0 %439 }
 0x51e   :  { %v4683_v18 = vsel %vm447_vm8, %v4676_v12, %v4619_v56  ;;  %v4685_v19 = vmul.f32 %v4041_v34, %v440_v16 }
 0x51f   :  { %474 = vrot.lane.b32.xlu1 %v4683_v18, %s4378_s9 }
 0x520   :  { %v4694_v20 = vsel %vm454_vm9, %v4685_v19, %v4626_v62 }
 0x521   :  { %478 = vrot.lane.b32.xlu0 %v4694_v20, %s4377_s2 }
 0x591   :  { %v475_v21 = vpop.permute.xlu1 %474 }
 0x593   :  { %v479_v22 = vpop.permute.xlu0 %478 }
 0x594   :  { %v481_v56 = vsel %vm85_vm0, %v475_v21, %v479_v22 }
 0x595   :  { %v482_v23 = vpack.c.bf16 %v481_v56, %v481_v56  ;;  %v4732_v56 = vsel %vm454_vm9, %v4667_v63, %v4663_v54 }
 0x597   :  { %3918 = vmatmul.mubr.msk.bf16.vlgmr.msra.gmra.mxu0 %vm222_vm5, %v482_v23 }
 0x598   :  { %761 = vmatpush1.bf16.msra.mxu0 %v4453_v4  ;;  %784 = vmatprep.mubr.bf16.mxu0 %v4375_v1 }
 0x599   :  { %762 = vmatprep.subr.bf16.mxu0 %v4463_v6 }
 0x59c   :  { %763 = vmatpush1.bf16.msra.mxu0 %v4471_v8 }
 0x59d   :  { %764 = vmatprep.subr.bf16.mxu0 %v4483_v11 }
 0x5a0   :  { %765 = vmatpush1.bf16.msra.mxu0 %v4489_v13 }
 0x5a1   :  { %766 = vmatprep.subr.bf16.mxu0 %v4495_v14 }
 0x5a4   :  { %767 = vmatpush1.bf16.msra.mxu0 %v4503_v15 }
 0x5a5   :  { %1004 = vmatprep.subr.bf16.mxu0 %v4443_v2 }
 0x657   :  { %v520_v24 = vpop.f32.mrf.mxu0 }
 0x658   :  { %v527_v25 = vadd.f32 %v520_v24, %v4569_v43 }
 0x659   :  { %v522_v26 = vpop.f32.mrf.mxu0 }
 0x65a   :  { %4046 = vtanh.f32 %v527_v25  ;;  %v528_v29 = vadd.f32 %v522_v26, %v4583_v61  ;;  %v3919_v33 = vmul.f32 -1.442695, %v527_v25 }
 0x65b   :  { %v524_v37 = vpop.f32.mrf.mxu0 }
 0x65c   :  { %4048 = vtanh.f32 %v528_v29  ;;  %v3920_v34 = vmul.f32 -1.442695, %v528_v29 }
 0x65d   :  { %v525_v31 = vpop.f32.mrf.mxu0  ;;  %4050 = vpow2.f32 %v3919_v33 }
 0x65e   :  { %4052 = vpow2.f32 %v3920_v34 }
 0x667   :  { %v4047_v5 = vpop.eup %4046 }
 0x668   :  { %538 = vrot.lane.b32.xlu1 %v4047_v5, %s4377_s2 }
 0x669   :  { %v4049_v32 = vpop.eup %4048 }
 0x66a   :  { %562 = vrot.lane.b32.xlu0 %v4049_v32, %s4377_s2  ;;  %v4051_v36 = vpop.eup %4050 }
 0x66b   :  { %v4053_v38 = vpop.eup %4052  ;;  %v532_v43 = vadd.f32 1.0, %v4051_v36 }
 0x66c   :  { %v556_v39 = vadd.f32 1.0, %v4053_v38 }
 0x66d   :  { %4054 = vrcp.f32 %v532_v43 }
 0x66e   :  { %4056 = vrcp.f32 %v556_v39 }
 0x67a   :  { %v4055_v61 = vpop.eup %4054 }
 0x67b   :  { %v4057_v48 = vpop.eup %4056  ;;  %v536_v16 = vmul.f32 %v4055_v61, %v4723_v46 }
 0x67c   :  { %v560_v23 = vmul.f32 %v4057_v48, %v4732_v56 }
 0x6da   :  { %v539_v42 = vpop.permute.xlu1 %538 }
 0x6db   :  { %v541_v45 = vmul.f32 %v4055_v61, %v539_v42 }
 0x6dc   :  { %v563_v58 = vpop.permute.xlu0 %562 }
 0x6dd   :  { %543 = vrot.lane.b32.xlu1 %v541_v45, %s4378_s9  ;;  %v565_v60 = vmul.f32 %v4057_v48, %v563_v58 }
 0x6df   :  { %567 = vrot.lane.b32.xlu0 %v565_v60, %s4378_s9 }
 0x6e1   :  { %579 = vperm.xlu1 %3991, %v577_v41  }
 0x6e3   :  { %586 = vperm.xlu0 %3990, %v584_v3  }
 0x74f   :  { %v544_v21 = vpop.permute.xlu1 %543 }
 0x750   :  { %v4726_v22 = vadd.f32 %v544_v21, %v536_v16 }
 0x751   :  { %v568_v24 = vpop.permute.xlu0 %567 }
 0x752   :  { %4058 = vtanh.f32 %v4726_v22  ;;  %v4736_v25 = vadd.f32 %v568_v24, %v560_v23 }
 0x754   :  { %4060 = vtanh.f32 %v4736_v25 }
 0x75c   :  { %v4741_v26 = vpop.permute.xlu1 %579 }
 0x75d   :  { %6116 = vst [vmem:[#allocation4_spill] sm:$0xff] %v4741_v26  ;;  %vm581_vm12 = vcmp.eq.s32.totalorder %v4741_v26, 1 }
 0x75e   :  { %v4743_v29 = vpop.permute.xlu0 %586 }
 0x75f   :  { %v4059_v44 = vpop.eup %4058  ;;  %vm588_vm13 = vcmp.eq.s32.totalorder %v4743_v29, 1 }
 0x760   :  { %549 = vrot.lane.b32.xlu1 %v4059_v44, %s4377_s2  ;;  %v4801_v17 = vsel %vm588_vm13, %v4736_v25, %v4732_v56 }
 0x761   :  { %v4061_v52 = vpop.eup %4060 }
 0x762   :  { %573 = vrot.lane.b32.xlu0 %v4061_v52, %s4377_s2  ;;  %v711_v52 = vsel %vm605_vm14, 1, %v4375_v1  ;;  %vm1838_vm14 = vcmask 1046534  }
 0x7d2   :  { %v550_v54 = vpop.permute.xlu1 %549 }
 0x7d3   :  { %v4745_v63 = vmul.f32 %v4055_v61, %v550_v54  ;;  %v718_v54 = vsel %vm606_vm15, 1, %v4375_v1  ;;  %vm1840_vm15 = vcmask 1047559  }
 0x7d4   :  { %v574_v37 = vpop.permute.xlu0 %573 }
 0x7d5   :  { %v4752_v31 = vsel %vm581_vm12, %v4745_v63, %v4683_v18  ;;  %v4754_v5 = vmul.f32 %v4057_v48, %v574_v37  ;;  %v4792_v37 = vsel %vm581_vm12, %v4726_v22, %v4723_v46 }
 0x7d6   :  { %608 = vrot.lane.b32.xlu1 %v4752_v31, %s4378_s9 }
 0x7d7   :  { %v4763_v32 = vsel %vm588_vm13, %v4754_v5, %v4694_v20 }
 0x7d8   :  { %612 = vrot.lane.b32.xlu0 %v4763_v32, %s4377_s2 }
 0x848   :  { %v609_v33 = vpop.permute.xlu1 %608 }
 0x84a   :  { %v613_v34 = vpop.permute.xlu0 %612 }
 0x84b   :  { %v615_v18 = vsel %vm85_vm0, %v609_v33, %v613_v34 }
 0x84c   :  { %v616_v36 = vpack.c.bf16 %v615_v18, %v615_v18 }
 0x84e   :  { %3921 = vmatmul.mubr.msk.bf16.vlgmr.msra.gmra.mxu1 %vm222_vm5, %v616_v36 }
 0x84f   :  { %883 = vmatpush1.bf16.msra.mxu1 %v4453_v4  ;;  %906 = vmatprep.mubr.bf16.mxu1 %v4375_v1 }
 0x850   :  { %884 = vmatprep.subr.bf16.mxu1 %v4463_v6 }
 0x853   :  { %885 = vmatpush1.bf16.msra.mxu1 %v4471_v8 }
 0x854   :  { %886 = vmatprep.subr.bf16.mxu1 %v4483_v11 }
 0x857   :  { %887 = vmatpush1.bf16.msra.mxu1 %v4489_v13 }
 0x858   :  { %888 = vmatprep.subr.bf16.mxu1 %v4495_v14 }
 0x85b   :  { %889 = vmatpush1.bf16.msra.mxu1 %v4503_v15 }
 0x85c   :  { %1126 = vmatprep.subr.bf16.mxu1 %v4443_v2 }
 0x90e   :  { %v654_v20 = vpop.f32.mrf.mxu1 }
 0x90f   :  { %v661_v38 = vadd.f32 %v654_v20, %v4573_v50 }
 0x910   :  { %v656_v43 = vpop.f32.mrf.mxu1 }
 0x911   :  { %4062 = vtanh.f32 %v661_v38  ;;  %v662_v39 = vadd.f32 %v656_v43, %v4579_v57  ;;  %v3922_v58 = vmul.f32 -1.442695, %v661_v38 }
 0x912   :  { %v658_v61 = vpop.f32.mrf.mxu1 }
 0x913   :  { %4064 = vtanh.f32 %v662_v39  ;;  %v3923_v60 = vmul.f32 -1.442695, %v662_v39 }
 0x914   :  { %v659_v42 = vpop.f32.mrf.mxu1  ;;  %4066 = vpow2.f32 %v3922_v58 }
 0x915   :  { %4068 = vpow2.f32 %v3923_v60 }
 0x91e   :  { %v4063_v45 = vpop.eup %4062 }
 0x91f   :  { %672 = vrot.lane.b32.xlu1 %v4063_v45, %s4377_s2 }
 0x920   :  { %v4065_v48 = vpop.eup %4064 }
 0x921   :  { %696 = vrot.lane.b32.xlu0 %v4065_v48, %s4377_s2  ;;  %v4067_v2 = vpop.eup %4066 }
 0x922   :  { %v4069_v41 = vpop.eup %4068  ;;  %v666_v50 = vadd.f32 1.0, %v4067_v2 }
 0x923   :  { %v690_v3 = vadd.f32 1.0, %v4069_v41 }
 0x924   :  { %4070 = vrcp.f32 %v666_v50 }
 0x925   :  { %4072 = vrcp.f32 %v690_v3 }
 0x931   :  { %v4071_v57 = vpop.eup %4070 }
 0x932   :  { %v4073_v23 = vpop.eup %4072  ;;  %v670_v33 = vmul.f32 %v4071_v57, %v4792_v37 }
 0x933   :  { %v694_v36 = vmul.f32 %v4073_v23, %v4801_v17 }
 0x991   :  { %v673_v16 = vpop.permute.xlu1 %672 }
 0x992   :  { %v675_v21 = vmul.f32 %v4071_v57, %v673_v16 }
 0x993   :  { %v697_v24 = vpop.permute.xlu0 %696 }
 0x994   :  { %677 = vrot.lane.b32.xlu1 %v675_v21, %s4378_s9  ;;  %v699_v44 = vmul.f32 %v4073_v23, %v697_v24 }
 0x996   :  { %701 = vrot.lane.b32.xlu0 %v699_v44, %s4378_s9 }
 0x998   :  { %713 = vperm.xlu1 %3991, %v711_v52  }
 0x99a   :  { %720 = vperm.xlu0 %3990, %v718_v54  }
 0xa06   :  { %v678_v34 = vpop.permute.xlu1 %677 }
 0xa07   :  { %v4795_v18 = vadd.f32 %v678_v34, %v670_v33 }
 0xa08   :  { %v702_v20 = vpop.permute.xlu0 %701 }
 0xa09   :  { %4074 = vtanh.f32 %v4795_v18  ;;  %v4805_v38 = vadd.f32 %v702_v20, %v694_v36 }
 0xa0b   :  { %4076 = vtanh.f32 %v4805_v38 }
 0xa13   :  { %v4810_v43 = vpop.permute.xlu1 %713 }
 0xa14   :  { %6117 = vst [vmem:[#allocation5_spill] sm:$0xff] %v4810_v43  ;;  %vm715_vm1 = vcmp.eq.s32.totalorder %v4810_v43, 1 }
 0xa15   :  { %v4812_v39 = vpop.permute.xlu0 %720 }
 0xa16   :  { %v4075_v46 = vpop.eup %4074  ;;  %vm722_vm2 = vcmp.eq.s32.totalorder %v4812_v39, 1 }
 0xa17   :  { %683 = vrot.lane.b32.xlu1 %v4075_v46, %s4377_s2 }
 0xa18   :  { %v4077_v22 = vpop.eup %4076 }
 0xa19   :  { %707 = vrot.lane.b32.xlu0 %v4077_v22, %s4377_s2 }
 0xa89   :  { %v684_v56 = vpop.permute.xlu1 %683 }
 0xa8a   :  { %v4814_v25 = vmul.f32 %v4071_v57, %v684_v56  ;;  %v4856_v56 = vsel %vm715_vm1, %v4795_v18, %v4792_v37 }
 0xa8b   :  { %v708_v61 = vpop.permute.xlu0 %707 }
 0xa8c   :  { %v4821_v42 = vsel %vm715_vm1, %v4814_v25, %v4752_v31  ;;  %v4823_v45 = vmul.f32 %v4073_v23, %v708_v61 }
 0xa8d   :  { %740 = vrot.lane.b32.xlu1 %v4821_v42, %s4378_s9 }
 0xa8e   :  { %v4832_v48 = vsel %vm722_vm2, %v4823_v45, %v4763_v32 }
 0xa8f   :  { %744 = vrot.lane.b32.xlu0 %v4832_v48, %s4377_s2 }
 0xaff   :  { %v741_v58 = vpop.permute.xlu1 %740 }
 0xb01   :  { %v745_v60 = vpop.permute.xlu0 %744 }
 0xb02   :  { %v747_v31 = vsel %vm85_vm0, %v741_v58, %v745_v60 }
 0xb03   :  { %v748_v2 = vpack.c.bf16 %v747_v31, %v747_v31  ;;  %v4865_v31 = vsel %vm722_vm2, %v4805_v38, %v4801_v17 }
 0xb05   :  { %3924 = vmatmul.mubr.msk.bf16.vlgmr.msra.gmra.mxu0 %vm222_vm5, %v748_v2 }
 0xb06   :  { %1005 = vmatpush1.bf16.msra.mxu0 %v4453_v4  ;;  %1028 = vmatprep.mubr.bf16.mxu0 %v4375_v1 }
 0xb07   :  { %1006 = vmatprep.subr.bf16.mxu0 %v4463_v6 }
 0xb0a   :  { %1007 = vmatpush1.bf16.msra.mxu0 %v4471_v8 }
 0xb0b   :  { %1008 = vmatprep.subr.bf16.mxu0 %v4483_v11 }
 0xb0e   :  { %1009 = vmatpush1.bf16.msra.mxu0 %v4489_v13 }
 0xb0f   :  { %1010 = vmatprep.subr.bf16.mxu0 %v4495_v14 }
 0xb12   :  { %1011 = vmatpush1.bf16.msra.mxu0 %v4503_v15 }
 0xbc5   :  { %v786_v32 = vpop.f32.mrf.mxu0 }
 0xbc6   :  { %v793_v41 = vadd.f32 %v786_v32, %v4577_v55 }
 0xbc7   :  { %v788_v50 = vpop.f32.mrf.mxu0 }
 0xbc8   :  { %4078 = vtanh.f32 %v793_v41  ;;  %v794_v3 = vadd.f32 %v788_v50, %v4575_v53  ;;  %v3925_v24 = vmul.f32 -1.442695, %v793_v41 }
 0xbc9   :  { %v790_v57 = vpop.f32.mrf.mxu0 }
 0xbca   :  { %4080 = vtanh.f32 %v794_v3  ;;  %v3926_v44 = vmul.f32 -1.442695, %v794_v3 }
 0xbcb   :  { %v791_v16 = vpop.f32.mrf.mxu0  ;;  %4082 = vpow2.f32 %v3925_v24 }
 0xbcc   :  { %4084 = vpow2.f32 %v3926_v44 }
 0xbd5   :  { %v4079_v21 = vpop.eup %4078 }
 0xbd6   :  { %804 = vrot.lane.b32.xlu1 %v4079_v21, %s4377_s2 }
 0xbd7   :  { %v4081_v23 = vpop.eup %4080 }
 0xbd8   :  { %828 = vrot.lane.b32.xlu0 %v4081_v23, %s4377_s2  ;;  %v4083_v52 = vpop.eup %4082 }
 0xbd9   :  { %v4085_v54 = vpop.eup %4084  ;;  %v798_v55 = vadd.f32 1.0, %v4083_v52 }
 0xbda   :  { %v822_v33 = vadd.f32 1.0, %v4085_v54 }
 0xbdb   :  { %4086 = vrcp.f32 %v798_v55 }
 0xbdc   :  { %4088 = vrcp.f32 %v822_v33 }
 0xbe8   :  { %v4087_v53 = vpop.eup %4086 }
 0xbe9   :  { %v4089_v20 = vpop.eup %4088  ;;  %v802_v61 = vmul.f32 %v4087_v53, %v4856_v56 }
 0xbea   :  { %v826_v2 = vmul.f32 %v4089_v20, %v4865_v31 }
 0xc48   :  { %v805_v34 = vpop.permute.xlu1 %804 }
 0xc49   :  { %v807_v36 = vmul.f32 %v4087_v53, %v805_v34 }
 0xc4a   :  { %v829_v46 = vpop.permute.xlu0 %828 }
 0xc4b   :  { %809 = vrot.lane.b32.xlu1 %v807_v36, %s4378_s9  ;;  %v831_v22 = vmul.f32 %v4089_v20, %v829_v46 }
 0xc4d   :  { %833 = vrot.lane.b32.xlu0 %v831_v22, %s4378_s9 }
 0xcbd   :  { %v810_v58 = vpop.permute.xlu1 %809 }
 0xcbe   :  { %v4859_v60 = vadd.f32 %v810_v58, %v802_v61 }
 0xcbf   :  { %v834_v32 = vpop.permute.xlu0 %833 }
 0xcc0   :  { %4090 = vtanh.f32 %v4859_v60  ;;  %v836_v41 = vadd.f32 %v834_v32, %v826_v2  ;;  %v844_v46 = vsel %vm722_vm2, %v4859_v60, %v4856_v56 }
 0xcc2   :  { %4092 = vtanh.f32 %v836_v41  ;;  %v846_v2 = vsel %vm715_vm1, %v836_v41, %v4865_v31 }
 0xccd   :  { %v4091_v37 = vpop.eup %4090 }
 0xcce   :  { %815 = vrot.lane.b32.xlu1 %v4091_v37, %s4377_s2 }
 0xccf   :  { %v4093_v18 = vpop.eup %4092 }
 0xcd0   :  { %839 = vrot.lane.b32.xlu0 %v4093_v18, %s4377_s2 }
 0xd40   :  { %v816_v50 = vpop.permute.xlu1 %815 }
 0xd41   :  { %v4871_v3 = vmul.f32 %v4087_v53, %v816_v50 }
 0xd42   :  { %v840_v57 = vpop.permute.xlu0 %839 }
 0xd43   :  { %v4877_v17 = vsel %vm722_vm2, %v4871_v3, %v4821_v42  ;;  %v4879_v38 = vmul.f32 %v4089_v20, %v840_v57 }
 0xd44   :  { %862 = vrot.lane.b32.xlu1 %v4877_v17, %s4378_s9 }
 0xd45   :  { %v4887_v16 = vsel %vm715_vm1, %v4879_v38, %v4832_v48 }
 0xd46   :  { %866 = vrot.lane.b32.xlu0 %v4887_v16, %s4377_s2 }
 0xdb6   :  { %v863_v21 = vpop.permute.xlu1 %862 }
 0xdb8   :  { %v867_v23 = vpop.permute.xlu0 %866 }
 0xdb9   :  { %v869_v24 = vsel %vm85_vm0, %v863_v21, %v867_v23 }
 0xdba   :  { %v870_v42 = vpack.c.bf16 %v869_v24, %v869_v24 }
 0xdbc   :  { %3927 = vmatmul.mubr.msk.bf16.vlgmr.msra.gmra.mxu1 %vm222_vm5, %v870_v42 }
 0xdbd   :  { %1127 = vmatpush1.bf16.msra.mxu1 %v4453_v4  ;;  %1150 = vmatprep.mubr.bf16.mxu1 %v4375_v1 }
 0xdbe   :  { %1128 = vmatprep.subr.bf16.mxu1 %v4463_v6 }
 0xdc1   :  { %1129 = vmatpush1.bf16.msra.mxu1 %v4471_v8 }
 0xdc2   :  { %1130 = vmatprep.subr.bf16.mxu1 %v4483_v11 }
 0xdc5   :  { %1131 = vmatpush1.bf16.msra.mxu1 %v4489_v13 }
 0xdc6   :  { %1132 = vmatprep.subr.bf16.mxu1 %v4495_v14 }
 0xdc9   :  { %1133 = vmatpush1.bf16.msra.mxu1 %v4503_v15 }
 0xe7c   :  { %v908_v48 = vpop.f32.mrf.mxu1 }
 0xe7d   :  { %v915_v44 = vadd.f32 %v908_v48, %v4581_v59 }
 0xe7e   :  { %v910_v52 = vpop.f32.mrf.mxu1 }
 0xe7f   :  { %4094 = vtanh.f32 %v915_v44  ;;  %v916_v4 = vadd.f32 %v910_v52, %v4571_v47  ;;  %v3928_v11 = vmul.f32 -1.442695, %v915_v44 }
 0xe80   :  { %v912_v1 = vpop.f32.mrf.mxu1 }
 0xe81   :  { %4096 = vtanh.f32 %v916_v4  ;;  %v3929_v13 = vmul.f32 -1.442695, %v916_v4 }
 0xe82   :  { %v913_v6 = vpop.f32.mrf.mxu1  ;;  %4098 = vpow2.f32 %v3928_v11 }
 0xe83   :  { %4100 = vpow2.f32 %v3929_v13 }
 0xe8c   :  { %v4095_v54 = vpop.eup %4094 }
 0xe8d   :  { %926 = vrot.lane.b32.xlu1 %v4095_v54, %s4377_s2 }
 0xe8e   :  { %v4097_v8 = vpop.eup %4096 }
 0xe8f   :  { %950 = vrot.lane.b32.xlu0 %v4097_v8, %s4377_s2  ;;  %v4099_v14 = vpop.eup %4098 }
 0xe90   :  { %v4101_v15 = vpop.eup %4100  ;;  %v920_v59 = vadd.f32 1.0, %v4099_v14 }
 0xe91   :  { %v944_v55 = vadd.f32 1.0, %v4101_v15 }
 0xe92   :  { %4102 = vrcp.f32 %v920_v59 }
 0xe93   :  { %4104 = vrcp.f32 %v944_v55 }
 0xe9f   :  { %v4103_v47 = vpop.eup %4102 }
 0xea0   :  { %v4105_v34 = vpop.eup %4104  ;;  %v924_v22 = vmul.f32 %v4103_v47, %v844_v46 }
 0xea1   :  { %v948_v32 = vmul.f32 %v4105_v34, %v846_v2 }
 0xeff   :  { %v927_v33 = vpop.permute.xlu1 %926 }
 0xf00   :  { %v929_v53 = vmul.f32 %v4103_v47, %v927_v33 }
 0xf01   :  { %v951_v36 = vpop.permute.xlu0 %950 }
 0xf02   :  { %931 = vrot.lane.b32.xlu1 %v929_v53, %s4378_s9  ;;  %v953_v20 = vmul.f32 %v4105_v34, %v951_v36 }
 0xf04   :  { %955 = vrot.lane.b32.xlu0 %v953_v20, %s4378_s9 }
 0xf74   :  { %v932_v61 = vpop.permute.xlu1 %931 }
 0xf75   :  { %v934_v58 = vadd.f32 %v932_v61, %v924_v22 }
 0xf76   :  { %v956_v37 = vpop.permute.xlu0 %955 }
 0xf77   :  { %4106 = vtanh.f32 %v934_v58  ;;  %v958_v18 = vadd.f32 %v956_v37, %v948_v32  ;;  %v4940_v36 = vsel %vm588_vm13, %v934_v58, %v844_v46 }
 0xf79   :  { %4108 = vtanh.f32 %v958_v18  ;;  %v968_v32 = vsel %vm581_vm12, %v958_v18, %v846_v2 }
 0xf84   :  { %v4107_v50 = vpop.eup %4106 }
 0xf85   :  { %937 = vrot.lane.b32.xlu1 %v4107_v50, %s4377_s2 }
 0xf86   :  { %v4109_v57 = vpop.eup %4108 }
 0xf87   :  { %961 = vrot.lane.b32.xlu0 %v4109_v57, %s4377_s2 }
 0xff7   :  { %v938_v21 = vpop.permute.xlu1 %937 }
 0xff8   :  { %v4916_v56 = vmul.f32 %v4103_v47, %v938_v21 }
 0xff9   :  { %v962_v60 = vpop.permute.xlu0 %961 }
 0xffa   :  { %v965_v31 = vsel %vm588_vm13, %v4916_v56, %v4877_v17  ;;  %v4922_v41 = vmul.f32 %v4105_v34, %v962_v60 }
 0xffb   :  { %984 = vrot.lane.b32.xlu1 %v965_v31, %s4378_s9 }
 0xffc   :  { %v967_v23 = vsel %vm581_vm12, %v4922_v41, %v4887_v16 }
 0xffd   :  { %988 = vrot.lane.b32.xlu0 %v967_v23, %s4377_s2 }
0x106d   :  { %v985_v24 = vpop.permute.xlu1 %984 }
0x106f   :  { %v989_v42 = vpop.permute.xlu0 %988 }
0x1070   :  { %v991_v48 = vsel %vm85_vm0, %v985_v24, %v989_v42 }
0x1071   :  { %v992_v44 = vpack.c.bf16 %v991_v48, %v991_v48 }
0x1073   :  { %3930 = vmatmul.mubr.msk.bf16.vlgmr.msra.gmra.mxu0 %vm222_vm5, %v992_v44 }
0x1133   :  { %v1030_v52 = vpop.f32.mrf.mxu0 }
0x1134   :  { %v1037_v17 = vadd.f32 %v1030_v52, %v4585_v0 }
0x1135   :  { %v1032_v4 = vpop.f32.mrf.mxu0 }
0x1136   :  { %4110 = vtanh.f32 %v1037_v17  ;;  %v1038_v1 = vadd.f32 %v1032_v4, %v4567_v40  ;;  %v3931_v11 = vmul.f32 -1.442695, %v1037_v17 }
0x1137   :  { %v1034_v6 = vpop.f32.mrf.mxu0 }
0x1138   :  { %4112 = vtanh.f32 %v1038_v1  ;;  %v3932_v13 = vmul.f32 -1.442695, %v1038_v1 }
0x1139   :  { %v1035_v54 = vpop.f32.mrf.mxu0  ;;  %4114 = vpow2.f32 %v3931_v11 }
0x113a   :  { %4116 = vpow2.f32 %v3932_v13 }
0x1143   :  { %v4111_v16 = vpop.eup %4110 }
0x1144   :  { %1048 = vrot.lane.b32.xlu1 %v4111_v16, %s4377_s2 }
0x1145   :  { %v4113_v8 = vpop.eup %4112 }
0x1146   :  { %1072 = vrot.lane.b32.xlu0 %v4113_v8, %s4377_s2  ;;  %v4115_v14 = vpop.eup %4114 }
0x1147   :  { %v4117_v15 = vpop.eup %4116  ;;  %v1042_v0 = vadd.f32 1.0, %v4115_v14 }
0x1148   :  { %v1066_v59 = vadd.f32 1.0, %v4117_v15 }
0x1149   :  { %4118 = vrcp.f32 %v1042_v0 }
0x114a   :  { %4120 = vrcp.f32 %v1066_v59 }
0x1156   :  { %v4119_v40 = vpop.eup %4118 }
0x1157   :  { %v4121_v33 = vpop.eup %4120  ;;  %v1046_v20 = vmul.f32 %v4119_v40, %v4940_v36 }
0x1158   :  { %v1070_v37 = vmul.f32 %v4121_v33, %v968_v32 }
0x11b6   :  { %v1049_v55 = vpop.permute.xlu1 %1048 }
0x11b7   :  { %v1051_v47 = vmul.f32 %v4119_v40, %v1049_v55 }
0x11b8   :  { %v1073_v53 = vpop.permute.xlu0 %1072 }
0x11b9   :  { %1053 = vrot.lane.b32.xlu1 %v1051_v47, %s4378_s9  ;;  %v1075_v34 = vmul.f32 %v4121_v33, %v1073_v53 }
0x11bb   :  { %1077 = vrot.lane.b32.xlu0 %v1075_v34, %s4378_s9 }
0x122b   :  { %v1054_v22 = vpop.permute.xlu1 %1053 }
0x122c   :  { %v4943_v61 = vadd.f32 %v1054_v22, %v1046_v20 }
0x122d   :  { %v1078_v50 = vpop.permute.xlu0 %1077 }
0x122e   :  { %4122 = vtanh.f32 %v4943_v61  ;;  %v1080_v57 = vadd.f32 %v1078_v50, %v1070_v37  ;;  %v591_v50 = vsel %vm581_vm12, %v4745_v63, 0.0 }
0x1230   :  { %4124 = vtanh.f32 %v1080_v57  ;;  %v1090_v59 = vsel %vm447_vm8, %v1080_v57, %v968_v32  ;;  %v4011_v32 = vld [vmem:[%s6105_s4] sm:$0xff]   ;;  %v854_v57 = vsel %vm715_vm1, %v4879_v38, 0.0 }
0x123b   :  { %v4123_v21 = vpop.eup %4122 }
0x123c   :  { %1059 = vrot.lane.b32.xlu1 %v4123_v21, %s4377_s2 }
0x123d   :  { %v4125_v60 = vpop.eup %4124 }
0x123e   :  { %1083 = vrot.lane.b32.xlu0 %v4125_v60, %s4377_s2  ;;  %v4012_v60 = vld [vmem:[%s6105_s4 + $0x18] sm:$0xff]  }
0x123f   :  { %3961 = vmatprep.subr.bf16.mxu0 %v4012_v60 }
0x1240   :  { %3962 = vmatpush3.bf16.msra.mxu0 %v4012_v60 }
0x12ae   :  { %v1060_v46 = vpop.permute.xlu1 %1059 }
0x12af   :  { %v4950_v58 = vmul.f32 %v4119_v40, %v1060_v46  ;;  %v4013_v46 = vld [vmem:[%s6105_s4 + $0x10] sm:$0xff]  }
0x12b0   :  { %v1084_v24 = vpop.permute.xlu0 %1083  ;;  %3963 = vmatprep.subr.bf16.mxu0 %v4013_v46 }
0x12b1   :  { %v1087_v2 = vsel %vm454_vm9, %v4950_v58, %v965_v31  ;;  %v1086_v18 = vmul.f32 %v4121_v33, %v1084_v24  ;;  %3964 = vmatpush3.bf16.msra.mxu0 %v4013_v46 }
0x12b2   :  { %1106 = vrot.lane.b32.xlu1 %v1087_v2, %s4378_s9 }
0x12b3   :  { %v1089_v42 = vsel %vm447_vm8, %v1086_v18, %v967_v23  ;;  %v1098_v37 = vsel %vm447_vm8, %v1086_v18, 0.0  ;;  %v976_v18 = vsel %vm581_vm12, %v4922_v41, 0.0 }
0x12b4   :  { %1110 = vrot.lane.b32.xlu0 %v1089_v42, %s4377_s2 }
0x1324   :  { %v1107_v48 = vpop.permute.xlu1 %1106 }
0x1326   :  { %v1111_v44 = vpop.permute.xlu0 %1110 }
0x1327   :  { %v1113_v52 = vsel %vm85_vm0, %v1107_v48, %v1111_v44 }
0x1328   :  { %v1114_v17 = vpack.c.bf16 %v1113_v52, %v1113_v52 }
0x132a   :  { %3933 = vmatmul.mubr.msk.bf16.vlgmr.msra.gmra.mxu1 %vm222_vm5, %v1114_v17  ;;  %vm1828_vm5 = vcmask 1041409  }
0x13ea   :  { %v1152_v4 = vpop.f32.mrf.mxu1 }
0x13eb   :  { %v4962_v1 = vadd.f32 %v1152_v4, %v4590_v9  ;;  %v725_v9 = vsel %vm715_vm1, %v4814_v25, 0.0  ;;  %v4010_v25 = vld [vmem:[%s6105_s4 + $0x8] sm:$0xff]  }
0x13ec   :  { %v1154_v31 = vpop.f32.mrf.mxu1  ;;  %3973 = vmatprep.subr.bf16.mxu1 %v4010_v25 }
0x13ed   :  { %v1160_v6 = vadd.f32 %v1154_v31, %v4563_v35  ;;  %v457_v35 = vsel %vm447_vm8, %v4676_v12, 0.0  ;;  %v1230_v12 = vld [vmem:[#allocation2] sm:$0xff]  ;;  %3974 = vmatpush3.bf16.msra.mxu1 %v4010_v25 }
0x13ee   :  { %v1156_v54 = vpop.f32.mrf.mxu1  ;;  %3975 = vmatprep.subr.bf16.mxu1 %v4011_v32 }
0x13ef   :  { %4126 = vtanh.f32 %v1160_v6  ;;  %v3935_v8 = vmul.f32 -1.442695, %v1160_v6 }
0x13f0   :  { %v1157_v16 = vpop.f32.mrf.mxu1 }
0x13f1   :  { %4128 = vpow2.f32 %v3935_v8  ;;  %3976 = vmatpush3.bf16.msra.mxu1 %v4011_v32  ;;  %v3934_v8 = vmul.f32 -1.442695, %v4962_v1 }
0x13fc   :  { %v4127_v23 = vpop.eup %4126 }
0x13fd   :  { %1194 = vrot.lane.b32.xlu1 %v4127_v23, %s4377_s2 }
0x13fe   :  { %v4129_v11 = vpop.eup %4128 }
0x13ff   :  { %v1188_v13 = vadd.f32 1.0, %v4129_v11 }
0x1401   :  { %4130 = vrcp.f32 %v1188_v13 }
0x140e   :  { %v4131_v14 = vpop.eup %4130 }
0x140f   :  { %v1192_v40 = vmul.f32 %v4131_v14, %v1090_v59 }
0x146f   :  { %v1195_v15 = vpop.permute.xlu1 %1194 }
0x1470   :  { %v1197_v0 = vmul.f32 %v4131_v14, %v1195_v15 }
0x1472   :  { %1199 = vrot.lane.b32.xlu0 %v1197_v0, %s4378_s9 }
0x1476   :  { %459 = vrot.lane.b32.xlu0 %v457_v35, %s4378_s9 }
0x147a   :  { %727 = vrot.lane.b32.xlu0 %v725_v9, %s4378_s9  ;;  %v5029_v9 = vld [vmem:[%s6106_s5] ss:$0 sm:$0xff] }
0x14e4   :  { %v1200_v55 = vpop.permute.xlu0 %1199 }
0x14e5   :  { %v1202_v47 = vadd.f32 %v1200_v55, %v1192_v40  ;;  %v5037_v55 = vsub.s32 3, %v4550_v27 }
0x14e7   :  { %4132 = vtanh.f32 %v1202_v47 }
0x14e8   :  { %v460_v33 = vpop.permute.xlu0 %459  ;;  %4134 = vtanh.f32 %v4962_v1 }
0x14e9   :  { %463 = vst.msk [vmem:[#allocation2 + $0x8] sm:$0xff] %vm85_vm0, %v460_v33  ;;  %4136 = vpow2.f32 %v3934_v8  ;;  %v5042_v33 = vsub.s32 2, %v4550_v27 }
0x14ec   :  { %v728_v53 = vpop.permute.xlu0 %727 }
0x14ed   :  { %731 = vst.msk [vmem:[#allocation2 + $0x18] sm:$0xff] %vm85_vm0, %v728_v53 }
0x14f0   :  { %v1231_v34 = vld [vmem:[#allocation2 + $0x8] sm:$0xff] }
0x14f1   :  { %v1238_v20 = vpack.c.bf16 %v1231_v34, %v1230_v12  ;;  %v5047_v12 = vsub.s32 5, %v4550_v27 }
0x14f3   :  { %3977 = vmatprep.mubr.msk.bf16.mxu1 %vm85_vm0, %v1238_v20  ;;  %v5052_v20 = vsub.s32 4, %v4550_v27 }
0x14f4   :  { %v4133_v22 = vpop.eup %4132  ;;  %v1233_v51 = vld [vmem:[#allocation2 + $0x18] sm:$0xff] }
0x14f5   :  { %1205 = vrot.lane.b32.xlu1 %v4133_v22, %s4377_s2  ;;  %v4135_v21 = vpop.eup %4134  ;;  %v5057_v22 = vsub.s32 7, %v4550_v27 }
0x14f6   :  { %v4137_v0 = vpop.eup %4136 }
0x14f7   :  { %v1164_v40 = vadd.f32 1.0, %v4137_v0 }
0x14f9   :  { %1100 = vrot.lane.b32.xlu1 %v1098_v37, %s4378_s9  ;;  %4138 = vrcp.f32 %v1164_v40  ;;  %v5062_v37 = vsub.s32 6, %v4550_v27 }
0x14fd   :  { %593 = vrot.lane.b32.xlu1 %v591_v50, %s4378_s9 }
0x1501   :  { %856 = vrot.lane.b32.xlu1 %v854_v57, %s4378_s9 }
0x1505   :  { %1170 = vrot.lane.b32.xlu1 %v4135_v21, %s4377_s2 }
0x1506   :  { %v5068_v60 = vpop.eup %4138 }
0x1567   :  { %v1206_v63 = vpop.permute.xlu1 %1205 }
0x1568   :  { %v1208_v24 = vmul.f32 %v4131_v14, %v1206_v63 }
0x156a   :  { %v1216_v38 = vsel %vm321_vm3, %v1208_v24, 0.0  ;;  %vm1463_vm3 = vcmask 64512  }
0x156b   :  { %1218 = vrot.lane.b32.xlu0 %v1216_v38, %s4378_s9  ;;  %v1101_v2 = vpop.permute.xlu1 %1100 }
0x156c   :  { %1104 = vst.msk [vmem:[#allocation3 + $0x8] sm:$0xff] %vm85_vm0, %v1101_v2  ;;  %v4379_v2 = vmov 1966171168  }
0x156f   :  { %978 = vrot.lane.b32.xlu0 %v976_v18, %s4378_s9  ;;  %v594_v42 = vpop.permute.xlu1 %593  ;;  %v1565_v18 = vunpack.c.l.s4 %v4379_v2 }
0x1570   :  { %597 = vst.msk [vmem:[#allocation2 + $0x10] sm:$0xff] %vm85_vm0, %v594_v42 }
0x1573   :  { %v857_v48 = vpop.permute.xlu1 %856  ;;  %v1243_v31 = vld [vmem:[#allocation3 + $0x8] sm:$0xff] }
0x1574   :  { %860 = vst.msk [vmem:[#allocation3 + $0x18] sm:$0xff] %vm85_vm0, %v857_v48 }
0x1577   :  { %v1232_v44 = vld [vmem:[#allocation2 + $0x10] sm:$0xff]  ;;  %v1171_v21 = vpop.permute.xlu1 %1170 }
0x1578   :  { %v1239_v52 = vpack.c.bf16 %v1233_v51, %v1232_v44  ;;  %v1173_v46 = vmul.f32 %v5068_v60, %v1171_v21  ;;  %v1566_v44 = vunpack.c.0.s8 %v1565_v18 }
0x157a   :  { %3978 = vmatmul.mubr.msk.bf16.vlgmr.msra.gmra.mxu1 %vm85_vm0, %v1239_v52  ;;  %v5080_v52 = vsub.s32 %v1566_v44, %v4550_v27 }
0x157b   :  { %v1245_v16 = vld [vmem:[#allocation3 + $0x18] sm:$0xff] }
0x15dd   :  { %v1219_v17 = vpop.permute.xlu0 %1218 }
0x15de   :  { %1221 = vst.msk [vmem:[#allocation3] sm:$0xff] %vm85_vm0, %v1219_v17 }
0x15e1   :  { %v979_v4 = vpop.permute.xlu0 %978 }
0x15e2   :  { %982 = vst.msk [vmem:[#allocation3 + $0x10] sm:$0xff] %vm85_vm0, %v979_v4 }
0x15e5   :  { %v1242_v41 = vld [vmem:[#allocation3] sm:$0xff] }
0x15e6   :  { %v1250_v6 = vpack.c.bf16 %v1243_v31, %v1242_v41 }
0x15e8   :  { %3965 = vmatprep.mubr.msk.bf16.mxu0 %vm85_vm0, %v1250_v6 }
0x15e9   :  { %v1244_v54 = vld [vmem:[#allocation3 + $0x10] sm:$0xff] }
0x15ea   :  { %v1251_v23 = vpack.c.bf16 %v1245_v16, %v1244_v54  ;;  %v5091_v54 = vld [vmem:[%s6107_s6] sm:$0xff] }
0x15eb   :  { %6121 = vst [vmem:[#allocation9_spill] sm:$0xff] %v5091_v54 }
0x15ec   :  { %3966 = vmatmul.mubr.msk.bf16.vlgmr.msra.gmra.mxu0 %vm85_vm0, %v1251_v23 }
0x163a   :  { %v5022_v11 = vpop.f32.mrf.mxu1 }
0x163c   :  { %v1401_v14 = vpop.f32.mrf.mxu1 }
0x163e   :  { %v5074_v24 = vpop.f32.mrf.mxu1 }
0x163f   :  { %6119 = vst [vmem:[#allocation7_spill] sm:$0xff] %v5074_v24 }
0x1640   :  { %v1404_v42 = vpop.f32.mrf.mxu1 }
0x16ac   :  { %v5024_v13 = vpop.f32.mrf.mxu0 }
0x16ae   :  { %v1312_v15 = vpop.f32.mrf.mxu0 }
0x16af   :  { %v1402_v35 = vadd.f32 %v1401_v14, %v1312_v15 }
0x16b0   :  { %v5072_v63 = vpop.f32.mrf.mxu0 }
0x16b1   :  { %v5032_v59 = vadd.f32 %v5029_v9, %v1402_v35  ;;  %6118 = vst [vmem:[#allocation6_spill] sm:$0xff] %v5072_v63 }
0x16b2   :  { %v1315_v38 = vpop.f32.mrf.mxu0 }
0x16b3   :  { %v1508_v1 = vrot.slane %v5032_v59, %v4553_v28  ;;  %v1501_v47 = vrot.slane %v5032_v59, %v4559_v30  ;;  %v1522_v53 = vrot.slane %v5032_v59, %v5037_v55  ;;  %v1515_v34 = vrot.slane %v5032_v59, %v5042_v33 }
0x16b4   :  { %v1536_v25 = vrot.slane %v5032_v59, %v5047_v12  ;;  %v1529_v32 = vrot.slane %v5032_v59, %v5052_v20  ;;  %v1550_v50 = vrot.slane %v5032_v59, %v5057_v22  ;;  %v1543_v57 = vrot.slane %v5032_v59, %v5062_v37 }
0x16b5   :  { %1510 = vbcast.lane.b32.xlu1 %v1508_v1, 256  ;;  %1503 = vbcast.lane.b32.xlu0 %v1501_v47, 256  ;;  %v1405_v48 = vadd.f32 %v1404_v42, %v1315_v38  ;;  %v1088_v38 = vsel %vm454_vm9, %v4943_v61, %v4940_v36 }
0x16b7   :  { %v5077_v51 = vadd.f32 %v5029_v9, %v1405_v48 }
0x16b9   :  { %1524 = vbcast.lane.b32.xlu1 %v1522_v53, 256  ;;  %1517 = vbcast.lane.b32.xlu0 %v1515_v34, 256  ;;  %6120 = vst [vmem:[#allocation8_spill] sm:$0xff] %v5077_v51  ;;  %v1570_v17 = vrot.slane %v5077_v51, %v5080_v52  ;;  %v1563_v4 = vcombine.high %v5077_v51, %v5077_v51 }
0x16bb   :  { %v1578_v41 = vcombine.high %v1570_v17, %v1570_v17  ;;  %v1577_v31 = vrot.slane %v1563_v4, %v5080_v52  ;;  %v1586_v16 = vrot.slane %v1570_v17, %v5080_v52 }
0x16bd   :  { %1538 = vbcast.lane.b32.xlu1 %v1536_v25, 256  ;;  %1531 = vbcast.lane.b32.xlu0 %v1529_v32, 256  ;;  %v1600_v6 = vrot.slane %v1578_v41, %v5080_v52  ;;  %v1579_v23 = vcombine.high %v1577_v31, %v1577_v31  ;;  %v1615_v35 = vrot.slane %v1586_v16, %v4559_v30 }
0x16be   :  { %v1608_v1 = vcombine.high %v1586_v16, %v1586_v16  ;;  %v1593_v53 = vrot.slane %v1577_v31, %v5080_v52  ;;  %v5119_v41 = vmul.f32 %v5068_v60, %v1088_v38 }
0x16bf   :  { %v1619_v8 = vrot.slane %v1600_v6, %v4559_v30  ;;  %v1610_v0 = vcombine.high %v1600_v6, %v1600_v6  ;;  %v1607_v32 = vrot.slane %v1579_v23, %v5080_v52 }
0x16c0   :  { %v1623_v42 = vrot.slane %v1608_v1, %v4559_v30  ;;  %v1609_v4 = vcombine.high %v1593_v53, %v1593_v53  ;;  %v1631_v36 = vrot.slane %v1593_v53, %v4559_v30 }
0x16c1   :  { %1552 = vbcast.lane.b32.xlu1 %v1550_v50, 256  ;;  %1545 = vbcast.lane.b32.xlu0 %v1543_v57, 256  ;;  %v1627_v57 = vrot.slane %v1610_v0, %v4559_v30  ;;  %v1611_v61 = vcombine.high %v1607_v32, %v1607_v32 }
0x16c5   :  { %1175 = vrot.lane.b32.xlu0 %v1173_v46, %s4378_s9 }
0x1727   :  { %v1511_v27 = vpop.permute.xlu1 %1510  ;;  %v1504_v15 = vpop.permute.xlu0 %1503 }
0x1728   :  { %v1555_v14 = vadd.f32 %v1511_v27, %v5091_v54  ;;  %v1554_v40 = vadd.f32 %v1504_v15, %v5091_v54 }
0x172a   :  { %v5098_v47 = vadd.f32 %v1619_v8, %v1555_v14  ;;  %v5101_v34 = vadd.f32 %v1615_v35, %v1554_v40  ;;  %v1635_v8 = vrot.slane %v1607_v32, %v4559_v30  ;;  %v1643_v32 = vrot.slane %v1611_v61, %v4559_v30 }
0x172b   :  { %v1525_v25 = vpop.permute.xlu1 %1524  ;;  %v1518_v46 = vpop.permute.xlu0 %1517 }
0x172c   :  { %v1667_v50 = vsel %vm1463_vm3, %v5098_v47, -inf  ;;  %v1557_v21 = vadd.f32 %v1525_v25, %v5091_v54  ;;  %v1660_v18 = vsel %vm1463_vm3, %v5101_v34, -inf  ;;  %v1556_v48 = vadd.f32 %v1518_v46, %v5091_v54 }
0x172d   :  { %v1668_v2 = vrot.slane %v1667_v50, 4  ;;  %v1661_v44 = vrot.slane %v1660_v18, 4 }
0x172e   :  { %v5116_v17 = vadd.f32 %v1627_v57, %v1557_v21  ;;  %v5121_v6 = vadd.f32 %v1623_v42, %v1556_v48  ;;  %v1639_v57 = vrot.slane %v1609_v4, %v4559_v30 }
0x172f   :  { %v1669_v31 = vmax.f32 %v1667_v50, %v1668_v2  ;;  %v1539_v16 = vpop.permute.xlu1 %1538  ;;  %v1662_v27 = vmax.f32 %v1660_v18, %v1661_v44  ;;  %v1532_v15 = vpop.permute.xlu0 %1531 }
0x1730   :  { %v1681_v23 = vsel %vm1463_vm3, %v5116_v17, -inf  ;;  %v1559_v14 = vadd.f32 %v1539_v16, %v5091_v54  ;;  %v1674_v40 = vsel %vm1463_vm3, %v5121_v6, -inf  ;;  %v1558_v1 = vadd.f32 %v1532_v15, %v5091_v54 }
0x1731   :  { %v1670_v0 = vrot.slane %v1669_v31, 2  ;;  %v1682_v35 = vrot.slane %v1681_v23, 4  ;;  %v1663_v25 = vrot.slane %v1662_v27, 2  ;;  %v1675_v50 = vrot.slane %v1674_v40, 4 }
0x1732   :  { %v5131_v53 = vadd.f32 %v1635_v8, %v1559_v14  ;;  %v5134_v38 = vadd.f32 %v1631_v36, %v1558_v1 }
0x1733   :  { %v1671_v21 = vmax.f32 %v1669_v31, %v1670_v0  ;;  %v1683_v46 = vmax.f32 %v1681_v23, %v1682_v35  ;;  %v1553_v2 = vpop.permute.xlu1 %1552  ;;  %v1664_v18 = vmax.f32 %v1662_v27, %v1663_v25  ;;  %v1676_v42 = vmax.f32 %v1674_v40, %v1675_v50  ;;  %v1546_v16 = vpop.permute.xlu0 %1545 }
0x1734   :  { %v1695_v48 = vsel %vm1463_vm3, %v5131_v53, -inf  ;;  %v1561_v44 = vadd.f32 %v1553_v2, %v5091_v54  ;;  %v1688_v4 = vsel %vm1463_vm3, %v5134_v38, -inf  ;;  %v1560_v40 = vadd.f32 %v1546_v16, %v5091_v54 }
0x1735   :  { %v1672_v15 = vrot.slane %v1671_v21, 1  ;;  %v1684_v8 = vrot.slane %v1683_v46, 2  ;;  %v1696_v14 = vrot.slane %v1695_v48, 4  ;;  %v1665_v31 = vrot.slane %v1664_v18, 1 }
0x1736   :  { %v1677_v36 = vrot.slane %v1676_v42, 2  ;;  %v1689_v23 = vrot.slane %v1688_v4, 4  ;;  %v1659_v0 = vadd.f32 %v1643_v32, %v1561_v44 }
0x1737   :  { %v5142_v61 = vmax.f32 %v1671_v21, %v1672_v15  ;;  %v1685_v27 = vmax.f32 %v1683_v46, %v1684_v8  ;;  %v1697_v35 = vmax.f32 %v1695_v48, %v1696_v14  ;;  %v5145_v1 = vmax.f32 %v1664_v18, %v1665_v31 }
0x1738   :  { %v1678_v25 = vmax.f32 %v1676_v42, %v1677_v36  ;;  %v1690_v50 = vmax.f32 %v1688_v4, %v1689_v23  ;;  %v1709_v2 = vsel %vm1463_vm3, %v1659_v0, -inf  ;;  %v1658_v48 = vadd.f32 %v1639_v57, %v1560_v40  ;;  %v1176_v4 = vpop.permute.xlu0 %1175 }
0x1739   :  { %v1717_v51 = vsub.f32 %v5098_v47, %v5142_v61  ;;  %v1686_v43 = vrot.slane %v1685_v27, 1  ;;  %v1698_v24 = vrot.slane %v1697_v35, 2  ;;  %v1710_v63 = vrot.slane %v1709_v2, 4 }
0x173a   :  { %v1716_v21 = vsub.f32 %v5101_v34, %v5145_v1  ;;  %v1679_v32 = vrot.slane %v1678_v25, 1  ;;  %v1691_v46 = vrot.slane %v1690_v50, 2  ;;  %v1702_v47 = vsel %vm1463_vm3, %v1658_v48, -inf }
0x173b   :  { %v1726_v44 = vmul.f32 1.442695, %v1717_v51  ;;  %v5152_v16 = vmax.f32 %v1685_v27, %v1686_v43  ;;  %v1699_v18 = vmax.f32 %v1697_v35, %v1698_v24  ;;  %v1711_v42 = vmax.f32 %v1709_v2, %v1710_v63 }
0x173c   :  { %v1724_v15 = vmul.f32 1.442695, %v1716_v21  ;;  %v5154_v8 = vmax.f32 %v1678_v25, %v1679_v32  ;;  %v1692_v14 = vmax.f32 %v1690_v50, %v1691_v46  ;;  %v1703_v24 = vrot.slane %v1702_v47, 4 }
0x173d   :  { %4140 = vpow2.f32 %v1726_v44  ;;  %v1719_v31 = vsub.f32 %v5116_v17, %v5152_v16  ;;  %v1700_v34 = vrot.slane %v1699_v18, 1  ;;  %v1712_v36 = vrot.slane %v1711_v42, 2 }
0x173e   :  { %4142 = vpow2.f32 %v1724_v15  ;;  %v1718_v43 = vsub.f32 %v5121_v6, %v5154_v8  ;;  %v1693_v51 = vrot.slane %v1692_v14, 1  ;;  %v1178_v27 = vadd.f32 %v1176_v4, %v5119_v41 }
0x173f   :  { %v1730_v63 = vmul.f32 1.442695, %v1719_v31  ;;  %v5161_v57 = vmax.f32 %v1699_v18, %v1700_v34  ;;  %v1713_v23 = vmax.f32 %v1711_v42, %v1712_v36  ;;  %v1704_v25 = vmax.f32 %v1702_v47, %v1703_v24 }
0x1740   :  { %v1728_v35 = vmul.f32 1.442695, %v1718_v43  ;;  %v5164_v40 = vmax.f32 %v1692_v14, %v1693_v51 }
0x1741   :  { %4144 = vpow2.f32 %v1730_v63  ;;  %v1721_v17 = vsub.f32 %v5131_v53, %v5161_v57  ;;  %v1714_v50 = vrot.slane %v1713_v23, 1  ;;  %v1705_v2 = vrot.slane %v1704_v25, 2 }
0x1742   :  { %4146 = vpow2.f32 %v1728_v35  ;;  %v1720_v6 = vsub.f32 %v5134_v38, %v5164_v40 }
0x1743   :  { %v1734_v21 = vmul.f32 1.442695, %v1721_v17  ;;  %v5170_v32 = vmax.f32 %v1713_v23, %v1714_v50  ;;  %4148 = vtanh.f32 %v1178_v27  ;;  %v1706_v41 = vmax.f32 %v1704_v25, %v1705_v2 }
0x1744   :  { %v1732_v46 = vmul.f32 1.442695, %v1720_v6 }
0x1745   :  { %4150 = vpow2.f32 %v1734_v21  ;;  %v1723_v44 = vsub.f32 %v1659_v0, %v5170_v32  ;;  %v1707_v18 = vrot.slane %v1706_v41, 1 }
0x1746   :  { %4152 = vpow2.f32 %v1732_v46 }
0x1747   :  { %v1738_v42 = vmul.f32 1.442695, %v1723_v44  ;;  %v5173_v15 = vmax.f32 %v1706_v41, %v1707_v18 }
0x1749   :  { %4154 = vpow2.f32 %v1738_v42  ;;  %v1722_v14 = vsub.f32 %v1658_v48, %v5173_v15 }
0x174a   :  { %v4141_v53 = vpop.eup %4140 }
0x174b   :  { %v4143_v38 = vpop.eup %4142  ;;  %v1747_v47 = vsel %vm1463_vm3, %v4141_v53, 0.0  ;;  %v1736_v34 = vmul.f32 1.442695, %v1722_v14 }
0x174c   :  { %v1748_v4 = vrot.slane %v1747_v47, 4  ;;  %v1740_v31 = vsel %vm1463_vm3, %v4143_v38, 0.0 }
0x174d   :  { %v1741_v36 = vrot.slane %v1740_v31, 4  ;;  %4156 = vpow2.f32 %v1736_v34 }
0x174e   :  { %v4145_v43 = vpop.eup %4144  ;;  %v1749_v51 = vadd.f32 %v1748_v4, %v1747_v47 }
0x174f   :  { %v4147_v0 = vpop.eup %4146  ;;  %v1742_v24 = vadd.f32 %v1741_v36, %v1740_v31  ;;  %v1761_v63 = vsel %vm1463_vm3, %v4145_v43, 0.0 }
0x1750   :  { %v4149_v23 = vpop.eup %4148  ;;  %v1750_v27 = vrot.slane %v1749_v51, 2  ;;  %v1762_v35 = vrot.slane %v1761_v63, 4  ;;  %v1754_v48 = vsel %vm1463_vm3, %v4147_v0, 0.0 }
0x1751   :  { %v1743_v25 = vrot.slane %v1742_v24, 2  ;;  %v1755_v17 = vrot.slane %v1754_v48, 4  ;;  %1181 = vrot.lane.b32.xlu1 %v4149_v23, %s4377_s2 }
0x1752   :  { %v4151_v50 = vpop.eup %4150  ;;  %v1751_v6 = vadd.f32 %v1750_v27, %v1749_v51  ;;  %v1763_v2 = vadd.f32 %v1762_v35, %v1761_v63 }
0x1753   :  { %v4153_v21 = vpop.eup %4152  ;;  %v1744_v46 = vadd.f32 %v1743_v25, %v1742_v24  ;;  %v1756_v41 = vadd.f32 %v1755_v17, %v1754_v48  ;;  %v1775_v44 = vsel %vm1463_vm3, %v4151_v50, 0.0 }
0x1754   :  { %v1752_v18 = vrot.slane %v1751_v6, 1  ;;  %v1764_v42 = vrot.slane %v1763_v2, 2  ;;  %v1776_v53 = vrot.slane %v1775_v44, 4  ;;  %v1768_v14 = vsel %vm1463_vm3, %v4153_v21, 0.0 }
0x1755   :  { %v1745_v38 = vrot.slane %v1744_v46, 1  ;;  %v1757_v47 = vrot.slane %v1756_v41, 2  ;;  %v1769_v4 = vrot.slane %v1768_v14, 4 }
0x1756   :  { %v4155_v31 = vpop.eup %4154  ;;  %v1753_v34 = vadd.f32 %v1752_v18, %v1751_v6  ;;  %v1765_v36 = vadd.f32 %v1764_v42, %v1763_v2  ;;  %v1777_v43 = vadd.f32 %v1776_v53, %v1775_v44 }
0x1757   :  { %v1746_v0 = vadd.f32 %v1745_v38, %v1744_v46  ;;  %v1758_v51 = vadd.f32 %v1757_v47, %v1756_v41  ;;  %v1770_v63 = vadd.f32 %v1769_v4, %v1768_v14  ;;  %v1789_v24 = vsel %vm1463_vm3, %v4155_v31, 0.0 }
0x1758   :  { %v1766_v23 = vrot.slane %v1765_v36, 1  ;;  %v1778_v27 = vrot.slane %v1777_v43, 2  ;;  %v1790_v35 = vrot.slane %v1789_v24, 4  ;;  %4158 = vlog2.f32 %v1753_v34 }
0x1759   :  { %v1759_v48 = vrot.slane %v1758_v51, 1  ;;  %v1771_v25 = vrot.slane %v1770_v63, 2  ;;  %4160 = vlog2.f32 %v1746_v0 }
0x175a   :  { %v1767_v17 = vadd.f32 %v1766_v23, %v1765_v36  ;;  %v1779_v50 = vadd.f32 %v1778_v27, %v1777_v43  ;;  %v1791_v21 = vadd.f32 %v1790_v35, %v1789_v24  ;;  %v4157_v26 = vpop.eup %4156 }
0x175b   :  { %v1760_v54 = vadd.f32 %v1759_v48, %v1758_v51  ;;  %v1772_v6 = vadd.f32 %v1771_v25, %v1770_v63  ;;  %v1782_v46 = vsel %vm1463_vm3, %v4157_v26, 0.0 }
0x175c   :  { %v1780_v2 = vrot.slane %v1779_v50, 1  ;;  %v1792_v44 = vrot.slane %v1791_v21, 2  ;;  %v1783_v18 = vrot.slane %v1782_v46, 4 }
0x175d   :  { %4162 = vlog2.f32 %v1760_v54  ;;  %v1773_v41 = vrot.slane %v1772_v6, 1 }
0x175e   :  { %4164 = vlog2.f32 %v1767_v17  ;;  %v1781_v42 = vadd.f32 %v1780_v2, %v1779_v50  ;;  %v1793_v53 = vadd.f32 %v1792_v44, %v1791_v21  ;;  %v1784_v38 = vadd.f32 %v1783_v18, %v1782_v46 }
0x175f   :  { %v1774_v14 = vadd.f32 %v1773_v41, %v1772_v6 }
0x1760   :  { %v1794_v47 = vrot.slane %v1793_v53, 1  ;;  %v1785_v4 = vrot.slane %v1784_v38, 2 }
0x1761   :  { %4166 = vlog2.f32 %v1774_v14 }
0x1762   :  { %4168 = vlog2.f32 %v1781_v42  ;;  %v1795_v31 = vadd.f32 %v1794_v47, %v1793_v53  ;;  %v1786_v34 = vadd.f32 %v1785_v4, %v1784_v38 }
0x1764   :  { %4170 = vlog2.f32 %v1795_v31  ;;  %v1787_v36 = vrot.slane %v1786_v34, 1 }
0x1765   :  { %v4159_v43 = vpop.eup %4158 }
0x1766   :  { %v4161_v0 = vpop.eup %4160  ;;  %v1788_v51 = vadd.f32 %v1787_v36, %v1786_v34  ;;  %v1799_v54 = vmul.f32 0.6931472, %v4159_v43 }
0x1767   :  { %v1797_v63 = vmul.f32 0.6931472, %v4161_v0 }
0x1768   :  { %4172 = vlog2.f32 %v1788_v51  ;;  %v1813_v35 = vadd.f32 %v1799_v54, %v5142_v61  ;;  %v598_v51 = vsel %vm588_vm13, %v4754_v5, 0.0  ;;  %v847_v54 = vsel %vm722_vm2, %v4871_v3, 0.0 }
0x1769   :  { %v1812_v48 = vadd.f32 %v1797_v63, %v5145_v1  ;;  %v969_v63 = vsel %vm588_vm13, %v4916_v56, 0.0  ;;  %v464_v5 = vsel %vm454_vm9, %v4685_v19, 0.0  ;;  %v1410_v19 = vadd.f32 %v5022_v11, %v5024_v13 }
0x176a   :  { %v4163_v26 = vpop.eup %4162 }
0x176b   :  { %v4165_v24 = vpop.eup %4164  ;;  %v1801_v23 = vmul.f32 0.6931472, %v4163_v26  ;;  %v1829_v2 = vsel %vm1828_vm5, %v1813_v35, %v1812_v48  ;;  %v732_v26 = vsel %vm722_vm2, %v4823_v45, 0.0  ;;  %v1091_v45 = vsel %vm454_vm9, %v4950_v58, 0.0 }
0x176c   :  { %v1803_v25 = vmul.f32 0.6931472, %v4165_v24 }
0x176d   :  { %v1814_v50 = vadd.f32 %v1801_v23, %v5154_v8 }
0x176e   :  { %v4167_v27 = vpop.eup %4166  ;;  %v1815_v44 = vadd.f32 %v1803_v25, %v5152_v16 }
0x176f   :  { %v4169_v17 = vpop.eup %4168  ;;  %v1805_v21 = vmul.f32 0.6931472, %v4167_v27  ;;  %v1831_v41 = vsel %vm1830_vm6, %v1814_v50, %v1829_v2 }
0x1770   :  { %v1807_v46 = vmul.f32 0.6931472, %v4169_v17  ;;  %v1833_v8 = vsel %vm1832_vm7, %v1815_v44, %v1831_v41 }
0x1771   :  { %v4171_v6 = vpop.eup %4170  ;;  %v1816_v61 = vadd.f32 %v1805_v21, %v5164_v40  ;;  %v6122_v21 = vld [vmem:[#allocation9_spill] sm:$0xff] }
0x1772   :  { %v1811_v1 = vmul.f32 0.6931472, %v4171_v6  ;;  %v1817_v42 = vadd.f32 %v1807_v46, %v5161_v57 }
0x1773   :  { %v1835_v53 = vsel %vm1834_vm10, %v1816_v61, %v1833_v8 }
0x1774   :  { %v1819_v38 = vadd.f32 %v1811_v1, %v5170_v32  ;;  %v1837_v47 = vsel %vm1836_vm11, %v1817_v42, %v1835_v53 }
0x1775   :  { %v4173_v18 = vpop.eup %4172 }
0x1776   :  { %v1809_v14 = vmul.f32 0.6931472, %v4173_v18 }
0x1778   :  { %v1818_v16 = vadd.f32 %v1809_v14, %v5173_v15 }
0x177a   :  { %v1839_v40 = vsel %vm1838_vm14, %v1818_v16, %v1837_v47 }
0x177b   :  { %v1841_v4 = vsel %vm1840_vm15, %v1819_v38, %v1839_v40 }
0x177c   :  { %v5203_v57 = vsel %vm447_vm8, %v1841_v4, %v5032_v59 }
0x177d   :  { %v1847_v31 = vrot.slane %v5203_v57, %v4559_v30  ;;  %v1854_v32 = vrot.slane %v5203_v57, %v4553_v28  ;;  %v1861_v15 = vrot.slane %v5203_v57, %v5042_v33  ;;  %v1868_v34 = vrot.slane %v5203_v57, %v5037_v55 }
0x177e   :  { %v1875_v7 = vrot.slane %v5203_v57, %v5052_v20  ;;  %v1882_v36 = vrot.slane %v5203_v57, %v5047_v12  ;;  %v1889_v43 = vrot.slane %v5203_v57, %v5062_v37  ;;  %v1896_v0 = vrot.slane %v5203_v57, %v5057_v22 }
0x177f   :  { %1849 = vbcast.lane.b32.xlu0 %v1847_v31, 256  ;;  %1856 = vbcast.lane.b32.xlu1 %v1854_v32, 256 }
0x1783   :  { %1863 = vbcast.lane.b32.xlu0 %v1861_v15, 256  ;;  %1870 = vbcast.lane.b32.xlu1 %v1868_v34, 256 }
0x1787   :  { %1877 = vbcast.lane.b32.xlu0 %v1875_v7, 256  ;;  %1884 = vbcast.lane.b32.xlu1 %v1882_v36, 256 }
0x178b   :  { %1891 = vbcast.lane.b32.xlu0 %v1889_v43, 256  ;;  %1898 = vbcast.lane.b32.xlu1 %v1896_v0, 256 }
0x178f   :  { %600 = vrot.lane.b32.xlu0 %v598_v51, %s4378_s9  ;;  %734 = vrot.lane.b32.xlu1 %v732_v26, %s4378_s9 }
0x1793   :  { %849 = vrot.lane.b32.xlu0 %v847_v54, %s4378_s9  ;;  %971 = vrot.lane.b32.xlu1 %v969_v63, %s4378_s9 }
0x1797   :  { %337 = vrot.lane.b32.xlu0 %v4626_v62, %s4378_s9  ;;  %466 = vrot.lane.b32.xlu1 %v464_v5, %s4378_s9  ;;  %v5254_v62 = vadd.f32 %v5029_v9, %v1410_v19 }
0x1799   :  { %v1916_v23 = vrot.slane %v5254_v62, %v5080_v52  ;;  %v1909_v58 = vcombine.high %v5254_v62, %v5254_v62 }
0x179b   :  { %1093 = vrot.lane.b32.xlu0 %v1091_v45, %s4378_s9  ;;  %v1924_v27 = vcombine.high %v1916_v23, %v1916_v23  ;;  %v1932_v48 = vrot.slane %v1916_v23, %v5080_v52 }
0x179d   :  { %v1946_v35 = vrot.slane %v1924_v27, %v5080_v52  ;;  %v1954_v13 = vcombine.high %v1932_v48, %v1932_v48  ;;  %v1961_v2 = vrot.slane %v1932_v48, %v4559_v30 }
0x179f   :  { %v1956_v11 = vcombine.high %v1946_v35, %v1946_v35  ;;  %v1965_v9 = vrot.slane %v1946_v35, %v4559_v30  ;;  %v1969_v8 = vrot.slane %v1954_v13, %v4559_v30 }
0x17a1   :  { %v1973_v18 = vrot.slane %v1956_v11, %v4559_v30 }
0x17c3   :  { %v1182_v3 = vpop.permute.xlu1 %1181 }
0x17c4   :  { %v1184_v56 = vmul.f32 %v5068_v60, %v1182_v3  ;;  %v1923_v60 = vrot.slane %v1909_v58, %v5080_v52 }
0x17c6   :  { %v1209_v24 = vsel %vm328_vm4, %v1184_v56, 0.0  ;;  %v1925_v25 = vcombine.high %v1923_v60, %v1923_v60  ;;  %v1939_v1 = vrot.slane %v1923_v60, %v5080_v52 }
0x17c7   :  { %1211 = vrot.lane.b32.xlu1 %v1209_v24, %s4378_s9 }
0x17c8   :  { %v1953_v61 = vrot.slane %v1925_v25, %v5080_v52  ;;  %v1955_v34 = vcombine.high %v1939_v1, %v1939_v1  ;;  %v1977_v51 = vrot.slane %v1939_v1, %v4559_v30 }
0x17ca   :  { %v1957_v15 = vcombine.high %v1953_v61, %v1953_v61  ;;  %v1981_v43 = vrot.slane %v1953_v61, %v4559_v30  ;;  %v1985_v60 = vrot.slane %v1955_v34, %v4559_v30 }
0x17cc   :  { %v1989_v27 = vrot.slane %v1957_v15, %v4559_v30 }
0x17f1   :  { %v1857_v17 = vpop.permute.xlu1 %1856  ;;  %v1850_v50 = vpop.permute.xlu0 %1849 }
0x17f2   :  { %v1901_v6 = vadd.f32 %v1857_v17, %v6122_v21  ;;  %v1900_v44 = vadd.f32 %v1850_v50, %v6122_v21 }
0x17f4   :  { %v5267_v46 = vadd.f32 %v1965_v9, %v1901_v6  ;;  %v5269_v41 = vadd.f32 %v1961_v2, %v1900_v44 }
0x17f5   :  { %v1871_v42 = vpop.permute.xlu1 %1870  ;;  %v1864_v53 = vpop.permute.xlu0 %1863 }
0x17f6   :  { %v2013_v14 = vsel %vm1463_vm3, %v5267_v46, -inf  ;;  %v2006_v38 = vsel %vm1463_vm3, %v5269_v41, -inf  ;;  %v1903_v16 = vadd.f32 %v1871_v42, %v6122_v21  ;;  %v1902_v47 = vadd.f32 %v1864_v53, %v6122_v21 }
0x17f7   :  { %v2014_v40 = vrot.slane %v2013_v14, 4  ;;  %v2007_v4 = vrot.slane %v2006_v38, 4 }
0x17f8   :  { %v5281_v31 = vadd.f32 %v1973_v18, %v1903_v16  ;;  %v5283_v32 = vadd.f32 %v1969_v8, %v1902_v47 }
0x17f9   :  { %v2015_v7 = vmax.f32 %v2013_v14, %v2014_v40  ;;  %v2008_v36 = vmax.f32 %v2006_v38, %v2007_v4  ;;  %v1885_v0 = vpop.permute.xlu1 %1884  ;;  %v1878_v26 = vpop.permute.xlu0 %1877 }
0x17fa   :  { %v2027_v54 = vsel %vm1463_vm3, %v5281_v31, -inf  ;;  %v2020_v63 = vsel %vm1463_vm3, %v5283_v32, -inf  ;;  %v1905_v5 = vadd.f32 %v1885_v0, %v6122_v21  ;;  %v1904_v45 = vadd.f32 %v1878_v26, %v6122_v21 }
0x17fb   :  { %v2016_v3 = vrot.slane %v2015_v7, 2  ;;  %v2009_v56 = vrot.slane %v2008_v36, 2  ;;  %v2028_v24 = vrot.slane %v2027_v54, 4  ;;  %v2021_v19 = vrot.slane %v2020_v63, 4 }
0x17fc   :  { %v5293_v23 = vadd.f32 %v1981_v43, %v1905_v5  ;;  %v5295_v58 = vadd.f32 %v1977_v51, %v1904_v45 }
0x17fd   :  { %v2017_v35 = vmax.f32 %v2015_v7, %v2016_v3  ;;  %v2010_v48 = vmax.f32 %v2008_v36, %v2009_v56  ;;  %v2029_v25 = vmax.f32 %v2027_v54, %v2028_v24  ;;  %v2022_v17 = vmax.f32 %v2020_v63, %v2021_v19  ;;  %v1899_v50 = vpop.permute.xlu1 %1898  ;;  %v1892_v11 = vpop.permute.xlu0 %1891 }
0x17fe   :  { %v2041_v13 = vsel %vm1463_vm3, %v5293_v23, -inf  ;;  %v2034_v9 = vsel %vm1463_vm3, %v5295_v58, -inf  ;;  %v1907_v6 = vadd.f32 %v1899_v50, %v6122_v21  ;;  %v1906_v2 = vadd.f32 %v1892_v11, %v6122_v21 }
0x17ff   :  { %v2018_v44 = vrot.slane %v2017_v35, 1  ;;  %v2011_v61 = vrot.slane %v2010_v48, 1  ;;  %v2030_v1 = vrot.slane %v2029_v25, 2  ;;  %v2023_v18 = vrot.slane %v2022_v17, 2 }
0x1800   :  { %v2042_v42 = vrot.slane %v2041_v13, 4  ;;  %v2035_v8 = vrot.slane %v2034_v9, 4  ;;  %v5305_v53 = vadd.f32 %v1989_v27, %v1907_v6  ;;  %v5307_v14 = vadd.f32 %v1985_v60, %v1906_v2 }
0x1801   :  { %v5309_v38 = vmax.f32 %v2017_v35, %v2018_v44  ;;  %v5311_v16 = vmax.f32 %v2010_v48, %v2011_v61  ;;  %v2031_v47 = vmax.f32 %v2029_v25, %v2030_v1  ;;  %v2024_v40 = vmax.f32 %v2022_v17, %v2023_v18  ;;  %v735_v4 = vpop.permute.xlu1 %734  ;;  %v601_v15 = vpop.permute.xlu0 %600 }
0x1802   :  { %v2043_v34 = vmax.f32 %v2041_v13, %v2042_v42  ;;  %v2036_v21 = vmax.f32 %v2034_v9, %v2035_v8  ;;  %v2055_v7 = vsel %vm1463_vm3, %v5305_v53, -inf  ;;  %v2048_v36 = vsel %vm1463_vm3, %v5307_v14, -inf  ;;  %738 = vst.msk [vmem:[#allocation3 + $0x20] sm:$0xff] %vm85_vm0, %v735_v4  ;;  %604 = vst.msk [vmem:[#allocation3 + $0x28] sm:$0xff] %vm85_vm0, %v601_v15 }
0x1803   :  { %v2063_v43 = vsub.f32 %v5267_v46, %v5309_v38  ;;  %v2062_v0 = vsub.f32 %v5269_v41, %v5311_v16  ;;  %v2032_v51 = vrot.slane %v2031_v47, 1  ;;  %v2025_v26 = vrot.slane %v2024_v40, 1 }
0x1804   :  { %v2044_v54 = vrot.slane %v2043_v34, 2  ;;  %v2037_v63 = vrot.slane %v2036_v21, 2  ;;  %v2056_v5 = vrot.slane %v2055_v7, 4  ;;  %v2049_v45 = vrot.slane %v2048_v36, 4 }
0x1805   :  { %v2072_v3 = vmul.f32 1.442695, %v2063_v43  ;;  %v2070_v56 = vmul.f32 1.442695, %v2062_v0  ;;  %v5323_v24 = vmax.f32 %v2031_v47, %v2032_v51  ;;  %v5325_v19 = vmax.f32 %v2024_v40, %v2025_v26  ;;  %v972_v27 = vpop.permute.xlu1 %971  ;;  %v850_v60 = vpop.permute.xlu0 %849 }
0x1806   :  { %v2045_v35 = vmax.f32 %v2043_v34, %v2044_v54  ;;  %v2038_v48 = vmax.f32 %v2036_v21, %v2037_v63  ;;  %v2057_v46 = vmax.f32 %v2055_v7, %v2056_v5  ;;  %v2050_v25 = vmax.f32 %v2048_v36, %v2049_v45  ;;  %975 = vst.msk [vmem:[#allocation2 + $0x28] sm:$0xff] %vm85_vm0, %v972_v27 }
0x1807   :  { %853 = vst.msk [vmem:[#allocation2 + $0x20] sm:$0xff] %vm85_vm0, %v850_v60  ;;  %4174 = vpow2.f32 %v2072_v3  ;;  %v2065_v41 = vsub.f32 %v5281_v31, %v5323_v24  ;;  %v2064_v17 = vsub.f32 %v5283_v32, %v5325_v19 }
0x1808   :  { %4176 = vpow2.f32 %v2070_v56  ;;  %v2046_v50 = vrot.slane %v2045_v35, 1  ;;  %v2039_v11 = vrot.slane %v2038_v48, 1  ;;  %v2058_v13 = vrot.slane %v2057_v46, 2 }
0x1809   :  { %v2076_v9 = vmul.f32 1.442695, %v2065_v41  ;;  %v2074_v6 = vmul.f32 1.442695, %v2064_v17  ;;  %v2051_v2 = vrot.slane %v2050_v25, 2  ;;  %v467_v44 = vpop.permute.xlu1 %466  ;;  %v338_v61 = vpop.permute.xlu0 %337  ;;  %v1246_v1 = vld [vmem:[#allocation3 + $0x20] sm:$0xff] }
0x180a   :  { %v5333_v18 = vmax.f32 %v2045_v35, %v2046_v50  ;;  %v5335_v42 = vmax.f32 %v2038_v48, %v2039_v11  ;;  %v2059_v8 = vmax.f32 %v2057_v46, %v2058_v13  ;;  %470 = vst.msk [vmem:[#allocation3 + $0x30] sm:$0xff] %vm85_vm0, %v467_v44  ;;  %341 = vst.msk [vmem:[#allocation3 + $0x38] sm:$0xff] %vm85_vm0, %v338_v61  ;;  %v1247_v31 = vld [vmem:[#allocation3 + $0x28] sm:$0xff] }
0x180b   :  { %4178 = vpow2.f32 %v2076_v9  ;;  %v2052_v32 = vmax.f32 %v2050_v25, %v2051_v2  ;;  %v1252_v47 = vpack.c.bf16 %v1247_v31, %v1246_v1 }
0x180c   :  { %4180 = vpow2.f32 %v2074_v6  ;;  %v2067_v40 = vsub.f32 %v5293_v23, %v5333_v18  ;;  %v2066_v4 = vsub.f32 %v5295_v58, %v5335_v42  ;;  %v2060_v15 = vrot.slane %v2059_v8, 1 }
0x180d   :  { %v2053_v34 = vrot.slane %v2052_v32, 1  ;;  %3969 = vmatprep.mubr.msk.bf16.mxu0 %vm85_vm0, %v1252_v47  ;;  %v1094_v21 = vpop.permute.xlu0 %1093  ;;  %v1235_v36 = vld [vmem:[#allocation2 + $0x28] sm:$0xff] }
0x180e   :  { %v1234_v7 = vld [vmem:[#allocation2 + $0x20] sm:$0xff]  ;;  %v2080_v43 = vmul.f32 1.442695, %v2067_v40  ;;  %v2078_v0 = vmul.f32 1.442695, %v2066_v4  ;;  %v5344_v51 = vmax.f32 %v2059_v8, %v2060_v15  ;;  %1097 = vst.msk [vmem:[#allocation2 + $0x30] sm:$0xff] %vm85_vm0, %v1094_v21 }
0x180f   :  { %v1240_v26 = vpack.c.bf16 %v1235_v36, %v1234_v7  ;;  %v5347_v54 = vmax.f32 %v2052_v32, %v2053_v34 }
0x1810   :  { %4182 = vpow2.f32 %v2080_v43  ;;  %v2069_v23 = vsub.f32 %v5305_v53, %v5344_v51 }
0x1811   :  { %3981 = vmatprep.mubr.msk.bf16.mxu1 %vm85_vm0, %v1240_v26  ;;  %4184 = vpow2.f32 %v2078_v0  ;;  %v2068_v58 = vsub.f32 %v5307_v14, %v5347_v54  ;;  %v1248_v63 = vld [vmem:[#allocation3 + $0x30] sm:$0xff]  ;;  %v1249_v5 = vld [vmem:[#allocation3 + $0x38] sm:$0xff] }
0x1812   :  { %v2084_v45 = vmul.f32 1.442695, %v2069_v23  ;;  %v1253_v3 = vpack.c.bf16 %v1249_v5, %v1248_v63 }
0x1813   :  { %v2082_v56 = vmul.f32 1.442695, %v2068_v58 }
0x1814   :  { %v4175_v27 = vpop.eup %4174  ;;  %4186 = vpow2.f32 %v2084_v45  ;;  %3970 = vmatmul.mubr.msk.bf16.gmra.mxu0 %vm85_vm0, %v1253_v3 }
0x1815   :  { %v4177_v60 = vpop.eup %4176  ;;  %v2093_v35 = vsel %vm1463_vm3, %v4175_v27, 0.0  ;;  %4188 = vpow2.f32 %v2082_v56 }
0x1816   :  { %v2094_v53 = vrot.slane %v2093_v35, 4  ;;  %v2086_v48 = vsel %vm1463_vm3, %v4177_v60, 0.0 }
0x1817   :  { %v2087_v46 = vrot.slane %v2086_v48, 4 }
0x1818   :  { %v4179_v25 = vpop.eup %4178  ;;  %v2095_v41 = vadd.f32 %v2094_v53, %v2093_v35 }
0x1819   :  { %v4181_v14 = vpop.eup %4180  ;;  %v2088_v17 = vadd.f32 %v2087_v46, %v2086_v48  ;;  %v2107_v50 = vsel %vm1463_vm3, %v4179_v25, 0.0 }
0x181a   :  { %v2096_v11 = vrot.slane %v2095_v41, 2  ;;  %v2108_v13 = vrot.slane %v2107_v50, 4  ;;  %v2100_v9 = vsel %vm1463_vm3, %v4181_v14, 0.0 }
0x181b   :  { %v2089_v6 = vrot.slane %v2088_v17, 2  ;;  %v2101_v2 = vrot.slane %v2100_v9, 4 }
0x181c   :  { %v2097_v44 = vadd.f32 %v2096_v11, %v2095_v41  ;;  %v2109_v61 = vadd.f32 %v2108_v13, %v2107_v50 }
0x181d   :  { %v4183_v1 = vpop.eup %4182  ;;  %v2090_v8 = vadd.f32 %v2089_v6, %v2088_v17  ;;  %v2102_v31 = vadd.f32 %v2101_v2, %v2100_v9 }
0x181e   :  { %v4185_v32 = vpop.eup %4184  ;;  %v2098_v47 = vrot.slane %v2097_v44, 1  ;;  %v2110_v40 = vrot.slane %v2109_v61, 2  ;;  %v2121_v4 = vsel %vm1463_vm3, %v4183_v1, 0.0 }
0x181f   :  { %v2091_v15 = vrot.slane %v2090_v8, 1  ;;  %v2103_v34 = vrot.slane %v2102_v31, 2  ;;  %v2122_v21 = vrot.slane %v2121_v4, 4  ;;  %v2114_v7 = vsel %vm1463_vm3, %v4185_v32, 0.0 }
0x1820   :  { %v2099_v36 = vadd.f32 %v2098_v47, %v2097_v44  ;;  %v2111_v43 = vadd.f32 %v2110_v40, %v2109_v61  ;;  %v2115_v0 = vrot.slane %v2114_v7, 4 }
0x1821   :  { %v4187_v26 = vpop.eup %4186  ;;  %v2092_v23 = vadd.f32 %v2091_v15, %v2090_v8  ;;  %v2104_v58 = vadd.f32 %v2103_v34, %v2102_v31  ;;  %v2123_v63 = vadd.f32 %v2122_v21, %v2121_v4 }
0x1822   :  { %v4189_v5 = vpop.eup %4188  ;;  %4190 = vlog2.f32 %v2099_v36  ;;  %v2112_v45 = vrot.slane %v2111_v43, 1  ;;  %v2116_v3 = vadd.f32 %v2115_v0, %v2114_v7  ;;  %v2135_v56 = vsel %vm1463_vm3, %v4187_v26, 0.0 }
0x1823   :  { %4192 = vlog2.f32 %v2092_v23  ;;  %v2105_v27 = vrot.slane %v2104_v58, 1  ;;  %v2124_v60 = vrot.slane %v2123_v63, 2  ;;  %v2136_v35 = vrot.slane %v2135_v56, 4 }
0x1824   :  { %v2113_v53 = vadd.f32 %v2112_v45, %v2111_v43  ;;  %v2117_v48 = vrot.slane %v2116_v3, 2  ;;  %v2128_v46 = vsel %vm1463_vm3, %v4189_v5, 0.0 }
0x1825   :  { %v2106_v25 = vadd.f32 %v2105_v27, %v2104_v58  ;;  %v2125_v41 = vadd.f32 %v2124_v60, %v2123_v63  ;;  %v2137_v14 = vadd.f32 %v2136_v35, %v2135_v56  ;;  %v2129_v17 = vrot.slane %v2128_v46, 4 }
0x1826   :  { %4194 = vlog2.f32 %v2113_v53  ;;  %v2118_v50 = vadd.f32 %v2117_v48, %v2116_v3 }
0x1827   :  { %4196 = vlog2.f32 %v2106_v25  ;;  %v2126_v11 = vrot.slane %v2125_v41, 1  ;;  %v2138_v13 = vrot.slane %v2137_v14, 2  ;;  %v2130_v9 = vadd.f32 %v2129_v17, %v2128_v46  ;;  %v1236_v17 = vld [vmem:[#allocation2 + $0x30] sm:$0xff] }
0x1828   :  { %v2119_v6 = vrot.slane %v2118_v50, 1 }
0x1829   :  { %v2127_v2 = vadd.f32 %v2126_v11, %v2125_v41  ;;  %v2139_v44 = vadd.f32 %v2138_v13, %v2137_v14  ;;  %v2131_v61 = vrot.slane %v2130_v9, 2 }
0x182a   :  { %v2120_v1 = vadd.f32 %v2119_v6, %v2118_v50 }
0x182b   :  { %4198 = vlog2.f32 %v2127_v2  ;;  %v2140_v8 = vrot.slane %v2139_v44, 1  ;;  %v2132_v31 = vadd.f32 %v2131_v61, %v2130_v9 }
0x182c   :  { %4200 = vlog2.f32 %v2120_v1 }
0x182d   :  { %v2141_v32 = vadd.f32 %v2140_v8, %v2139_v44  ;;  %v2133_v47 = vrot.slane %v2132_v31, 1 }
0x182f   :  { %v4191_v40 = vpop.eup %4190  ;;  %4202 = vlog2.f32 %v2141_v32  ;;  %v2134_v4 = vadd.f32 %v2133_v47, %v2132_v31  ;;  %v6124_v31 = vld [vmem:[#allocation6_spill] sm:$0xff]  ;;  %v6125_v32 = vld [vmem:[#allocation7_spill] sm:$0xff] }
0x1830   :  { %v4193_v15 = vpop.eup %4192  ;;  %v2145_v34 = vmul.f32 0.6931472, %v4191_v40  ;;  %v1413_v47 = vadd.f32 %v6125_v32, %v6124_v31  ;;  %v5406_v40 = vld [vmem:[%s6106_s5] ss:$0 sm:$0xff] }
0x1831   :  { %4204 = vlog2.f32 %v2134_v4  ;;  %v2143_v21 = vmul.f32 0.6931472, %v4193_v15 }
0x1832   :  { %v2159_v0 = vadd.f32 %v2145_v34, %v5309_v38  ;;  %v5409_v4 = vadd.f32 %v5406_v40, %v1413_v47 }
0x1833   :  { %v4195_v7 = vpop.eup %4194  ;;  %v2158_v26 = vadd.f32 %v2143_v21, %v5311_v16 }
0x1834   :  { %v4197_v36 = vpop.eup %4196  ;;  %v2149_v23 = vmul.f32 0.6931472, %v4195_v7  ;;  %v2255_v15 = vrot.slane %v5409_v4, %v5080_v52  ;;  %v2248_v34 = vcombine.high %v5409_v4, %v5409_v4 }
0x1835   :  { %v2147_v43 = vmul.f32 0.6931472, %v4197_v36  ;;  %v2174_v3 = vsel %vm1828_vm5, %v2159_v0, %v2158_v26 }
0x1836   :  { %v2161_v56 = vadd.f32 %v2149_v23, %v5323_v24  ;;  %v2263_v21 = vcombine.high %v2255_v15, %v2255_v15  ;;  %v2262_v7 = vrot.slane %v2248_v34, %v5080_v52 }
0x1837   :  { %v2160_v58 = vadd.f32 %v2147_v43, %v5325_v19  ;;  %v2271_v43 = vrot.slane %v2255_v15, %v5080_v52 }
0x1838   :  { %v4199_v63 = vpop.eup %4198  ;;  %v2285_v36 = vrot.slane %v2263_v21, %v5080_v52  ;;  %v2264_v0 = vcombine.high %v2262_v7, %v2262_v7 }
0x1839   :  { %v1212_v5 = vpop.permute.xlu1 %1211  ;;  %v4201_v45 = vpop.eup %4200  ;;  %v2153_v27 = vmul.f32 0.6931472, %v4199_v63  ;;  %v2175_v35 = vsel %vm1830_vm6, %v2160_v58, %v2174_v3  ;;  %v2293_v63 = vcombine.high %v2271_v43, %v2271_v43 }
0x183a   :  { %1215 = vst.msk [vmem:[#allocation2 + $0x38] sm:$0xff] %vm85_vm0, %v1212_v5  ;;  %v2151_v60 = vmul.f32 0.6931472, %v4201_v45  ;;  %v2176_v46 = vsel %vm1832_vm7, %v2161_v56, %v2175_v35  ;;  %v2295_v58 = vcombine.high %v2285_v36, %v2285_v36  ;;  %v2304_v5 = vrot.slane %v2285_v36, %v4559_v30  ;;  %v5422_v45 = vld [vmem:[%s6107_s6] sm:$0xff] }
0x183b   :  { %v2163_v19 = vadd.f32 %v2153_v27, %v5333_v18  ;;  %v2300_v56 = vrot.slane %v2271_v43, %v4559_v30 }
0x183c   :  { %v4203_v53 = vpop.eup %4202  ;;  %v2162_v38 = vadd.f32 %v2151_v60, %v5335_v42 }
0x183d   :  { %v2157_v16 = vmul.f32 0.6931472, %v4203_v53  ;;  %v2292_v53 = vrot.slane %v2264_v0, %v5080_v52 }
0x183e   :  { %v4205_v48 = vpop.eup %4204  ;;  %v2177_v25 = vsel %vm1834_vm10, %v2162_v38, %v2176_v46  ;;  %v2278_v38 = vrot.slane %v2262_v7, %v5080_v52 }
0x183f   :  { %v2155_v41 = vmul.f32 0.6931472, %v4205_v48  ;;  %v2165_v14 = vadd.f32 %v2157_v16, %v5344_v51  ;;  %v2178_v13 = vsel %vm1836_vm11, %v2163_v19, %v2177_v25  ;;  %v2312_v16 = vrot.slane %v2295_v58, %v4559_v30 }
0x1840   :  { %v2308_v19 = vrot.slane %v2293_v63, %v4559_v30 }
0x1841   :  { %v1237_v24 = vld [vmem:[#allocation2 + $0x38] sm:$0xff]  ;;  %v2164_v50 = vadd.f32 %v2155_v41, %v5347_v54 }
0x1842   :  { %v1241_v11 = vpack.c.bf16 %v1237_v24, %v1236_v17 }
0x1843   :  { %v2179_v42 = vsel %vm1838_vm14, %v2164_v50, %v2178_v13 }
0x1844   :  { %3982 = vmatmul.mubr.msk.bf16.gmra.mxu1 %vm85_vm0, %v1241_v11  ;;  %v2180_v18 = vsel %vm1840_vm15, %v2165_v14, %v2179_v42  ;;  %v2296_v42 = vcombine.high %v2292_v53, %v2292_v53  ;;  %vm3891_vm0 = vcmask 7168  }
0x1845   :  { %v5383_v6 = vsel %vm581_vm12, %v2180_v18, %v5203_v57  ;;  %v2294_v18 = vcombine.high %v2278_v38, %v2278_v38 }
0x1846   :  { %v2193_v51 = vrot.slane %v5383_v6, %v4553_v28  ;;  %v2186_v54 = vrot.slane %v5383_v6, %v4559_v30  ;;  %v2207_v2 = vrot.slane %v5383_v6, %v5037_v55  ;;  %v2200_v44 = vrot.slane %v5383_v6, %v5042_v33 }
0x1847   :  { %v2221_v57 = vrot.slane %v5383_v6, %v5047_v12  ;;  %v2214_v61 = vrot.slane %v5383_v6, %v5052_v20  ;;  %v2235_v1 = vrot.slane %v5383_v6, %v5057_v22  ;;  %v2228_v8 = vrot.slane %v5383_v6, %v5062_v37 }
0x1848   :  { %2195 = vbcast.lane.b32.xlu1 %v2193_v51, 256  ;;  %2188 = vbcast.lane.b32.xlu0 %v2186_v54, 256  ;;  %v2320_v54 = vrot.slane %v2292_v53, %v4559_v30  ;;  %v2328_v36 = vrot.slane %v2296_v42, %v4559_v30  ;;  %v2324_v43 = vrot.slane %v2294_v18, %v4559_v30 }
0x184c   :  { %2209 = vbcast.lane.b32.xlu1 %v2207_v2, 256  ;;  %2202 = vbcast.lane.b32.xlu0 %v2200_v44, 256  ;;  %v2316_v44 = vrot.slane %v2278_v38, %v4559_v30 }
0x1850   :  { %2223 = vbcast.lane.b32.xlu1 %v2221_v57, 256  ;;  %2216 = vbcast.lane.b32.xlu0 %v2214_v61, 256 }
0x1854   :  { %2237 = vbcast.lane.b32.xlu1 %v2235_v1, 256  ;;  %2230 = vbcast.lane.b32.xlu0 %v2228_v8, 256 }
0x18ba   :  { %v2196_v26 = vpop.permute.xlu1 %2195  ;;  %v2189_v23 = vpop.permute.xlu0 %2188 }
0x18bb   :  { %v2240_v3 = vadd.f32 %v5422_v45, %v2196_v26  ;;  %v2239_v27 = vadd.f32 %v5422_v45, %v2189_v23 }
0x18bd   :  { %v5427_v60 = vadd.f32 %v2304_v5, %v2240_v3  ;;  %v5429_v35 = vadd.f32 %v2300_v56, %v2239_v27 }
0x18be   :  { %v2210_v48 = vpop.permute.xlu1 %2209  ;;  %v2203_v46 = vpop.permute.xlu0 %2202 }
0x18bf   :  { %v2352_v25 = vsel %vm1463_vm3, %v5427_v60, -inf  ;;  %v2345_v41 = vsel %vm1463_vm3, %v5429_v35, -inf  ;;  %v2242_v14 = vadd.f32 %v5422_v45, %v2210_v48  ;;  %v2241_v17 = vadd.f32 %v5422_v45, %v2203_v46 }
0x18c0   :  { %v2353_v24 = vrot.slane %v2352_v25, 4  ;;  %v2346_v50 = vrot.slane %v2345_v41, 4 }
0x18c1   :  { %v5441_v11 = vadd.f32 %v2312_v16, %v2242_v14  ;;  %v5443_v13 = vadd.f32 %v2308_v19, %v2241_v17 }
0x18c2   :  { %v2354_v9 = vmax.f32 %v2352_v25, %v2353_v24  ;;  %v2347_v51 = vmax.f32 %v2345_v41, %v2346_v50  ;;  %v2224_v2 = vpop.permute.xlu1 %2223  ;;  %v2217_v57 = vpop.permute.xlu0 %2216 }
0x18c3   :  { %v2366_v61 = vsel %vm1463_vm3, %v5441_v11, -inf  ;;  %v2359_v1 = vsel %vm1463_vm3, %v5443_v13, -inf  ;;  %v2244_v8 = vadd.f32 %v5422_v45, %v2224_v2  ;;  %v2243_v31 = vadd.f32 %v5422_v45, %v2217_v57 }
0x18c4   :  { %v2355_v32 = vrot.slane %v2354_v9, 2  ;;  %v2348_v47 = vrot.slane %v2347_v51, 2  ;;  %v2367_v15 = vrot.slane %v2366_v61, 4  ;;  %v2360_v34 = vrot.slane %v2359_v1, 4 }
0x18c5   :  { %v5453_v21 = vadd.f32 %v2320_v54, %v2244_v8  ;;  %v5455_v7 = vadd.f32 %v2316_v44, %v2243_v31 }
0x18c6   :  { %v2356_v0 = vmax.f32 %v2354_v9, %v2355_v32  ;;  %v2349_v26 = vmax.f32 %v2347_v51, %v2348_v47  ;;  %v2368_v23 = vmax.f32 %v2366_v61, %v2367_v15  ;;  %v2361_v58 = vmax.f32 %v2359_v1, %v2360_v34  ;;  %v2238_v63 = vpop.permute.xlu1 %2237  ;;  %v2231_v5 = vpop.permute.xlu0 %2230 }
0x18c7   :  { %v2380_v3 = vsel %vm1463_vm3, %v5453_v21, -inf  ;;  %v2373_v56 = vsel %vm1463_vm3, %v5455_v7, -inf  ;;  %v2246_v27 = vadd.f32 %v5422_v45, %v2238_v63  ;;  %v2245_v53 = vadd.f32 %v5422_v45, %v2231_v5 }
0x18c8   :  { %v2357_v38 = vrot.slane %v2356_v0, 1  ;;  %v2350_v16 = vrot.slane %v2349_v26, 1  ;;  %v2369_v48 = vrot.slane %v2368_v23, 2  ;;  %v2362_v19 = vrot.slane %v2361_v58, 2 }
0x18c9   :  { %v2381_v46 = vrot.slane %v2380_v3, 4  ;;  %v2374_v25 = vrot.slane %v2373_v56, 4  ;;  %v2344_v41 = vadd.f32 %v2328_v36, %v2246_v27  ;;  %v2343_v14 = vadd.f32 %v2324_v43, %v2245_v53 }
0x18ca   :  { %v5465_v17 = vmax.f32 %v2356_v0, %v2357_v38  ;;  %v5467_v24 = vmax.f32 %v2349_v26, %v2350_v16  ;;  %v2370_v50 = vmax.f32 %v2368_v23, %v2369_v48  ;;  %v2363_v42 = vmax.f32 %v2361_v58, %v2362_v19 }
0x18cb   :  { %v2382_v18 = vmax.f32 %v2380_v3, %v2381_v46  ;;  %v2375_v9 = vmax.f32 %v2373_v56, %v2374_v25  ;;  %v2394_v51 = vsel %vm1463_vm3, %v2344_v41, -inf  ;;  %v2387_v54 = vsel %vm1463_vm3, %v2343_v14, -inf }
0x18cc   :  { %v2402_v2 = vsub.f32 %v5427_v60, %v5465_v17  ;;  %v2401_v44 = vsub.f32 %v5429_v35, %v5467_v24  ;;  %v2371_v57 = vrot.slane %v2370_v50, 1  ;;  %v2364_v61 = vrot.slane %v2363_v42, 1 }
0x18cd   :  { %v2383_v1 = vrot.slane %v2382_v18, 2  ;;  %v2376_v8 = vrot.slane %v2375_v9, 2  ;;  %v2395_v31 = vrot.slane %v2394_v51, 4  ;;  %v2388_v32 = vrot.slane %v2387_v54, 4 }
0x18ce   :  { %v2411_v47 = vmul.f32 1.442695, %v2402_v2  ;;  %v2409_v15 = vmul.f32 1.442695, %v2401_v44  ;;  %v5475_v34 = vmax.f32 %v2370_v50, %v2371_v57  ;;  %v5477_v36 = vmax.f32 %v2363_v42, %v2364_v61 }
0x18cf   :  { %v2384_v43 = vmax.f32 %v2382_v18, %v2383_v1  ;;  %v2377_v0 = vmax.f32 %v2375_v9, %v2376_v8  ;;  %v2396_v26 = vmax.f32 %v2394_v51, %v2395_v31  ;;  %v2389_v23 = vmax.f32 %v2387_v54, %v2388_v32 }
0x18d0   :  { %4206 = vpow2.f32 %v2411_v47  ;;  %v2404_v60 = vsub.f32 %v5441_v11, %v5475_v34  ;;  %v2403_v35 = vsub.f32 %v5443_v13, %v5477_v36 }
0x18d1   :  { %4208 = vpow2.f32 %v2409_v15  ;;  %v2385_v58 = vrot.slane %v2384_v43, 1  ;;  %v2378_v63 = vrot.slane %v2377_v0, 1  ;;  %v2397_v5 = vrot.slane %v2396_v26, 2 }
0x18d2   :  { %v2415_v3 = vmul.f32 1.442695, %v2404_v60  ;;  %v2413_v56 = vmul.f32 1.442695, %v2403_v35  ;;  %v2390_v27 = vrot.slane %v2389_v23, 2 }
0x18d3   :  { %v5483_v53 = vmax.f32 %v2384_v43, %v2385_v58  ;;  %v5485_v38 = vmax.f32 %v2377_v0, %v2378_v63  ;;  %v2398_v16 = vmax.f32 %v2396_v26, %v2397_v5 }
0x18d4   :  { %4210 = vpow2.f32 %v2415_v3  ;;  %v2391_v48 = vmax.f32 %v2389_v23, %v2390_v27 }
0x18d5   :  { %4212 = vpow2.f32 %v2413_v56  ;;  %v2406_v11 = vsub.f32 %v5453_v21, %v5483_v53  ;;  %v2405_v13 = vsub.f32 %v5455_v7, %v5485_v38  ;;  %v2399_v19 = vrot.slane %v2398_v16, 1 }
0x18d6   :  { %v2392_v46 = vrot.slane %v2391_v48, 1 }
0x18d7   :  { %v2419_v25 = vmul.f32 1.442695, %v2406_v11  ;;  %v2417_v50 = vmul.f32 1.442695, %v2405_v13  ;;  %v5491_v42 = vmax.f32 %v2398_v16, %v2399_v19 }
0x18d8   :  { %v5493_v18 = vmax.f32 %v2391_v48, %v2392_v46 }
0x18d9   :  { %4214 = vpow2.f32 %v2419_v25  ;;  %v2408_v9 = vsub.f32 %v2344_v41, %v5491_v42 }
0x18da   :  { %4216 = vpow2.f32 %v2417_v50  ;;  %v2407_v51 = vsub.f32 %v2343_v14, %v5493_v18 }
0x18db   :  { %v2423_v54 = vmul.f32 1.442695, %v2408_v9 }
0x18dc   :  { %v2421_v2 = vmul.f32 1.442695, %v2407_v51 }
0x18dd   :  { %v4207_v21 = vpop.eup %4206  ;;  %4218 = vpow2.f32 %v2423_v54 }
0x18de   :  { %v4209_v44 = vpop.eup %4208  ;;  %v2432_v7 = vsel %vm1463_vm3, %v4207_v21, 0.0  ;;  %4220 = vpow2.f32 %v2421_v2 }
0x18df   :  { %v2433_v57 = vrot.slane %v2432_v7, 4  ;;  %v2425_v61 = vsel %vm1463_vm3, %v4209_v44, 0.0 }
0x18e0   :  { %v2426_v1 = vrot.slane %v2425_v61, 4 }
0x18e1   :  { %v4211_v8 = vpop.eup %4210  ;;  %v2434_v31 = vadd.f32 %v2433_v57, %v2432_v7 }
0x18e2   :  { %v4213_v32 = vpop.eup %4212  ;;  %v2427_v47 = vadd.f32 %v2426_v1, %v2425_v61  ;;  %v2446_v41 = vsel %vm1463_vm3, %v4211_v8, 0.0 }
0x18e3   :  { %v2435_v15 = vrot.slane %v2434_v31, 2  ;;  %v2447_v14 = vrot.slane %v2446_v41, 4  ;;  %v2439_v43 = vsel %vm1463_vm3, %v4213_v32, 0.0 }
0x18e4   :  { %v2428_v0 = vrot.slane %v2427_v47, 2  ;;  %v2440_v26 = vrot.slane %v2439_v43, 4 }
0x18e5   :  { %v2436_v23 = vadd.f32 %v2435_v15, %v2434_v31  ;;  %v2448_v60 = vadd.f32 %v2447_v14, %v2446_v41 }
0x18e6   :  { %v4215_v35 = vpop.eup %4214  ;;  %v2429_v58 = vadd.f32 %v2428_v0, %v2427_v47  ;;  %v2441_v63 = vadd.f32 %v2440_v26, %v2439_v43 }
0x18e7   :  { %v4217_v5 = vpop.eup %4216  ;;  %v2437_v3 = vrot.slane %v2436_v23, 1  ;;  %v2449_v56 = vrot.slane %v2448_v60, 2  ;;  %v2460_v27 = vsel %vm1463_vm3, %v4215_v35, 0.0 }
0x18e8   :  { %v2430_v16 = vrot.slane %v2429_v58, 1  ;;  %v2442_v48 = vrot.slane %v2441_v63, 2  ;;  %v2461_v11 = vrot.slane %v2460_v27, 4  ;;  %v2453_v13 = vsel %vm1463_vm3, %v4217_v5, 0.0 }
0x18e9   :  { %v2438_v19 = vadd.f32 %v2437_v3, %v2436_v23  ;;  %v2450_v46 = vadd.f32 %v2449_v56, %v2448_v60  ;;  %v2454_v25 = vrot.slane %v2453_v13, 4 }
0x18ea   :  { %v4219_v50 = vpop.eup %4218  ;;  %v2431_v9 = vadd.f32 %v2430_v16, %v2429_v58  ;;  %v2443_v51 = vadd.f32 %v2442_v48, %v2441_v63  ;;  %v2462_v54 = vadd.f32 %v2461_v11, %v2460_v27 }
0x18eb   :  { %v4221_v2 = vpop.eup %4220  ;;  %4222 = vlog2.f32 %v2438_v19  ;;  %v2451_v21 = vrot.slane %v2450_v46, 1  ;;  %v2455_v44 = vadd.f32 %v2454_v25, %v2453_v13  ;;  %v2474_v7 = vsel %vm1463_vm3, %v4219_v50, 0.0 }
0x18ec   :  { %4224 = vlog2.f32 %v2431_v9  ;;  %v2444_v57 = vrot.slane %v2443_v51, 1  ;;  %v2463_v61 = vrot.slane %v2462_v54, 2  ;;  %v2475_v1 = vrot.slane %v2474_v7, 4 }
0x18ed   :  { %v2452_v8 = vadd.f32 %v2451_v21, %v2450_v46  ;;  %v2456_v31 = vrot.slane %v2455_v44, 2  ;;  %v2467_v32 = vsel %vm1463_vm3, %v4221_v2, 0.0 }
0x18ee   :  { %v2445_v47 = vadd.f32 %v2444_v57, %v2443_v51  ;;  %v2464_v41 = vadd.f32 %v2463_v61, %v2462_v54  ;;  %v2476_v15 = vadd.f32 %v2475_v1, %v2474_v7  ;;  %v2468_v14 = vrot.slane %v2467_v32, 4 }
0x18ef   :  { %4226 = vlog2.f32 %v2452_v8  ;;  %v2457_v43 = vadd.f32 %v2456_v31, %v2455_v44  ;;  %v3971_v44 = vpop.f32.mrf.mxu0 }
0x18f0   :  { %4228 = vlog2.f32 %v2445_v47  ;;  %v2465_v0 = vrot.slane %v2464_v41, 1  ;;  %v2477_v26 = vrot.slane %v2476_v15, 2  ;;  %v2469_v23 = vadd.f32 %v2468_v14, %v2467_v32 }
0x18f1   :  { %v2458_v60 = vrot.slane %v2457_v43, 1 }
0x18f2   :  { %v2466_v35 = vadd.f32 %v2465_v0, %v2464_v41  ;;  %v2478_v58 = vadd.f32 %v2477_v26, %v2476_v15  ;;  %v2470_v63 = vrot.slane %v2469_v23, 2  ;;  %v1328_v41 = vpop.f32.mrf.mxu0 }
0x18f3   :  { %v2459_v5 = vadd.f32 %v2458_v60, %v2457_v43 }
0x18f4   :  { %4230 = vlog2.f32 %v2466_v35  ;;  %v2479_v3 = vrot.slane %v2478_v58, 1  ;;  %v2471_v56 = vadd.f32 %v2470_v63, %v2469_v23  ;;  %v3972_v35 = vpop.f32.mrf.mxu0 }
0x18f5   :  { %4232 = vlog2.f32 %v2459_v5 }
0x18f6   :  { %v2480_v27 = vadd.f32 %v2479_v3, %v2478_v58  ;;  %v2472_v16 = vrot.slane %v2471_v56, 1 }
0x18f8   :  { %v4223_v48 = vpop.eup %4222  ;;  %4234 = vlog2.f32 %v2480_v27  ;;  %v2473_v11 = vadd.f32 %v2472_v16, %v2471_v56 }
0x18f9   :  { %v4225_v13 = vpop.eup %4224  ;;  %v2484_v19 = vmul.f32 0.6931472, %v4223_v48 }
0x18fa   :  { %4236 = vlog2.f32 %v2473_v11  ;;  %v2482_v46 = vmul.f32 0.6931472, %v4225_v13 }
0x18fb   :  { %v2498_v51 = vadd.f32 %v2484_v19, %v5465_v17 }
0x18fc   :  { %v4227_v25 = vpop.eup %4226  ;;  %v2497_v54 = vadd.f32 %v2482_v46, %v5467_v24 }
0x18fd   :  { %v4229_v50 = vpop.eup %4228  ;;  %v2488_v2 = vmul.f32 0.6931472, %v4227_v25 }
0x18fe   :  { %v2486_v9 = vmul.f32 0.6931472, %v4229_v50  ;;  %v2513_v61 = vsel %vm1828_vm5, %v2498_v51, %v2497_v54 }
0x18ff   :  { %v2500_v1 = vadd.f32 %v2488_v2, %v5475_v34 }
0x1900   :  { %v2499_v21 = vadd.f32 %v2486_v9, %v5477_v36 }
0x1901   :  { %v4231_v7 = vpop.eup %4230 }
0x1902   :  { %v4233_v57 = vpop.eup %4232  ;;  %v2492_v8 = vmul.f32 0.6931472, %v4231_v7  ;;  %v2514_v47 = vsel %vm1830_vm6, %v2499_v21, %v2513_v61 }
0x1903   :  { %v2490_v31 = vmul.f32 0.6931472, %v4233_v57  ;;  %v2515_v26 = vsel %vm1832_vm7, %v2500_v1, %v2514_v47 }
0x1904   :  { %v3983_v32 = vpop.f32.mrf.mxu1  ;;  %v2502_v0 = vadd.f32 %v2492_v8, %v5483_v53 }
0x1905   :  { %v5511_v15 = vadd.f32 %v3983_v32, %v3971_v44  ;;  %v4235_v17 = vpop.eup %4234  ;;  %v2501_v24 = vadd.f32 %v2490_v31, %v5485_v38 }
0x1906   :  { %v1417_v14 = vpop.f32.mrf.mxu1  ;;  %v2496_v36 = vmul.f32 0.6931472, %v4235_v17 }
0x1907   :  { %v4237_v43 = vpop.eup %4236  ;;  %v2516_v34 = vsel %vm1834_vm10, %v2501_v24, %v2515_v26  ;;  %v1418_v46 = vadd.f32 %v1417_v14, %v1328_v41 }
0x1908   :  { %v3984_v23 = vpop.f32.mrf.mxu1  ;;  %v2494_v60 = vmul.f32 0.6931472, %v4237_v43  ;;  %v2504_v58 = vadd.f32 %v2496_v36, %v5491_v42  ;;  %v2517_v38 = vsel %vm1836_vm11, %v2502_v0, %v2516_v34 }
0x1909   :  { %v5518_v63 = vadd.f32 %v3984_v23, %v3972_v35  ;;  %v5546_v25 = vadd.f32 %v5406_v40, %v1418_v46 }
0x190a   :  { %v2503_v5 = vadd.f32 %v2494_v60, %v5493_v18 }
0x190b   :  { %v2594_v50 = vrot.slane %v5546_v25, %v5080_v52  ;;  %v2587_v9 = vcombine.high %v5546_v25, %v5546_v25 }
0x190c   :  { %v2518_v3 = vsel %vm1838_vm14, %v2503_v5, %v2517_v38 }
0x190d   :  { %v2519_v56 = vsel %vm1840_vm15, %v2504_v58, %v2518_v3  ;;  %v2602_v51 = vcombine.high %v2594_v50, %v2594_v50  ;;  %v2601_v54 = vrot.slane %v2587_v9, %v5080_v52  ;;  %v2610_v21 = vrot.slane %v2594_v50, %v5080_v52 }
0x190e   :  { %v5527_v27 = vsel %vm715_vm1, %v2519_v56, %v5383_v6 }
0x190f   :  { %v2532_v16 = vrot.slane %v5527_v27, %v4553_v28  ;;  %v2525_v42 = vrot.slane %v5527_v27, %v4559_v30  ;;  %v2546_v18 = vrot.slane %v5527_v27, %v5037_v55  ;;  %v2539_v48 = vrot.slane %v5527_v27, %v5042_v33 }
0x1910   :  { %v2560_v6 = vrot.slane %v5527_v27, %v5047_v12  ;;  %v2553_v11 = vrot.slane %v5527_v27, %v5052_v20  ;;  %v2574_v13 = vrot.slane %v5527_v27, %v5057_v22  ;;  %v2567_v19 = vrot.slane %v5527_v27, %v5062_v37 }
0x1911   :  { %2534 = vbcast.lane.b32.xlu1 %v2532_v16, 256  ;;  %2527 = vbcast.lane.b32.xlu0 %v2525_v42, 256  ;;  %v2624_v2 = vrot.slane %v2602_v51, %v5080_v52  ;;  %v2603_v44 = vcombine.high %v2601_v54, %v2601_v54  ;;  %v2632_v1 = vcombine.high %v2610_v21, %v2610_v21 }
0x1912   :  { %v2639_v32 = vrot.slane %v2610_v21, %v4559_v30  ;;  %v2617_v14 = vrot.slane %v2601_v54, %v5080_v52 }
0x1913   :  { %v2634_v61 = vcombine.high %v2624_v2, %v2624_v2  ;;  %v2643_v8 = vrot.slane %v2624_v2, %v4559_v30  ;;  %v2631_v24 = vrot.slane %v2603_v44, %v5080_v52  ;;  %v2647_v0 = vrot.slane %v2632_v1, %v4559_v30 }
0x1914   :  { %v2633_v53 = vcombine.high %v2617_v14, %v2617_v14 }
0x1915   :  { %2548 = vbcast.lane.b32.xlu1 %v2546_v18, 256  ;;  %2541 = vbcast.lane.b32.xlu0 %v2539_v48, 256  ;;  %v2651_v36 = vrot.slane %v2634_v61, %v4559_v30  ;;  %v2635_v56 = vcombine.high %v2631_v24, %v2631_v24  ;;  %v2659_v18 = vrot.slane %v2631_v24, %v4559_v30 }
0x1919   :  { %2562 = vbcast.lane.b32.xlu1 %v2560_v6, 256  ;;  %2555 = vbcast.lane.b32.xlu0 %v2553_v11, 256  ;;  %v2655_v6 = vrot.slane %v2617_v14, %v4559_v30 }
0x191d   :  { %2576 = vbcast.lane.b32.xlu1 %v2574_v13, 256  ;;  %2569 = vbcast.lane.b32.xlu0 %v2567_v19, 256 }
0x1983   :  { %v2535_v7 = vpop.permute.xlu1 %2534  ;;  %v2528_v57 = vpop.permute.xlu0 %2527 }
0x1984   :  { %v2579_v31 = vadd.f32 %v5422_v45, %v2535_v7  ;;  %v2578_v47 = vadd.f32 %v5422_v45, %v2528_v57  ;;  %v2667_v7 = vrot.slane %v2635_v56, %v4559_v30  ;;  %v2663_v57 = vrot.slane %v2633_v53, %v4559_v30 }
0x1986   :  { %v5559_v41 = vadd.f32 %v2643_v8, %v2579_v31  ;;  %v5561_v17 = vadd.f32 %v2639_v32, %v2578_v47 }
0x1987   :  { %v2549_v43 = vpop.permute.xlu1 %2548  ;;  %v2542_v26 = vpop.permute.xlu0 %2541 }
0x1988   :  { %v2691_v23 = vsel %vm1463_vm3, %v5559_v41, -inf  ;;  %v2684_v34 = vsel %vm1463_vm3, %v5561_v17, -inf  ;;  %v2581_v60 = vadd.f32 %v5422_v45, %v2549_v43  ;;  %v2580_v35 = vadd.f32 %v5422_v45, %v2542_v26 }
0x1989   :  { %v2692_v58 = vrot.slane %v2691_v23, 4  ;;  %v2685_v5 = vrot.slane %v2684_v34, 4 }
0x198a   :  { %v5573_v38 = vadd.f32 %v2651_v36, %v2581_v60  ;;  %v5575_v3 = vadd.f32 %v2647_v0, %v2580_v35 }
0x198b   :  { %v2693_v16 = vmax.f32 %v2691_v23, %v2692_v58  ;;  %v2686_v42 = vmax.f32 %v2684_v34, %v2685_v5  ;;  %v2563_v48 = vpop.permute.xlu1 %2562  ;;  %v2556_v11 = vpop.permute.xlu0 %2555 }
0x198c   :  { %v2705_v13 = vsel %vm1463_vm3, %v5573_v38, -inf  ;;  %v2698_v19 = vsel %vm1463_vm3, %v5575_v3, -inf  ;;  %v2583_v46 = vadd.f32 %v5422_v45, %v2563_v48  ;;  %v2582_v50 = vadd.f32 %v5422_v45, %v2556_v11 }
0x198d   :  { %v2694_v9 = vrot.slane %v2693_v16, 2  ;;  %v2687_v51 = vrot.slane %v2686_v42, 2  ;;  %v2706_v54 = vrot.slane %v2705_v13, 4  ;;  %v2699_v2 = vrot.slane %v2698_v19, 4 }
0x198e   :  { %v5585_v21 = vadd.f32 %v2659_v18, %v2583_v46  ;;  %v5587_v44 = vadd.f32 %v2655_v6, %v2582_v50 }
0x198f   :  { %v2695_v61 = vmax.f32 %v2693_v16, %v2694_v9  ;;  %v2688_v1 = vmax.f32 %v2686_v42, %v2687_v51  ;;  %v2707_v8 = vmax.f32 %v2705_v13, %v2706_v54  ;;  %v2700_v31 = vmax.f32 %v2698_v19, %v2699_v2  ;;  %v2577_v32 = vpop.permute.xlu1 %2576  ;;  %v2570_v47 = vpop.permute.xlu0 %2569 }
0x1990   :  { %v2719_v24 = vsel %vm1463_vm3, %v5585_v21, -inf  ;;  %v2712_v14 = vsel %vm1463_vm3, %v5587_v44, -inf  ;;  %v2585_v36 = vadd.f32 %v5422_v45, %v2577_v32  ;;  %v2584_v43 = vadd.f32 %v5422_v45, %v2570_v47 }
0x1991   :  { %v2696_v0 = vrot.slane %v2695_v61, 1  ;;  %v2689_v26 = vrot.slane %v2688_v1, 1  ;;  %v2708_v23 = vrot.slane %v2707_v8, 2  ;;  %v2701_v34 = vrot.slane %v2700_v31, 2 }
0x1992   :  { %v2720_v60 = vrot.slane %v2719_v24, 4  ;;  %v2713_v35 = vrot.slane %v2712_v14, 4  ;;  %v2683_v58 = vadd.f32 %v2667_v7, %v2585_v36  ;;  %v2682_v5 = vadd.f32 %v2663_v57, %v2584_v43 }
0x1993   :  { %v5597_v56 = vmax.f32 %v2695_v61, %v2696_v0  ;;  %v5599_v53 = vmax.f32 %v2688_v1, %v2689_v26  ;;  %v2709_v16 = vmax.f32 %v2707_v8, %v2708_v23  ;;  %v2702_v42 = vmax.f32 %v2700_v31, %v2701_v34 }
0x1994   :  { %v2721_v18 = vmax.f32 %v2719_v24, %v2720_v60  ;;  %v2714_v48 = vmax.f32 %v2712_v14, %v2713_v35  ;;  %v2733_v6 = vsel %vm1463_vm3, %v2683_v58, -inf  ;;  %v2726_v11 = vsel %vm1463_vm3, %v2682_v5, -inf }
0x1995   :  { %v2741_v13 = vsub.f32 %v5559_v41, %v5597_v56  ;;  %v2740_v19 = vsub.f32 %v5561_v17, %v5599_v53  ;;  %v2710_v46 = vrot.slane %v2709_v16, 1  ;;  %v2703_v50 = vrot.slane %v2702_v42, 1 }
0x1996   :  { %v2722_v9 = vrot.slane %v2721_v18, 2  ;;  %v2715_v51 = vrot.slane %v2714_v48, 2  ;;  %v2734_v54 = vrot.slane %v2733_v6, 4  ;;  %v2727_v2 = vrot.slane %v2726_v11, 4 }
0x1997   :  { %v2750_v7 = vmul.f32 1.442695, %v2741_v13  ;;  %v2748_v57 = vmul.f32 1.442695, %v2740_v19  ;;  %v5607_v61 = vmax.f32 %v2709_v16, %v2710_v46  ;;  %v5609_v1 = vmax.f32 %v2702_v42, %v2703_v50 }
0x1998   :  { %v2723_v8 = vmax.f32 %v2721_v18, %v2722_v9  ;;  %v2716_v31 = vmax.f32 %v2714_v48, %v2715_v51  ;;  %v2735_v32 = vmax.f32 %v2733_v6, %v2734_v54  ;;  %v2728_v47 = vmax.f32 %v2726_v11, %v2727_v2 }
0x1999   :  { %4238 = vpow2.f32 %v2750_v7  ;;  %v2743_v41 = vsub.f32 %v5573_v38, %v5607_v61  ;;  %v2742_v17 = vsub.f32 %v5575_v3, %v5609_v1 }
0x199a   :  { %4240 = vpow2.f32 %v2748_v57  ;;  %v2724_v24 = vrot.slane %v2723_v8, 1  ;;  %v2717_v14 = vrot.slane %v2716_v31, 1  ;;  %v2736_v36 = vrot.slane %v2735_v32, 2 }
0x199b   :  { %v2754_v43 = vmul.f32 1.442695, %v2743_v41  ;;  %v2752_v0 = vmul.f32 1.442695, %v2742_v17  ;;  %v2729_v26 = vrot.slane %v2728_v47, 2 }
0x199c   :  { %v5615_v23 = vmax.f32 %v2723_v8, %v2724_v24  ;;  %v5617_v34 = vmax.f32 %v2716_v31, %v2717_v14  ;;  %v2737_v60 = vmax.f32 %v2735_v32, %v2736_v36 }
0x199d   :  { %4242 = vpow2.f32 %v2754_v43  ;;  %v2730_v35 = vmax.f32 %v2728_v47, %v2729_v26 }
0x199e   :  { %4244 = vpow2.f32 %v2752_v0  ;;  %v2745_v38 = vsub.f32 %v5585_v21, %v5615_v23  ;;  %v2744_v3 = vsub.f32 %v5587_v44, %v5617_v34  ;;  %v2738_v16 = vrot.slane %v2737_v60, 1 }
0x199f   :  { %v2731_v42 = vrot.slane %v2730_v35, 1 }
0x19a0   :  { %v2758_v18 = vmul.f32 1.442695, %v2745_v38  ;;  %v2756_v48 = vmul.f32 1.442695, %v2744_v3  ;;  %v5623_v6 = vmax.f32 %v2737_v60, %v2738_v16 }
0x19a1   :  { %v5625_v11 = vmax.f32 %v2730_v35, %v2731_v42 }
0x19a2   :  { %4246 = vpow2.f32 %v2758_v18  ;;  %v2747_v13 = vsub.f32 %v2683_v58, %v5623_v6 }
0x19a3   :  { %4248 = vpow2.f32 %v2756_v48  ;;  %v2746_v19 = vsub.f32 %v2682_v5, %v5625_v11 }
0x19a4   :  { %v2762_v46 = vmul.f32 1.442695, %v2747_v13 }
0x19a5   :  { %v2760_v50 = vmul.f32 1.442695, %v2746_v19 }
0x19a6   :  { %v4239_v21 = vpop.eup %4238  ;;  %4250 = vpow2.f32 %v2762_v46 }
0x19a7   :  { %v4241_v9 = vpop.eup %4240  ;;  %v2771_v44 = vsel %vm1463_vm3, %v4239_v21, 0.0  ;;  %4252 = vpow2.f32 %v2760_v50 }
0x19a8   :  { %v2772_v51 = vrot.slane %v2771_v44, 4  ;;  %v2764_v54 = vsel %vm1463_vm3, %v4241_v9, 0.0 }
0x19a9   :  { %v2765_v2 = vrot.slane %v2764_v54, 4 }
0x19aa   :  { %v4243_v7 = vpop.eup %4242  ;;  %v2773_v57 = vadd.f32 %v2772_v51, %v2771_v44 }
0x19ab   :  { %v4245_v8 = vpop.eup %4244  ;;  %v2766_v31 = vadd.f32 %v2765_v2, %v2764_v54  ;;  %v2785_v58 = vsel %vm1463_vm3, %v4243_v7, 0.0 }
0x19ac   :  { %v2774_v32 = vrot.slane %v2773_v57, 2  ;;  %v2786_v5 = vrot.slane %v2785_v58, 4  ;;  %v2778_v47 = vsel %vm1463_vm3, %v4245_v8, 0.0 }
0x19ad   :  { %v2767_v41 = vrot.slane %v2766_v31, 2  ;;  %v2779_v17 = vrot.slane %v2778_v47, 4 }
0x19ae   :  { %v2775_v24 = vadd.f32 %v2774_v32, %v2773_v57  ;;  %v2787_v14 = vadd.f32 %v2786_v5, %v2785_v58 }
0x19af   :  { %v4247_v36 = vpop.eup %4246  ;;  %v2768_v43 = vadd.f32 %v2767_v41, %v2766_v31  ;;  %v2780_v0 = vadd.f32 %v2779_v17, %v2778_v47 }
0x19b0   :  { %v4249_v26 = vpop.eup %4248  ;;  %v2776_v60 = vrot.slane %v2775_v24, 1  ;;  %v2788_v35 = vrot.slane %v2787_v14, 2  ;;  %v2799_v38 = vsel %vm1463_vm3, %v4247_v36, 0.0 }
0x19b1   :  { %v2769_v3 = vrot.slane %v2768_v43, 1  ;;  %v2781_v16 = vrot.slane %v2780_v0, 2  ;;  %v2800_v42 = vrot.slane %v2799_v38, 4  ;;  %v2792_v18 = vsel %vm1463_vm3, %v4249_v26, 0.0 }
0x19b2   :  { %v2777_v48 = vadd.f32 %v2776_v60, %v2775_v24  ;;  %v2789_v13 = vadd.f32 %v2788_v35, %v2787_v14  ;;  %v2793_v19 = vrot.slane %v2792_v18, 4 }
0x19b3   :  { %v4251_v46 = vpop.eup %4250  ;;  %v2770_v50 = vadd.f32 %v2769_v3, %v2768_v43  ;;  %v2782_v21 = vadd.f32 %v2781_v16, %v2780_v0  ;;  %v2801_v9 = vadd.f32 %v2800_v42, %v2799_v38 }
0x19b4   :  { %v4253_v44 = vpop.eup %4252  ;;  %4254 = vlog2.f32 %v2777_v48  ;;  %v2790_v51 = vrot.slane %v2789_v13, 1  ;;  %v2794_v54 = vadd.f32 %v2793_v19, %v2792_v18  ;;  %v2813_v2 = vsel %vm1463_vm3, %v4251_v46, 0.0 }
0x19b5   :  { %4256 = vlog2.f32 %v2770_v50  ;;  %v2783_v7 = vrot.slane %v2782_v21, 1  ;;  %v2802_v57 = vrot.slane %v2801_v9, 2  ;;  %v2814_v8 = vrot.slane %v2813_v2, 4 }
0x19b6   :  { %v2791_v31 = vadd.f32 %v2790_v51, %v2789_v13  ;;  %v2795_v58 = vrot.slane %v2794_v54, 2  ;;  %v2806_v32 = vsel %vm1463_vm3, %v4253_v44, 0.0 }
0x19b7   :  { %v2784_v5 = vadd.f32 %v2783_v7, %v2782_v21  ;;  %v2803_v47 = vadd.f32 %v2802_v57, %v2801_v9  ;;  %v2815_v41 = vadd.f32 %v2814_v8, %v2813_v2  ;;  %v2807_v17 = vrot.slane %v2806_v32, 4 }
0x19b8   :  { %4258 = vlog2.f32 %v2791_v31  ;;  %v2796_v24 = vadd.f32 %v2795_v58, %v2794_v54 }
0x19b9   :  { %4260 = vlog2.f32 %v2784_v5  ;;  %v2804_v14 = vrot.slane %v2803_v47, 1  ;;  %v2816_v36 = vrot.slane %v2815_v41, 2  ;;  %v2808_v43 = vadd.f32 %v2807_v17, %v2806_v32 }
0x19ba   :  { %v2797_v0 = vrot.slane %v2796_v24, 1 }
0x19bb   :  { %v2805_v26 = vadd.f32 %v2804_v14, %v2803_v47  ;;  %v2817_v60 = vadd.f32 %v2816_v36, %v2815_v41  ;;  %v2809_v35 = vrot.slane %v2808_v43, 2 }
0x19bc   :  { %v2798_v38 = vadd.f32 %v2797_v0, %v2796_v24 }
0x19bd   :  { %4262 = vlog2.f32 %v2805_v26  ;;  %v2818_v3 = vrot.slane %v2817_v60, 1  ;;  %v2810_v16 = vadd.f32 %v2809_v35, %v2808_v43 }
0x19be   :  { %4264 = vlog2.f32 %v2798_v38 }
0x19bf   :  { %v2819_v42 = vadd.f32 %v2818_v3, %v2817_v60  ;;  %v2811_v18 = vrot.slane %v2810_v16, 1 }
0x19c1   :  { %v4255_v48 = vpop.eup %4254  ;;  %4266 = vlog2.f32 %v2819_v42  ;;  %v2812_v13 = vadd.f32 %v2811_v18, %v2810_v16  ;;  %v1420_v16 = vpop.f32.mrf.mxu1 }
0x19c2   :  { %v4257_v19 = vpop.eup %4256  ;;  %v2823_v46 = vmul.f32 0.6931472, %v4255_v48  ;;  %v1331_v42 = vpop.f32.mrf.mxu0 }
0x19c3   :  { %4268 = vlog2.f32 %v2812_v13  ;;  %v2821_v50 = vmul.f32 0.6931472, %v4257_v19  ;;  %v1421_v18 = vadd.f32 %v1420_v16, %v1331_v42 }
0x19c4   :  { %v2837_v51 = vadd.f32 %v2823_v46, %v5597_v56 }
0x19c5   :  { %v4259_v21 = vpop.eup %4258  ;;  %v2836_v54 = vadd.f32 %v2821_v50, %v5599_v53  ;;  %v5674_v48 = vadd.f32 %v5406_v40, %v1421_v18 }
0x19c6   :  { %v4261_v9 = vpop.eup %4260  ;;  %v2827_v2 = vmul.f32 0.6931472, %v4259_v21 }
0x19c7   :  { %v2825_v44 = vmul.f32 0.6931472, %v4261_v9  ;;  %v2852_v31 = vsel %vm1828_vm5, %v2837_v51, %v2836_v54  ;;  %v2933_v13 = vrot.slane %v5674_v48, %v5080_v52  ;;  %v2926_v19 = vcombine.high %v5674_v48, %v5674_v48 }
0x19c8   :  { %v2839_v58 = vadd.f32 %v2827_v2, %v5607_v61 }
0x19c9   :  { %v2838_v7 = vadd.f32 %v2825_v44, %v5609_v1  ;;  %v2941_v46 = vcombine.high %v2933_v13, %v2933_v13  ;;  %v2940_v50 = vrot.slane %v2926_v19, %v5080_v52  ;;  %v2949_v9 = vrot.slane %v2933_v13, %v5080_v52 }
0x19ca   :  { %v4263_v57 = vpop.eup %4262 }
0x19cb   :  { %v4265_v8 = vpop.eup %4264  ;;  %v2831_v32 = vmul.f32 0.6931472, %v4263_v57  ;;  %v2853_v47 = vsel %vm1830_vm6, %v2838_v7, %v2852_v31  ;;  %v2963_v21 = vrot.slane %v2941_v46, %v5080_v52  ;;  %v2942_v44 = vcombine.high %v2940_v50, %v2940_v50 }
0x19cc   :  { %v2829_v5 = vmul.f32 0.6931472, %v4265_v8  ;;  %v2854_v14 = vsel %vm1832_vm7, %v2839_v58, %v2853_v47  ;;  %v2971_v7 = vcombine.high %v2949_v9, %v2949_v9  ;;  %v2978_v8 = vrot.slane %v2949_v9, %v4559_v30 }
0x19cd   :  { %v2841_v53 = vadd.f32 %v2831_v32, %v5615_v23  ;;  %v2973_v2 = vcombine.high %v2963_v21, %v2963_v21  ;;  %v2982_v40 = vrot.slane %v2963_v21, %v4559_v30  ;;  %v2956_v47 = vrot.slane %v2940_v50, %v5080_v52 }
0x19ce   :  { %v4267_v41 = vpop.eup %4266  ;;  %v2840_v17 = vadd.f32 %v2829_v5, %v5617_v34  ;;  %v2970_v5 = vrot.slane %v2942_v44, %v5080_v52 }
0x19cf   :  { %v2835_v24 = vmul.f32 0.6931472, %v4267_v41  ;;  %v2990_v41 = vrot.slane %v2973_v2, %v4559_v30 }
0x19d0   :  { %v4269_v56 = vpop.eup %4268  ;;  %v2855_v1 = vsel %vm1834_vm10, %v2840_v17, %v2854_v14  ;;  %v5702_v14 = vld [vmem:[%s6107_s6] sm:$0xff] }
0x19d1   :  { %v2833_v36 = vmul.f32 0.6931472, %v4269_v56  ;;  %v2843_v43 = vadd.f32 %v2835_v24, %v5623_v6  ;;  %v2856_v0 = vsel %vm1836_vm11, %v2841_v53, %v2855_v1  ;;  %v2986_v24 = vrot.slane %v2971_v7, %v4559_v30 }
0x19d3   :  { %v2842_v61 = vadd.f32 %v2833_v36, %v5625_v11 }
0x19d5   :  { %v2857_v26 = vsel %vm1838_vm14, %v2842_v61, %v2856_v0 }
0x19d6   :  { %v2858_v60 = vsel %vm1840_vm15, %v2843_v43, %v2857_v26 }
0x19d7   :  { %v5655_v34 = vsel %vm722_vm2, %v2858_v60, %v5527_v27  ;;  %v2974_v60 = vcombine.high %v2970_v5, %v2970_v5 }
0x19d8   :  { %v2871_v23 = vrot.slane %v5655_v34, %v4553_v28  ;;  %v2864_v35 = vrot.slane %v5655_v34, %v4559_v30  ;;  %v2885_v6 = vrot.slane %v5655_v34, %v5037_v55  ;;  %v2878_v11 = vrot.slane %v5655_v34, %v5042_v33 }
0x19d9   :  { %v2899_v39 = vrot.slane %v5655_v34, %v5047_v12  ;;  %v2892_v27 = vrot.slane %v5655_v34, %v5052_v20  ;;  %v2913_v38 = vrot.slane %v5655_v34, %v5057_v22  ;;  %v2906_v3 = vrot.slane %v5655_v34, %v5062_v37 }
0x19da   :  { %2873 = vbcast.lane.b32.xlu1 %v2871_v23, 256  ;;  %2866 = vbcast.lane.b32.xlu0 %v2864_v35, 256  ;;  %v2972_v23 = vcombine.high %v2956_v47, %v2956_v47  ;;  %v3006_v44 = vrot.slane %v2974_v60, %v4559_v30 }
0x19de   :  { %2887 = vbcast.lane.b32.xlu1 %v2885_v6, 256  ;;  %2880 = vbcast.lane.b32.xlu0 %v2878_v11, 256  ;;  %v2998_v11 = vrot.slane %v2970_v5, %v4559_v30 }
0x19e2   :  { %2901 = vbcast.lane.b32.xlu1 %v2899_v39, 256  ;;  %2894 = vbcast.lane.b32.xlu0 %v2892_v27, 256  ;;  %v2994_v27 = vrot.slane %v2956_v47, %v4559_v30 }
0x19e6   :  { %2915 = vbcast.lane.b32.xlu1 %v2913_v38, 256  ;;  %2908 = vbcast.lane.b32.xlu0 %v2906_v3, 256 }
0x1a4c   :  { %v2874_v51 = vpop.permute.xlu1 %2873  ;;  %v2867_v54 = vpop.permute.xlu0 %2866 }
0x1a4d   :  { %v2918_v57 = vadd.f32 %v5422_v45, %v2874_v51  ;;  %v2917_v31 = vadd.f32 %v5422_v45, %v2867_v54  ;;  %v3002_v51 = vrot.slane %v2972_v23, %v4559_v30 }
0x1a4f   :  { %v5687_v58 = vadd.f32 %v2982_v40, %v2918_v57  ;;  %v5689_v32 = vadd.f32 %v2978_v8, %v2917_v31 }
0x1a50   :  { %v2888_v17 = vpop.permute.xlu1 %2887  ;;  %v2881_v56 = vpop.permute.xlu0 %2880 }
0x1a51   :  { %v3030_v53 = vsel %vm1463_vm3, %v5687_v58, -inf  ;;  %v3023_v45 = vsel %vm1463_vm3, %v5689_v32, -inf  ;;  %v2920_v1 = vadd.f32 %v5702_v14, %v2888_v17  ;;  %v2919_v36 = vadd.f32 %v5702_v14, %v2881_v56 }
0x1a52   :  { %v3031_v43 = vrot.slane %v3030_v53, 4  ;;  %v3024_v61 = vrot.slane %v3023_v45, 4 }
0x1a53   :  { %v5706_v0 = vadd.f32 %v2990_v41, %v2920_v1  ;;  %v5708_v26 = vadd.f32 %v2986_v24, %v2919_v36 }
0x1a54   :  { %v3032_v35 = vmax.f32 %v3030_v53, %v3031_v43  ;;  %v3025_v6 = vmax.f32 %v3023_v45, %v3024_v61  ;;  %v2902_v39 = vpop.permute.xlu1 %2901  ;;  %v2895_v38 = vpop.permute.xlu0 %2894 }
0x1a55   :  { %v3044_v3 = vsel %vm1463_vm3, %v5706_v0, -inf  ;;  %v3037_v16 = vsel %vm1463_vm3, %v5708_v26, -inf  ;;  %v2922_v42 = vadd.f32 %v5702_v14, %v2902_v39  ;;  %v2921_v18 = vadd.f32 %v5702_v14, %v2895_v38 }
0x1a56   :  { %v3033_v13 = vrot.slane %v3032_v35, 2  ;;  %v3026_v19 = vrot.slane %v3025_v6, 2  ;;  %v3045_v46 = vrot.slane %v3044_v3, 4  ;;  %v3038_v50 = vrot.slane %v3037_v16, 4 }
0x1a57   :  { %v5718_v21 = vadd.f32 %v2998_v11, %v2922_v42  ;;  %v5720_v9 = vadd.f32 %v2994_v27, %v2921_v18 }
0x1a58   :  { %v3034_v54 = vmax.f32 %v3032_v35, %v3033_v13  ;;  %v3027_v2 = vmax.f32 %v3025_v6, %v3026_v19  ;;  %v3046_v7 = vmax.f32 %v3044_v3, %v3045_v46  ;;  %v3039_v40 = vmax.f32 %v3037_v16, %v3038_v50  ;;  %v2916_v57 = vpop.permute.xlu1 %2915  ;;  %v2909_v8 = vpop.permute.xlu0 %2908 }
0x1a59   :  { %v3058_v31 = vsel %vm1463_vm3, %v5718_v21, -inf  ;;  %v3051_v5 = vsel %vm1463_vm3, %v5720_v9, -inf  ;;  %v2924_v47 = vadd.f32 %v5702_v14, %v2916_v57  ;;  %v2923_v41 = vadd.f32 %v5702_v14, %v2909_v8 }
0x1a5a   :  { %v3035_v17 = vrot.slane %v3034_v54, 1  ;;  %v3028_v24 = vrot.slane %v3027_v2, 1  ;;  %v3047_v56 = vrot.slane %v3046_v7, 2  ;;  %v3040_v53 = vrot.slane %v3039_v40, 2 }
0x1a5b   :  { %v3059_v45 = vrot.slane %v3058_v31, 4  ;;  %v3052_v1 = vrot.slane %v3051_v5, 4  ;;  %v3022_v36 = vadd.f32 %v3006_v44, %v2924_v47  ;;  %v3021_v43 = vadd.f32 %v3002_v51, %v2923_v41 }
0x1a5c   :  { %v5730_v61 = vmax.f32 %v3034_v54, %v3035_v17  ;;  %v5732_v60 = vmax.f32 %v3027_v2, %v3028_v24  ;;  %v3048_v23 = vmax.f32 %v3046_v7, %v3047_v56  ;;  %v3041_v35 = vmax.f32 %v3039_v40, %v3040_v53 }
0x1a5d   :  { %v3060_v6 = vmax.f32 %v3058_v31, %v3059_v45  ;;  %v3053_v11 = vmax.f32 %v3051_v5, %v3052_v1  ;;  %v3072_v39 = vsel %vm1463_vm3, %v3022_v36, -inf  ;;  %v3065_v27 = vsel %vm1463_vm3, %v3021_v43, -inf }
0x1a5e   :  { %v3080_v38 = vsub.f32 %v5687_v58, %v5730_v61  ;;  %v3079_v3 = vsub.f32 %v5689_v32, %v5732_v60  ;;  %v3049_v16 = vrot.slane %v3048_v23, 1  ;;  %v3042_v42 = vrot.slane %v3041_v35, 1 }
0x1a5f   :  { %v3061_v18 = vrot.slane %v3060_v6, 2  ;;  %v3054_v13 = vrot.slane %v3053_v11, 2  ;;  %v3073_v19 = vrot.slane %v3072_v39, 4  ;;  %v3066_v46 = vrot.slane %v3065_v27, 4 }
0x1a60   :  { %v3089_v50 = vmul.f32 1.442695, %v3080_v38  ;;  %v3087_v44 = vmul.f32 1.442695, %v3079_v3  ;;  %v5740_v51 = vmax.f32 %v3048_v23, %v3049_v16  ;;  %v5742_v54 = vmax.f32 %v3041_v35, %v3042_v42 }
0x1a61   :  { %v3062_v2 = vmax.f32 %v3060_v6, %v3061_v18  ;;  %v3055_v7 = vmax.f32 %v3053_v11, %v3054_v13  ;;  %v3074_v40 = vmax.f32 %v3072_v39, %v3073_v19  ;;  %v3067_v57 = vmax.f32 %v3065_v27, %v3066_v46 }
0x1a62   :  { %4270 = vpow2.f32 %v3089_v50  ;;  %v3082_v58 = vsub.f32 %v5706_v0, %v5740_v51  ;;  %v3081_v32 = vsub.f32 %v5708_v26, %v5742_v54 }
0x1a63   :  { %4272 = vpow2.f32 %v3087_v44  ;;  %v3063_v8 = vrot.slane %v3062_v2, 1  ;;  %v3056_v31 = vrot.slane %v3055_v7, 1  ;;  %v3075_v5 = vrot.slane %v3074_v40, 2 }
0x1a64   :  { %v3093_v47 = vmul.f32 1.442695, %v3082_v58  ;;  %v3091_v41 = vmul.f32 1.442695, %v3081_v32  ;;  %v3068_v17 = vrot.slane %v3067_v57, 2 }
0x1a65   :  { %v5748_v24 = vmax.f32 %v3062_v2, %v3063_v8  ;;  %v5750_v56 = vmax.f32 %v3055_v7, %v3056_v31  ;;  %v3076_v53 = vmax.f32 %v3074_v40, %v3075_v5 }
0x1a66   :  { %4274 = vpow2.f32 %v3093_v47  ;;  %v3069_v45 = vmax.f32 %v3067_v57, %v3068_v17 }
0x1a67   :  { %4276 = vpow2.f32 %v3091_v41  ;;  %v3084_v0 = vsub.f32 %v5718_v21, %v5748_v24  ;;  %v3083_v26 = vsub.f32 %v5720_v9, %v5750_v56  ;;  %v3077_v1 = vrot.slane %v3076_v53, 1 }
0x1a68   :  { %v3070_v23 = vrot.slane %v3069_v45, 1 }
0x1a69   :  { %v3097_v35 = vmul.f32 1.442695, %v3084_v0  ;;  %v3095_v6 = vmul.f32 1.442695, %v3083_v26  ;;  %v5756_v11 = vmax.f32 %v3076_v53, %v3077_v1 }
0x1a6a   :  { %v5758_v39 = vmax.f32 %v3069_v45, %v3070_v23 }
0x1a6b   :  { %4278 = vpow2.f32 %v3097_v35  ;;  %v3086_v27 = vsub.f32 %v3022_v36, %v5756_v11 }
0x1a6c   :  { %4280 = vpow2.f32 %v3095_v6  ;;  %v3085_v38 = vsub.f32 %v3021_v43, %v5758_v39 }
0x1a6d   :  { %v3101_v3 = vmul.f32 1.442695, %v3086_v27 }
0x1a6e   :  { %v3099_v16 = vmul.f32 1.442695, %v3085_v38 }
0x1a6f   :  { %v4271_v21 = vpop.eup %4270  ;;  %4282 = vpow2.f32 %v3101_v3 }
0x1a70   :  { %v4273_v42 = vpop.eup %4272  ;;  %v3110_v9 = vsel %vm1463_vm3, %v4271_v21, 0.0  ;;  %4284 = vpow2.f32 %v3099_v16 }
0x1a71   :  { %v3111_v18 = vrot.slane %v3110_v9, 4  ;;  %v3103_v13 = vsel %vm1463_vm3, %v4273_v42, 0.0 }
0x1a72   :  { %v3104_v19 = vrot.slane %v3103_v13, 4 }
0x1a73   :  { %v4275_v46 = vpop.eup %4274  ;;  %v3112_v50 = vadd.f32 %v3111_v18, %v3110_v9 }
0x1a74   :  { %v4277_v44 = vpop.eup %4276  ;;  %v3105_v2 = vadd.f32 %v3104_v19, %v3103_v13  ;;  %v3124_v36 = vsel %vm1463_vm3, %v4275_v46, 0.0 }
0x1a75   :  { %v3113_v7 = vrot.slane %v3112_v50, 2  ;;  %v3125_v43 = vrot.slane %v3124_v36, 4  ;;  %v3117_v40 = vsel %vm1463_vm3, %v4277_v44, 0.0 }
0x1a76   :  { %v3106_v57 = vrot.slane %v3105_v2, 2  ;;  %v3118_v58 = vrot.slane %v3117_v40, 4 }
0x1a77   :  { %v3114_v32 = vadd.f32 %v3113_v7, %v3112_v50  ;;  %v3126_v8 = vadd.f32 %v3125_v43, %v3124_v36 }
0x1a78   :  { %v4279_v31 = vpop.eup %4278  ;;  %v3107_v5 = vadd.f32 %v3106_v57, %v3105_v2  ;;  %v3119_v47 = vadd.f32 %v3118_v58, %v3117_v40 }
0x1a79   :  { %v4281_v41 = vpop.eup %4280  ;;  %v3115_v17 = vrot.slane %v3114_v32, 1  ;;  %v3127_v53 = vrot.slane %v3126_v8, 2  ;;  %v3138_v45 = vsel %vm1463_vm3, %v4279_v31, 0.0 }
0x1a7a   :  { %v3108_v0 = vrot.slane %v3107_v5, 1  ;;  %v3120_v26 = vrot.slane %v3119_v47, 2  ;;  %v3139_v1 = vrot.slane %v3138_v45, 4  ;;  %v3131_v23 = vsel %vm1463_vm3, %v4281_v41, 0.0 }
0x1a7b   :  { %v3116_v35 = vadd.f32 %v3115_v17, %v3114_v32  ;;  %v3128_v6 = vadd.f32 %v3127_v53, %v3126_v8  ;;  %v3132_v27 = vrot.slane %v3131_v23, 4 }
0x1a7c   :  { %v4283_v38 = vpop.eup %4282  ;;  %v3109_v3 = vadd.f32 %v3108_v0, %v3107_v5  ;;  %v3121_v16 = vadd.f32 %v3120_v26, %v3119_v47  ;;  %v3140_v21 = vadd.f32 %v3139_v1, %v3138_v45 }
0x1a7d   :  { %v4285_v42 = vpop.eup %4284  ;;  %4286 = vlog2.f32 %v3116_v35  ;;  %v3129_v9 = vrot.slane %v3128_v6, 1  ;;  %v3133_v18 = vadd.f32 %v3132_v27, %v3131_v23  ;;  %v3152_v13 = vsel %vm1463_vm3, %v4283_v38, 0.0 }
0x1a7e   :  { %4288 = vlog2.f32 %v3109_v3  ;;  %v3122_v19 = vrot.slane %v3121_v16, 1  ;;  %v3141_v46 = vrot.slane %v3140_v21, 2  ;;  %v3153_v50 = vrot.slane %v3152_v13, 4 }
0x1a7f   :  { %v3130_v44 = vadd.f32 %v3129_v9, %v3128_v6  ;;  %v3134_v2 = vrot.slane %v3133_v18, 2  ;;  %v3145_v36 = vsel %vm1463_vm3, %v4285_v42, 0.0 }
0x1a80   :  { %v3123_v7 = vadd.f32 %v3122_v19, %v3121_v16  ;;  %v3142_v43 = vadd.f32 %v3141_v46, %v3140_v21  ;;  %v3154_v40 = vadd.f32 %v3153_v50, %v3152_v13  ;;  %v3146_v57 = vrot.slane %v3145_v36, 4 }
0x1a81   :  { %4290 = vlog2.f32 %v3130_v44  ;;  %v3135_v58 = vadd.f32 %v3134_v2, %v3133_v18 }
0x1a82   :  { %4292 = vlog2.f32 %v3123_v7  ;;  %v3143_v32 = vrot.slane %v3142_v43, 1  ;;  %v3155_v8 = vrot.slane %v3154_v40, 2  ;;  %v3147_v31 = vadd.f32 %v3146_v57, %v3145_v36 }
0x1a83   :  { %v3136_v5 = vrot.slane %v3135_v58, 1 }
0x1a84   :  { %v3144_v47 = vadd.f32 %v3143_v32, %v3142_v43  ;;  %v3156_v41 = vadd.f32 %v3155_v8, %v3154_v40  ;;  %v3148_v17 = vrot.slane %v3147_v31, 2 }
0x1a85   :  { %v3137_v53 = vadd.f32 %v3136_v5, %v3135_v58 }
0x1a86   :  { %4294 = vlog2.f32 %v3144_v47  ;;  %v3157_v45 = vrot.slane %v3156_v41, 1  ;;  %v3149_v0 = vadd.f32 %v3148_v17, %v3147_v31 }
0x1a87   :  { %4296 = vlog2.f32 %v3137_v53 }
0x1a88   :  { %v3158_v26 = vadd.f32 %v3157_v45, %v3156_v41  ;;  %v3150_v1 = vrot.slane %v3149_v0, 1  ;;  %v5809_v45 = vld [vmem:[%s6106_s5] ss:$0 sm:$0xff] }
0x1a8a   :  { %v4287_v23 = vpop.eup %4286  ;;  %4298 = vlog2.f32 %v3158_v26  ;;  %v3151_v35 = vadd.f32 %v3150_v1, %v3149_v0  ;;  %v5813_v0 = vadd.f32 %v5809_v45, %v5511_v15 }
0x1a8b   :  { %v4289_v6 = vpop.eup %4288  ;;  %v3162_v27 = vmul.f32 0.6931472, %v4287_v23 }
0x1a8c   :  { %4300 = vlog2.f32 %v3151_v35  ;;  %v3160_v38 = vmul.f32 0.6931472, %v4289_v6  ;;  %v3272_v26 = vrot.slane %v5813_v0, %v5080_v52  ;;  %v3265_v1 = vcombine.high %v5813_v0, %v5813_v0 }
0x1a8d   :  { %v3176_v42 = vadd.f32 %v3162_v27, %v5730_v61 }
0x1a8e   :  { %v4291_v3 = vpop.eup %4290  ;;  %v3175_v9 = vadd.f32 %v3160_v38, %v5732_v60  ;;  %v3280_v23 = vcombine.high %v3272_v26, %v3272_v26  ;;  %v3279_v35 = vrot.slane %v3265_v1, %v5080_v52  ;;  %v3288_v27 = vrot.slane %v3272_v26, %v5080_v52 }
0x1a8f   :  { %v4293_v16 = vpop.eup %4292  ;;  %v3166_v18 = vmul.f32 0.6931472, %v4291_v3 }
0x1a90   :  { %v3164_v21 = vmul.f32 0.6931472, %v4293_v16  ;;  %v3191_v50 = vsel %vm1828_vm5, %v3176_v42, %v3175_v9  ;;  %v3302_v6 = vrot.slane %v3280_v23, %v5080_v52  ;;  %v3281_v38 = vcombine.high %v3279_v35, %v3279_v35 }
0x1a91   :  { %v3178_v44 = vadd.f32 %v3166_v18, %v5740_v51  ;;  %v3310_v42 = vcombine.high %v3288_v27, %v3288_v27  ;;  %v3317_v18 = vrot.slane %v3288_v27, %v4559_v30 }
0x1a92   :  { %v3177_v13 = vadd.f32 %v3164_v21, %v5742_v54  ;;  %v3312_v21 = vcombine.high %v3302_v6, %v3302_v6  ;;  %v3321_v15 = vrot.slane %v3302_v6, %v4559_v30 }
0x1a93   :  { %v4295_v19 = vpop.eup %4294 }
0x1a94   :  { %v4297_v46 = vpop.eup %4296  ;;  %v3170_v2 = vmul.f32 0.6931472, %v4295_v19  ;;  %v3192_v7 = vsel %vm1830_vm6, %v3177_v13, %v3191_v50  ;;  %v3309_v50 = vrot.slane %v3281_v38, %v5080_v52 }
0x1a95   :  { %v3168_v36 = vmul.f32 0.6931472, %v4297_v46  ;;  %v3193_v58 = vsel %vm1832_vm7, %v3178_v44, %v3192_v7  ;;  %v3295_v44 = vrot.slane %v3279_v35, %v5080_v52  ;;  %v3325_v7 = vrot.slane %v3310_v42, %v4559_v30 }
0x1a96   :  { %v3180_v60 = vadd.f32 %v3170_v2, %v5748_v24  ;;  %v3329_v2 = vrot.slane %v3312_v21, %v4559_v30 }
0x1a97   :  { %v4299_v43 = vpop.eup %4298  ;;  %v3179_v40 = vadd.f32 %v3168_v36, %v5750_v56 }
0x1a98   :  { %v3174_v57 = vmul.f32 0.6931472, %v4299_v43 }
0x1a99   :  { %v4301_v61 = vpop.eup %4300  ;;  %v3194_v54 = vsel %vm1834_vm10, %v3179_v40, %v3193_v58 }
0x1a9a   :  { %v3172_v32 = vmul.f32 0.6931472, %v4301_v61  ;;  %v3182_v8 = vadd.f32 %v3174_v57, %v5756_v11  ;;  %v3195_v31 = vsel %vm1836_vm11, %v3180_v60, %v3194_v54 }
0x1a9c   :  { %v3181_v51 = vadd.f32 %v3172_v32, %v5758_v39 }
0x1a9e   :  { %v3196_v5 = vsel %vm1838_vm14, %v3181_v51, %v3195_v31  ;;  %v3313_v51 = vcombine.high %v3309_v50, %v3309_v50  ;;  %v3311_v31 = vcombine.high %v3295_v44, %v3295_v44 }
0x1a9f   :  { %v3197_v47 = vsel %vm1840_vm15, %v3182_v8, %v3196_v5 }
0x1aa0   :  { %v5788_v56 = vsel %vm588_vm13, %v3197_v47, %v5655_v34  ;;  %v3345_v38 = vrot.slane %v3313_v51, %v4559_v30 }
0x1aa1   :  { %v3210_v24 = vrot.slane %v5788_v56, %v4553_v28  ;;  %v3203_v41 = vrot.slane %v5788_v56, %v4559_v30  ;;  %v3224_v11 = vrot.slane %v5788_v56, %v5037_v55  ;;  %v3217_v39 = vrot.slane %v5788_v56, %v5042_v33 }
0x1aa2   :  { %v3238_v29 = vrot.slane %v5788_v56, %v5047_v12  ;;  %v3231_v34 = vrot.slane %v5788_v56, %v5052_v20  ;;  %v3252_v17 = vrot.slane %v5788_v56, %v5057_v22  ;;  %v3245_v53 = vrot.slane %v5788_v56, %v5062_v37 }
0x1aa3   :  { %3212 = vbcast.lane.b32.xlu1 %v3210_v24, 256  ;;  %3205 = vbcast.lane.b32.xlu0 %v3203_v41, 256  ;;  %v3337_v24 = vrot.slane %v3309_v50, %v4559_v30 }
0x1aa7   :  { %3226 = vbcast.lane.b32.xlu1 %v3224_v11, 256  ;;  %3219 = vbcast.lane.b32.xlu0 %v3217_v39, 256  ;;  %v3333_v11 = vrot.slane %v3295_v44, %v4559_v30 }
0x1aab   :  { %3240 = vbcast.lane.b32.xlu1 %v3238_v29, 256  ;;  %3233 = vbcast.lane.b32.xlu0 %v3231_v34, 256 }
0x1aaf   :  { %3254 = vbcast.lane.b32.xlu1 %v3252_v17, 256  ;;  %3247 = vbcast.lane.b32.xlu0 %v3245_v53, 256 }
0x1b15   :  { %v3213_v3 = vpop.permute.xlu1 %3212  ;;  %v3206_v16 = vpop.permute.xlu0 %3205 }
0x1b16   :  { %v3257_v9 = vadd.f32 %v5702_v14, %v3213_v3  ;;  %v3256_v13 = vadd.f32 %v5702_v14, %v3206_v16  ;;  %v3341_v3 = vrot.slane %v3311_v31, %v4559_v30 }
0x1b18   :  { %v5826_v19 = vadd.f32 %v3321_v15, %v3257_v9  ;;  %v5828_v46 = vadd.f32 %v3317_v18, %v3256_v13 }
0x1b19   :  { %v3227_v36 = vpop.permute.xlu1 %3226  ;;  %v3220_v43 = vpop.permute.xlu0 %3219 }
0x1b1a   :  { %v3369_v40 = vsel %vm1463_vm3, %v5826_v19, -inf  ;;  %v3362_v57 = vsel %vm1463_vm3, %v5828_v46, -inf  ;;  %v3259_v61 = vadd.f32 %v5702_v14, %v3227_v36  ;;  %v3258_v60 = vadd.f32 %v5702_v14, %v3220_v43 }
0x1b1b   :  { %v3370_v58 = vrot.slane %v3369_v40, 4  ;;  %v3363_v54 = vrot.slane %v3362_v57, 4 }
0x1b1c   :  { %v5840_v32 = vadd.f32 %v3329_v2, %v3259_v61  ;;  %v5842_v8 = vadd.f32 %v3325_v7, %v3258_v60 }
0x1b1d   :  { %v3371_v5 = vmax.f32 %v3369_v40, %v3370_v58  ;;  %v3364_v47 = vmax.f32 %v3362_v57, %v3363_v54  ;;  %v3241_v41 = vpop.permute.xlu1 %3240  ;;  %v3234_v39 = vpop.permute.xlu0 %3233 }
0x1b1e   :  { %v3383_v29 = vsel %vm1463_vm3, %v5840_v32, -inf  ;;  %v3376_v34 = vsel %vm1463_vm3, %v5842_v8, -inf  ;;  %v3261_v17 = vadd.f32 %v5702_v14, %v3241_v41  ;;  %v3260_v53 = vadd.f32 %v5702_v14, %v3234_v39 }
0x1b1f   :  { %v3372_v26 = vrot.slane %v3371_v5, 2  ;;  %v3365_v1 = vrot.slane %v3364_v47, 2  ;;  %v3384_v23 = vrot.slane %v3383_v29, 4  ;;  %v3377_v35 = vrot.slane %v3376_v34, 4 }
0x1b20   :  { %v5852_v6 = vadd.f32 %v3337_v24, %v3261_v17  ;;  %v5854_v27 = vadd.f32 %v3333_v11, %v3260_v53 }
0x1b21   :  { %v3373_v16 = vmax.f32 %v3371_v5, %v3372_v26  ;;  %v3366_v21 = vmax.f32 %v3364_v47, %v3365_v1  ;;  %v3385_v42 = vmax.f32 %v3383_v29, %v3384_v23  ;;  %v3378_v15 = vmax.f32 %v3376_v34, %v3377_v35  ;;  %v3255_v9 = vpop.permute.xlu1 %3254  ;;  %v3248_v18 = vpop.permute.xlu0 %3247 }
0x1b22   :  { %v3397_v13 = vsel %vm1463_vm3, %v5852_v6, -inf  ;;  %v3390_v50 = vsel %vm1463_vm3, %v5854_v27, -inf  ;;  %v3263_v44 = vadd.f32 %v5702_v14, %v3255_v9  ;;  %v3262_v2 = vadd.f32 %v5702_v14, %v3248_v18 }
0x1b23   :  { %v3374_v36 = vrot.slane %v3373_v16, 1  ;;  %v3367_v7 = vrot.slane %v3366_v21, 1  ;;  %v3386_v43 = vrot.slane %v3385_v42, 2  ;;  %v3379_v40 = vrot.slane %v3378_v15, 2 }
0x1b24   :  { %v3398_v57 = vrot.slane %v3397_v13, 4  ;;  %v3391_v61 = vrot.slane %v3390_v50, 4  ;;  %v3361_v60 = vadd.f32 %v3345_v38, %v3263_v44  ;;  %v3360_v58 = vadd.f32 %v3341_v3, %v3262_v2 }
0x1b25   :  { %v5864_v54 = vmax.f32 %v3373_v16, %v3374_v36  ;;  %v5866_v51 = vmax.f32 %v3366_v21, %v3367_v7  ;;  %v3387_v31 = vmax.f32 %v3385_v42, %v3386_v43  ;;  %v3380_v5 = vmax.f32 %v3378_v15, %v3379_v40 }
0x1b26   :  { %v3399_v47 = vmax.f32 %v3397_v13, %v3398_v57  ;;  %v3392_v24 = vmax.f32 %v3390_v50, %v3391_v61  ;;  %v3411_v41 = vsel %vm1463_vm3, %v3361_v60, -inf  ;;  %v3404_v11 = vsel %vm1463_vm3, %v3360_v58, -inf }
0x1b27   :  { %v3419_v39 = vsub.f32 %v5826_v19, %v5864_v54  ;;  %v3418_v29 = vsub.f32 %v5828_v46, %v5866_v51  ;;  %v3388_v34 = vrot.slane %v3387_v31, 1  ;;  %v3381_v17 = vrot.slane %v3380_v5, 1 }
0x1b28   :  { %v3400_v53 = vrot.slane %v3399_v47, 2  ;;  %v3393_v26 = vrot.slane %v3392_v24, 2  ;;  %v3412_v1 = vrot.slane %v3411_v41, 4  ;;  %v3405_v23 = vrot.slane %v3404_v11, 4 }
0x1b29   :  { %v3428_v35 = vmul.f32 1.442695, %v3419_v39  ;;  %v3426_v38 = vmul.f32 1.442695, %v3418_v29  ;;  %v5874_v3 = vmax.f32 %v3387_v31, %v3388_v34  ;;  %v5876_v16 = vmax.f32 %v3380_v5, %v3381_v17 }
0x1b2a   :  { %v3401_v21 = vmax.f32 %v3399_v47, %v3400_v53  ;;  %v3394_v42 = vmax.f32 %v3392_v24, %v3393_v26  ;;  %v3413_v15 = vmax.f32 %v3411_v41, %v3412_v1  ;;  %v3406_v9 = vmax.f32 %v3404_v11, %v3405_v23 }
0x1b2b   :  { %4302 = vpow2.f32 %v3428_v35  ;;  %v3421_v19 = vsub.f32 %v5840_v32, %v5874_v3  ;;  %v3420_v46 = vsub.f32 %v5842_v8, %v5876_v16 }
0x1b2c   :  { %4304 = vpow2.f32 %v3426_v38  ;;  %v3402_v18 = vrot.slane %v3401_v21, 1  ;;  %v3395_v13 = vrot.slane %v3394_v42, 1  ;;  %v3414_v50 = vrot.slane %v3413_v15, 2 }
0x1b2d   :  { %v3432_v44 = vmul.f32 1.442695, %v3421_v19  ;;  %v3430_v2 = vmul.f32 1.442695, %v3420_v46  ;;  %v3407_v36 = vrot.slane %v3406_v9, 2 }
0x1b2e   :  { %v5882_v7 = vmax.f32 %v3401_v21, %v3402_v18  ;;  %v5884_v43 = vmax.f32 %v3394_v42, %v3395_v13  ;;  %v3415_v40 = vmax.f32 %v3413_v15, %v3414_v50 }
0x1b2f   :  { %4306 = vpow2.f32 %v3432_v44  ;;  %v3408_v57 = vmax.f32 %v3406_v9, %v3407_v36 }
0x1b30   :  { %4308 = vpow2.f32 %v3430_v2  ;;  %v3423_v32 = vsub.f32 %v5852_v6, %v5882_v7  ;;  %v3422_v8 = vsub.f32 %v5854_v27, %v5884_v43  ;;  %v3416_v61 = vrot.slane %v3415_v40, 1 }
0x1b31   :  { %v3409_v31 = vrot.slane %v3408_v57, 1 }
0x1b32   :  { %v3436_v5 = vmul.f32 1.442695, %v3423_v32  ;;  %v3434_v47 = vmul.f32 1.442695, %v3422_v8  ;;  %v5890_v24 = vmax.f32 %v3415_v40, %v3416_v61 }
0x1b33   :  { %v5892_v41 = vmax.f32 %v3408_v57, %v3409_v31 }
0x1b34   :  { %4310 = vpow2.f32 %v3436_v5  ;;  %v3425_v11 = vsub.f32 %v3361_v60, %v5890_v24 }
0x1b35   :  { %4312 = vpow2.f32 %v3434_v47  ;;  %v3424_v39 = vsub.f32 %v3360_v58, %v5892_v41 }
0x1b36   :  { %v3440_v29 = vmul.f32 1.442695, %v3425_v11 }
0x1b37   :  { %v3438_v34 = vmul.f32 1.442695, %v3424_v39 }
0x1b38   :  { %v4303_v6 = vpop.eup %4302  ;;  %4314 = vpow2.f32 %v3440_v29 }
0x1b39   :  { %v4305_v17 = vpop.eup %4304  ;;  %v3449_v27 = vsel %vm1463_vm3, %v4303_v6, 0.0  ;;  %4316 = vpow2.f32 %v3438_v34 }
0x1b3a   :  { %v3450_v53 = vrot.slane %v3449_v27, 4  ;;  %v3442_v26 = vsel %vm1463_vm3, %v4305_v17, 0.0 }
0x1b3b   :  { %v3443_v1 = vrot.slane %v3442_v26, 4 }
0x1b3c   :  { %v4307_v23 = vpop.eup %4306  ;;  %v3451_v35 = vadd.f32 %v3450_v53, %v3449_v27 }
0x1b3d   :  { %v4309_v38 = vpop.eup %4308  ;;  %v3444_v21 = vadd.f32 %v3443_v1, %v3442_v26  ;;  %v3463_v60 = vsel %vm1463_vm3, %v4307_v23, 0.0 }
0x1b3e   :  { %v3452_v42 = vrot.slane %v3451_v35, 2  ;;  %v3464_v58 = vrot.slane %v3463_v60, 4  ;;  %v3456_v15 = vsel %vm1463_vm3, %v4309_v38, 0.0 }
0x1b3f   :  { %v3445_v9 = vrot.slane %v3444_v21, 2  ;;  %v3457_v19 = vrot.slane %v3456_v15, 4 }
0x1b40   :  { %v3453_v46 = vadd.f32 %v3452_v42, %v3451_v35  ;;  %v3465_v18 = vadd.f32 %v3464_v58, %v3463_v60 }
0x1b41   :  { %v4311_v13 = vpop.eup %4310  ;;  %v3446_v50 = vadd.f32 %v3445_v9, %v3444_v21  ;;  %v3458_v44 = vadd.f32 %v3457_v19, %v3456_v15 }
0x1b42   :  { %v4313_v2 = vpop.eup %4312  ;;  %v3454_v36 = vrot.slane %v3453_v46, 1  ;;  %v3466_v40 = vrot.slane %v3465_v18, 2  ;;  %v3477_v57 = vsel %vm1463_vm3, %v4311_v13, 0.0 }
0x1b43   :  { %v3447_v32 = vrot.slane %v3446_v50, 1  ;;  %v3459_v8 = vrot.slane %v3458_v44, 2  ;;  %v3478_v61 = vrot.slane %v3477_v57, 4  ;;  %v3470_v31 = vsel %vm1463_vm3, %v4313_v2, 0.0 }
0x1b44   :  { %v3455_v5 = vadd.f32 %v3454_v36, %v3453_v46  ;;  %v3467_v47 = vadd.f32 %v3466_v40, %v3465_v18  ;;  %v3471_v11 = vrot.slane %v3470_v31, 4 }
0x1b45   :  { %v4315_v39 = vpop.eup %4314  ;;  %v3448_v29 = vadd.f32 %v3447_v32, %v3446_v50  ;;  %v3460_v34 = vadd.f32 %v3459_v8, %v3458_v44  ;;  %v3479_v6 = vadd.f32 %v3478_v61, %v3477_v57 }
0x1b46   :  { %v4317_v17 = vpop.eup %4316  ;;  %4318 = vlog2.f32 %v3455_v5  ;;  %v3468_v27 = vrot.slane %v3467_v47, 1  ;;  %v3472_v53 = vadd.f32 %v3471_v11, %v3470_v31  ;;  %v3491_v26 = vsel %vm1463_vm3, %v4315_v39, 0.0 }
0x1b47   :  { %4320 = vlog2.f32 %v3448_v29  ;;  %v3461_v1 = vrot.slane %v3460_v34, 1  ;;  %v3480_v23 = vrot.slane %v3479_v6, 2  ;;  %v3492_v35 = vrot.slane %v3491_v26, 4 }
0x1b48   :  { %v3469_v38 = vadd.f32 %v3468_v27, %v3467_v47  ;;  %v3473_v21 = vrot.slane %v3472_v53, 2  ;;  %v3484_v60 = vsel %vm1463_vm3, %v4317_v17, 0.0 }
0x1b49   :  { %v3462_v42 = vadd.f32 %v3461_v1, %v3460_v34  ;;  %v3481_v58 = vadd.f32 %v3480_v23, %v3479_v6  ;;  %v3493_v15 = vadd.f32 %v3492_v35, %v3491_v26  ;;  %v3485_v9 = vrot.slane %v3484_v60, 4 }
0x1b4a   :  { %4322 = vlog2.f32 %v3469_v38  ;;  %v3474_v19 = vadd.f32 %v3473_v21, %v3472_v53 }
0x1b4b   :  { %4324 = vlog2.f32 %v3462_v42  ;;  %v3482_v46 = vrot.slane %v3481_v58, 1  ;;  %v3494_v18 = vrot.slane %v3493_v15, 2  ;;  %v3486_v13 = vadd.f32 %v3485_v9, %v3484_v60 }
0x1b4c   :  { %v3475_v50 = vrot.slane %v3474_v19, 1 }
0x1b4d   :  { %v3483_v44 = vadd.f32 %v3482_v46, %v3481_v58  ;;  %v3495_v2 = vadd.f32 %v3494_v18, %v3493_v15  ;;  %v3487_v36 = vrot.slane %v3486_v13, 2 }
0x1b4e   :  { %v3476_v40 = vadd.f32 %v3475_v50, %v3474_v19 }
0x1b4f   :  { %4326 = vlog2.f32 %v3483_v44  ;;  %v3496_v57 = vrot.slane %v3495_v2, 1  ;;  %v3488_v32 = vadd.f32 %v3487_v36, %v3486_v13 }
0x1b50   :  { %4328 = vlog2.f32 %v3476_v40 }
0x1b51   :  { %v3497_v8 = vadd.f32 %v3496_v57, %v3495_v2  ;;  %v3489_v61 = vrot.slane %v3488_v32, 1 }
0x1b53   :  { %v4319_v31 = vpop.eup %4318  ;;  %4330 = vlog2.f32 %v3497_v8  ;;  %v3490_v5 = vadd.f32 %v3489_v61, %v3488_v32 }
0x1b54   :  { %v4321_v47 = vpop.eup %4320  ;;  %v3501_v11 = vmul.f32 0.6931472, %v4319_v31 }
0x1b55   :  { %4332 = vlog2.f32 %v3490_v5  ;;  %v3499_v39 = vmul.f32 0.6931472, %v4321_v47 }
0x1b56   :  { %v3515_v17 = vadd.f32 %v3501_v11, %v5864_v54 }
0x1b57   :  { %v4323_v29 = vpop.eup %4322  ;;  %v3514_v27 = vadd.f32 %v3499_v39, %v5866_v51 }
0x1b58   :  { %v4325_v34 = vpop.eup %4324  ;;  %v3505_v53 = vmul.f32 0.6931472, %v4323_v29 }
0x1b59   :  { %v3503_v6 = vmul.f32 0.6931472, %v4325_v34  ;;  %v3530_v35 = vsel %vm1828_vm5, %v3515_v17, %v3514_v27 }
0x1b5a   :  { %v3517_v38 = vadd.f32 %v3505_v53, %v5874_v3 }
0x1b5b   :  { %v3516_v26 = vadd.f32 %v3503_v6, %v5876_v16 }
0x1b5c   :  { %v4327_v1 = vpop.eup %4326 }
0x1b5d   :  { %v4329_v23 = vpop.eup %4328  ;;  %v3509_v21 = vmul.f32 0.6931472, %v4327_v1  ;;  %v3531_v42 = vsel %vm1830_vm6, %v3516_v26, %v3530_v35 }
0x1b5e   :  { %v3507_v60 = vmul.f32 0.6931472, %v4329_v23  ;;  %v3532_v19 = vsel %vm1832_vm7, %v3517_v38, %v3531_v42 }
0x1b5f   :  { %v3519_v51 = vadd.f32 %v3509_v21, %v5882_v7 }
0x1b60   :  { %v4331_v58 = vpop.eup %4330  ;;  %v3518_v15 = vadd.f32 %v3507_v60, %v5884_v43 }
0x1b61   :  { %v3513_v9 = vmul.f32 0.6931472, %v4331_v58 }
0x1b62   :  { %v4333_v54 = vpop.eup %4332  ;;  %v3533_v16 = vsel %vm1834_vm10, %v3518_v15, %v3532_v19 }
0x1b63   :  { %v3511_v46 = vmul.f32 0.6931472, %v4333_v54  ;;  %v3521_v18 = vadd.f32 %v3513_v9, %v5890_v24  ;;  %v3534_v13 = vsel %vm1836_vm11, %v3519_v51, %v3533_v16 }
0x1b65   :  { %v3520_v3 = vadd.f32 %v3511_v46, %v5892_v41 }
0x1b67   :  { %v3535_v50 = vsel %vm1838_vm14, %v3520_v3, %v3534_v13 }
0x1b68   :  { %v3536_v44 = vsel %vm1840_vm15, %v3521_v18, %v3535_v50 }
0x1b69   :  { %v5922_v43 = vsel %vm454_vm9, %v3536_v44, %v5788_v56 }
0x1b6a   :  { %v3549_v7 = vrot.slane %v5922_v43, %v4553_v28  ;;  %v3542_v2 = vrot.slane %v5922_v43, %v4559_v30  ;;  %v3563_v24 = vrot.slane %v5922_v43, %v5037_v55  ;;  %v3556_v41 = vrot.slane %v5922_v43, %v5042_v33 }
0x1b6b   :  { %v3577_v10 = vrot.slane %v5922_v43, %v5047_v12  ;;  %v3570_v56 = vrot.slane %v5922_v43, %v5052_v20  ;;  %v3591_v28 = vrot.slane %v5922_v43, %v5057_v22  ;;  %v3584_v36 = vrot.slane %v5922_v43, %v5062_v37 }
0x1b6c   :  { %3551 = vbcast.lane.b32.xlu1 %v3549_v7, 256  ;;  %3544 = vbcast.lane.b32.xlu0 %v3542_v2, 256  ;;  %v5942_v55 = vadd.f32 %v5809_v45, %v5518_v63 }
0x1b6e   :  { %v3611_v33 = vrot.slane %v5942_v55, %v5080_v52  ;;  %v3604_v12 = vcombine.high %v5942_v55, %v5942_v55 }
0x1b70   :  { %3565 = vbcast.lane.b32.xlu1 %v3563_v24, 256  ;;  %3558 = vbcast.lane.b32.xlu0 %v3556_v41, 256  ;;  %v3619_v20 = vcombine.high %v3611_v33, %v3611_v33  ;;  %v3618_v40 = vrot.slane %v3604_v12, %v5080_v52  ;;  %v3627_v57 = vrot.slane %v3611_v33, %v5080_v52 }
0x1b72   :  { %v3641_v22 = vrot.slane %v3619_v20, %v5080_v52  ;;  %v3620_v37 = vcombine.high %v3618_v40, %v3618_v40  ;;  %v3649_v31 = vcombine.high %v3627_v57, %v3627_v57  ;;  %v3656_v5 = vrot.slane %v3627_v57, %v4559_v30  ;;  %v4374_v57 = vld [vmem:[%s6107_s6] sm:$0xff] }
0x1b73   :  { %v3634_v34 = vrot.slane %v3618_v40, %v5080_v52 }
0x1b74   :  { %3579 = vbcast.lane.b32.xlu1 %v3577_v10, 256  ;;  %3572 = vbcast.lane.b32.xlu0 %v3570_v56, 256  ;;  %v3651_v61 = vcombine.high %v3641_v22, %v3641_v22  ;;  %v3660_v63 = vrot.slane %v3641_v22, %v4559_v30  ;;  %v3648_v29 = vrot.slane %v3620_v37, %v5080_v52 }
0x1b75   :  { %v3664_v27 = vrot.slane %v3649_v31, %v4559_v30  ;;  %v3650_v58 = vcombine.high %v3634_v34, %v3634_v34  ;;  %v3672_v19 = vrot.slane %v3634_v34, %v4559_v30 }
0x1b76   :  { %v3668_v6 = vrot.slane %v3651_v61, %v4559_v30  ;;  %v3652_v42 = vcombine.high %v3648_v29, %v3648_v29  ;;  %v3676_v54 = vrot.slane %v3648_v29, %v4559_v30 }
0x1b77   :  { %v3680_v56 = vrot.slane %v3650_v58, %v4559_v30 }
0x1b78   :  { %3593 = vbcast.lane.b32.xlu1 %v3591_v28, 256  ;;  %3586 = vbcast.lane.b32.xlu0 %v3584_v36, 256  ;;  %v3684_v10 = vrot.slane %v3652_v42, %v4559_v30 }
0x1bde   :  { %v3552_v32 = vpop.permute.xlu1 %3551  ;;  %v3545_v8 = vpop.permute.xlu0 %3544 }
0x1bdf   :  { %v3596_v45 = vadd.f32 %v5702_v14, %v3552_v32  ;;  %v3595_v47 = vadd.f32 %v5702_v14, %v3545_v8 }
0x1be1   :  { %v5955_v11 = vadd.f32 %v3660_v63, %v3596_v45  ;;  %v5957_v39 = vadd.f32 %v3656_v5, %v3595_v47 }
0x1be2   :  { %v3566_v17 = vpop.permute.xlu1 %3565  ;;  %v3559_v53 = vpop.permute.xlu0 %3558 }
0x1be3   :  { %v3708_v26 = vsel %vm1463_vm3, %v5955_v11, -inf  ;;  %v3701_v1 = vsel %vm1463_vm3, %v5957_v39, -inf  ;;  %v3598_v23 = vadd.f32 %v5702_v14, %v3566_v17  ;;  %v3597_v35 = vadd.f32 %v5702_v14, %v3559_v53 }
0x1be4   :  { %v3709_v38 = vrot.slane %v3708_v26, 4  ;;  %v3702_v21 = vrot.slane %v3701_v1, 4 }
0x1be5   :  { %v5969_v60 = vadd.f32 %v3668_v6, %v3598_v23  ;;  %v5971_v52 = vadd.f32 %v3664_v27, %v3597_v35 }
0x1be6   :  { %v3710_v15 = vmax.f32 %v3708_v26, %v3709_v38  ;;  %v3703_v9 = vmax.f32 %v3701_v1, %v3702_v21  ;;  %v3580_v51 = vpop.permute.xlu1 %3579  ;;  %v3573_v16 = vpop.permute.xlu0 %3572 }
0x1be7   :  { %v3722_v46 = vsel %vm1463_vm3, %v5969_v60, -inf  ;;  %v3715_v18 = vsel %vm1463_vm3, %v5971_v52, -inf  ;;  %v3600_v3 = vadd.f32 %v5702_v14, %v3580_v51  ;;  %v3599_v13 = vadd.f32 %v5702_v14, %v3573_v16 }
0x1be8   :  { %v3711_v50 = vrot.slane %v3710_v15, 2  ;;  %v3704_v44 = vrot.slane %v3703_v9, 2  ;;  %v3723_v7 = vrot.slane %v3722_v46, 4  ;;  %v3716_v2 = vrot.slane %v3715_v18, 4 }
0x1be9   :  { %v5981_v24 = vadd.f32 %v3676_v54, %v3600_v3  ;;  %v5983_v41 = vadd.f32 %v3672_v19, %v3599_v13 }
0x1bea   :  { %v3712_v28 = vmax.f32 %v3710_v15, %v3711_v50  ;;  %v3705_v36 = vmax.f32 %v3703_v9, %v3704_v44  ;;  %v3724_v33 = vmax.f32 %v3722_v46, %v3723_v7  ;;  %v3717_v12 = vmax.f32 %v3715_v18, %v3716_v2  ;;  %v3594_v20 = vpop.permute.xlu1 %3593  ;;  %v3587_v40 = vpop.permute.xlu0 %3586 }
0x1beb   :  { %v3736_v14 = vsel %vm1463_vm3, %v5981_v24, -inf  ;;  %v3729_v22 = vsel %vm1463_vm3, %v5983_v41, -inf  ;;  %v3602_v37 = vadd.f32 %v4374_v57, %v3594_v20  ;;  %v3601_v32 = vadd.f32 %v4374_v57, %v3587_v40 }
0x1bec   :  { %v3713_v8 = vrot.slane %v3712_v28, 1  ;;  %v3706_v30 = vrot.slane %v3705_v36, 1  ;;  %v3725_v61 = vrot.slane %v3724_v33, 2  ;;  %v3718_v31 = vrot.slane %v3717_v12, 2 }
0x1bed   :  { %v3737_v63 = vrot.slane %v3736_v14, 4  ;;  %v3730_v45 = vrot.slane %v3729_v22, 4  ;;  %v3700_v5 = vadd.f32 %v3684_v10, %v3602_v37  ;;  %v3699_v47 = vadd.f32 %v3680_v56, %v3601_v32 }
0x1bee   :  { %v5994_v29 = vmax.f32 %v3712_v28, %v3713_v8  ;;  %v5996_v34 = vmax.f32 %v3705_v36, %v3706_v30  ;;  %v3726_v6 = vmax.f32 %v3724_v33, %v3725_v61  ;;  %v3719_v17 = vmax.f32 %v3717_v12, %v3718_v31 }
0x1bef   :  { %v3738_v27 = vmax.f32 %v3736_v14, %v3737_v63  ;;  %v3731_v53 = vmax.f32 %v3729_v22, %v3730_v45  ;;  %v3750_v26 = vsel %vm1463_vm3, %v3700_v5, -inf  ;;  %v3743_v1 = vsel %vm1463_vm3, %v3699_v47, -inf }
0x1bf0   :  { %v3758_v23 = vsub.f32 %v5955_v11, %v5994_v29  ;;  %v3757_v35 = vsub.f32 %v5957_v39, %v5996_v34  ;;  %v3727_v38 = vrot.slane %v3726_v6, 1  ;;  %v3720_v21 = vrot.slane %v3719_v17, 1 }
0x1bf1   :  { %v3739_v42 = vrot.slane %v3738_v27, 2  ;;  %v3732_v58 = vrot.slane %v3731_v53, 2  ;;  %v3751_v15 = vrot.slane %v3750_v26, 4  ;;  %v3744_v9 = vrot.slane %v3743_v1, 4 }
0x1bf2   :  { %v3767_v54 = vmul.f32 1.442695, %v3758_v23  ;;  %v3765_v51 = vmul.f32 1.442695, %v3757_v35  ;;  %v6004_v19 = vmax.f32 %v3726_v6, %v3727_v38  ;;  %v6006_v16 = vmax.f32 %v3719_v17, %v3720_v21 }
0x1bf3   :  { %v3740_v46 = vmax.f32 %v3738_v27, %v3739_v42  ;;  %v3733_v18 = vmax.f32 %v3731_v53, %v3732_v58  ;;  %v3752_v3 = vmax.f32 %v3750_v26, %v3751_v15  ;;  %v3745_v13 = vmax.f32 %v3743_v1, %v3744_v9 }
0x1bf4   :  { %4334 = vpow2.f32 %v3767_v54  ;;  %v3760_v11 = vsub.f32 %v5969_v60, %v6004_v19  ;;  %v3759_v39 = vsub.f32 %v5971_v52, %v6006_v16 }
0x1bf5   :  { %4336 = vpow2.f32 %v3765_v51  ;;  %v3741_v50 = vrot.slane %v3740_v46, 1  ;;  %v3734_v44 = vrot.slane %v3733_v18, 1  ;;  %v3753_v7 = vrot.slane %v3752_v3, 2 }
0x1bf6   :  { %v3771_v2 = vmul.f32 1.442695, %v3760_v11  ;;  %v3769_v10 = vmul.f32 1.442695, %v3759_v39  ;;  %v3746_v56 = vrot.slane %v3745_v13, 2 }
0x1bf7   :  { %v6012_v28 = vmax.f32 %v3740_v46, %v3741_v50  ;;  %v6014_v36 = vmax.f32 %v3733_v18, %v3734_v44  ;;  %v3754_v33 = vmax.f32 %v3752_v3, %v3753_v7 }
0x1bf8   :  { %4338 = vpow2.f32 %v3771_v2  ;;  %v3747_v12 = vmax.f32 %v3745_v13, %v3746_v56 }
0x1bf9   :  { %4340 = vpow2.f32 %v3769_v10  ;;  %v3762_v60 = vsub.f32 %v5981_v24, %v6012_v28  ;;  %v3761_v52 = vsub.f32 %v5983_v41, %v6014_v36  ;;  %v3755_v20 = vrot.slane %v3754_v33, 1 }
0x1bfa   :  { %v3748_v40 = vrot.slane %v3747_v12, 1 }
0x1bfb   :  { %v3775_v14 = vmul.f32 1.442695, %v3762_v60  ;;  %v3773_v22 = vmul.f32 1.442695, %v3761_v52  ;;  %v6020_v57 = vmax.f32 %v3754_v33, %v3755_v20 }
0x1bfc   :  { %v6022_v37 = vmax.f32 %v3747_v12, %v3748_v40 }
0x1bfd   :  { %4342 = vpow2.f32 %v3775_v14  ;;  %v3764_v32 = vsub.f32 %v3700_v5, %v6020_v57 }
0x1bfe   :  { %4344 = vpow2.f32 %v3773_v22  ;;  %v3763_v8 = vsub.f32 %v3699_v47, %v6022_v37 }
0x1bff   :  { %v3779_v30 = vmul.f32 1.442695, %v3764_v32 }
0x1c00   :  { %v3777_v61 = vmul.f32 1.442695, %v3763_v8 }
0x1c01   :  { %v4335_v24 = vpop.eup %4334  ;;  %4346 = vpow2.f32 %v3779_v30 }
0x1c02   :  { %v4337_v31 = vpop.eup %4336  ;;  %v3788_v41 = vsel %vm1463_vm3, %v4335_v24, 0.0  ;;  %4348 = vpow2.f32 %v3777_v61 }
0x1c03   :  { %v3789_v63 = vrot.slane %v3788_v41, 4  ;;  %v3781_v45 = vsel %vm1463_vm3, %v4337_v31, 0.0 }
0x1c04   :  { %v3782_v6 = vrot.slane %v3781_v45, 4 }
0x1c05   :  { %v4339_v17 = vpop.eup %4338  ;;  %v3790_v27 = vadd.f32 %v3789_v63, %v3788_v41 }
0x1c06   :  { %v4341_v53 = vpop.eup %4340  ;;  %v3783_v26 = vadd.f32 %v3782_v6, %v3781_v45  ;;  %v3802_v5 = vsel %vm1463_vm3, %v4339_v17, 0.0 }
0x1c07   :  { %v3791_v1 = vrot.slane %v3790_v27, 2  ;;  %v3803_v47 = vrot.slane %v3802_v5, 4  ;;  %v3795_v23 = vsel %vm1463_vm3, %v4341_v53, 0.0 }
0x1c08   :  { %v3784_v35 = vrot.slane %v3783_v26, 2  ;;  %v3796_v38 = vrot.slane %v3795_v23, 4 }
0x1c09   :  { %v3792_v21 = vadd.f32 %v3791_v1, %v3790_v27  ;;  %v3804_v42 = vadd.f32 %v3803_v47, %v3802_v5 }
0x1c0a   :  { %v4343_v58 = vpop.eup %4342  ;;  %v3785_v15 = vadd.f32 %v3784_v35, %v3783_v26  ;;  %v3797_v9 = vadd.f32 %v3796_v38, %v3795_v23 }
0x1c0b   :  { %v4345_v54 = vpop.eup %4344  ;;  %v3793_v51 = vrot.slane %v3792_v21, 1  ;;  %v3805_v46 = vrot.slane %v3804_v42, 2  ;;  %v3816_v18 = vsel %vm1463_vm3, %v4343_v58, 0.0 }
0x1c0c   :  { %v3786_v3 = vrot.slane %v3785_v15, 1  ;;  %v3798_v13 = vrot.slane %v3797_v9, 2  ;;  %v3817_v11 = vrot.slane %v3816_v18, 4  ;;  %v3809_v39 = vsel %vm1463_vm3, %v4345_v54, 0.0 }
0x1c0d   :  { %v3794_v50 = vadd.f32 %v3793_v51, %v3792_v21  ;;  %v3806_v44 = vadd.f32 %v3805_v46, %v3804_v42  ;;  %v3810_v7 = vrot.slane %v3809_v39, 4 }
0x1c0e   :  { %v4347_v2 = vpop.eup %4346  ;;  %v3787_v10 = vadd.f32 %v3786_v3, %v3785_v15  ;;  %v3799_v56 = vadd.f32 %v3798_v13, %v3797_v9  ;;  %v3818_v33 = vadd.f32 %v3817_v11, %v3816_v18 }
0x1c0f   :  { %v4349_v12 = vpop.eup %4348  ;;  %4350 = vlog2.f32 %v3794_v50  ;;  %v3807_v60 = vrot.slane %v3806_v44, 1  ;;  %v3811_v52 = vadd.f32 %v3810_v7, %v3809_v39  ;;  %v3830_v20 = vsel %vm1463_vm3, %v4347_v2, 0.0 }
0x1c10   :  { %4352 = vlog2.f32 %v3787_v10  ;;  %v3800_v40 = vrot.slane %v3799_v56, 1  ;;  %v3819_v14 = vrot.slane %v3818_v33, 2  ;;  %v3831_v22 = vrot.slane %v3830_v20, 4 }
0x1c11   :  { %v3808_v32 = vadd.f32 %v3807_v60, %v3806_v44  ;;  %v3812_v8 = vrot.slane %v3811_v52, 2  ;;  %v3823_v30 = vsel %vm1463_vm3, %v4349_v12, 0.0 }
0x1c12   :  { %v3801_v61 = vadd.f32 %v3800_v40, %v3799_v56  ;;  %v3820_v24 = vadd.f32 %v3819_v14, %v3818_v33  ;;  %v3832_v31 = vadd.f32 %v3831_v22, %v3830_v20  ;;  %v3824_v41 = vrot.slane %v3823_v30, 4 }
0x1c13   :  { %4354 = vlog2.f32 %v3808_v32  ;;  %v3813_v63 = vadd.f32 %v3812_v8, %v3811_v52 }
0x1c14   :  { %4356 = vlog2.f32 %v3801_v61  ;;  %v3821_v45 = vrot.slane %v3820_v24, 1  ;;  %v3833_v6 = vrot.slane %v3832_v31, 2  ;;  %v3825_v17 = vadd.f32 %v3824_v41, %v3823_v30  ;;  %v6127_v61 = vld [vmem:[#allocation8_spill] sm:$0xff] }
0x1c15   :  { %v3814_v27 = vrot.slane %v3813_v63, 1 }
0x1c16   :  { %v3822_v53 = vadd.f32 %v3821_v45, %v3820_v24  ;;  %v3834_v26 = vadd.f32 %v3833_v6, %v3832_v31  ;;  %v3826_v5 = vrot.slane %v3825_v17, 2  ;;  %v1450_v31 = vld [vmem:[%s6108_s7 + $0x18] sm:$0xff] }
0x1c17   :  { %v3815_v1 = vadd.f32 %v3814_v27, %v3813_v63  ;;  %v1454_v45 = vld [vmem:[%s6108_s7 + $0x38] sm:$0xff] }
0x1c18   :  { %4358 = vlog2.f32 %v3822_v53  ;;  %v3835_v47 = vrot.slane %v3834_v26, 1  ;;  %v3827_v23 = vadd.f32 %v3826_v5, %v3825_v17  ;;  %v1462_v17 = vmul.f32 %v1454_v45, %v5942_v55  ;;  %v1451_v55 = vld [vmem:[%s6108_s7 + $0x20] sm:$0xff] }
0x1c19   :  { %4360 = vlog2.f32 %v3815_v1 }
0x1c1a   :  { %v3836_v35 = vadd.f32 %v3835_v47, %v3834_v26  ;;  %v3828_v38 = vrot.slane %v3827_v23, 1 }
0x1c1c   :  { %v4351_v21 = vpop.eup %4350  ;;  %4362 = vlog2.f32 %v3836_v35  ;;  %v3829_v42 = vadd.f32 %v3828_v38, %v3827_v23  ;;  %v1459_v35 = vmul.f32 %v1451_v55, %v5546_v25  ;;  %v1453_v38 = vld [vmem:[%s6108_s7 + $0x30] sm:$0xff] }
0x1c1d   :  { %v4353_v58 = vpop.eup %4352  ;;  %v3840_v15 = vmul.f32 0.6931472, %v4351_v21 }
0x1c1e   :  { %4364 = vlog2.f32 %v3829_v42  ;;  %v3838_v9 = vmul.f32 0.6931472, %v4353_v58  ;;  %v1476_v21 = vsel %vm1463_vm3, %v1459_v35, 0.0  ;;  %v1461_v42 = vmul.f32 %v1453_v38, %v5813_v0 }
0x1c1f   :  { %v3854_v18 = vadd.f32 %v3840_v15, %v5994_v29 }
0x1c20   :  { %v4355_v54 = vpop.eup %4354  ;;  %v3853_v3 = vadd.f32 %v3838_v9, %v5996_v34 }
0x1c21   :  { %v4357_v51 = vpop.eup %4356  ;;  %v3844_v13 = vmul.f32 0.6931472, %v4355_v54 }
0x1c22   :  { %v3842_v46 = vmul.f32 0.6931472, %v4357_v51  ;;  %v3869_v44 = vsel %vm1828_vm5, %v3854_v18, %v3853_v3 }
0x1c23   :  { %v3856_v7 = vadd.f32 %v3844_v13, %v6004_v19 }
0x1c24   :  { %v3855_v11 = vadd.f32 %v3842_v46, %v6006_v16 }
0x1c25   :  { %v4359_v39 = vpop.eup %4358 }
0x1c26   :  { %v4361_v50 = vpop.eup %4360  ;;  %v3848_v2 = vmul.f32 0.6931472, %v4359_v39  ;;  %v3870_v56 = vsel %vm1830_vm6, %v3855_v11, %v3869_v44 }
0x1c27   :  { %v3846_v10 = vmul.f32 0.6931472, %v4361_v50  ;;  %v3871_v52 = vsel %vm1832_vm7, %v3856_v7, %v3870_v56 }
0x1c28   :  { %v3858_v34 = vadd.f32 %v3848_v2, %v6012_v28  ;;  %v1495_v2 = vld [vmem:[%s6109_s8] sm:$0xff] }
0x1c29   :  { %v4363_v33 = vpop.eup %4362  ;;  %v3857_v12 = vadd.f32 %v3846_v10, %v6014_v36  ;;  %v1447_v36 = vld [vmem:[%s6108_s7] sm:$0xff] }
0x1c2a   :  { %v3852_v60 = vmul.f32 0.6931472, %v4363_v33 }
0x1c2b   :  { %v4365_v29 = vpop.eup %4364  ;;  %v3872_v20 = vsel %vm1834_vm10, %v3857_v12, %v3871_v52 }
0x1c2c   :  { %v3850_v16 = vmul.f32 0.6931472, %v4365_v29  ;;  %v3860_v40 = vadd.f32 %v3852_v60, %v6020_v57  ;;  %v3873_v14 = vsel %vm1836_vm11, %v3858_v34, %v3872_v20  ;;  %v1455_v57 = vmul.f32 %v1447_v36, %v5032_v59  ;;  %v1452_v59 = vld [vmem:[%s6108_s7 + $0x28] sm:$0xff] }
0x1c2d   :  { %v1460_v63 = vmul.f32 %v1452_v59, %v5674_v48  ;;  %v1449_v48 = vld [vmem:[%s6108_s7 + $0x10] sm:$0xff] }
0x1c2e   :  { %v3859_v19 = vadd.f32 %v3850_v16, %v6022_v37  ;;  %v1448_v37 = vld [vmem:[%s6108_s7 + $0x8] sm:$0xff]  ;;  %v1464_v30 = vsel %vm1463_vm3, %v1455_v57, 0.0  ;;  %v1457_v47 = vmul.f32 %v1449_v48, %v5254_v62  ;;  %v1482_v62 = vsel %vm1463_vm3, %v1461_v42, 0.0 }
0x1c2f   :  { %v1456_v24 = vmul.f32 %v1448_v37, %v6127_v61  ;;  %v1479_v6 = vsel %vm1463_vm3, %v1460_v63, 0.0 }
0x1c30   :  { %v3874_v22 = vsel %vm1838_vm14, %v3859_v19, %v3873_v14  ;;  %v1470_v23 = vsel %vm1463_vm3, %v1457_v47, 0.0 }
0x1c31   :  { %v3875_v32 = vsel %vm1840_vm15, %v3860_v40, %v3874_v22  ;;  %v1467_v49 = vsel %vm1463_vm3, %v1456_v24, 0.0 }
0x1c32   :  { %v3877_v28 = vsel %vm328_vm4, %v3875_v32, %v5922_v43  ;;  %v1458_v43 = vmul.f32 %v1450_v31, %v5409_v4  ;;  %v1485_v4 = vsel %vm1463_vm3, %v1462_v17, 0.0 }
0x1c33   :  { %v3878_v8 = vsel %vm1463_vm3, %v3877_v28, -inf }
0x1c34   :  { %3879 = vmax.xlane.f32.xlu0 %v3878_v8  ;;  %v1473_v41 = vsel %vm1463_vm3, %v1458_v43, 0.0 }
0x1c38   :  { %1465 = vadd.xlane.f32.xlu0 %v1464_v30 }
0x1c3c   :  { %1468 = vadd.xlane.f32.xlu0 %v1467_v49 }
0x1c40   :  { %1474 = vadd.xlane.f32.xlu0 %v1473_v41 }
0x1c44   :  { %1480 = vadd.xlane.f32.xlu0 %v1479_v6 }
0x1c48   :  { %1486 = vadd.xlane.f32.xlu0 %v1485_v4 }
0x1cbd   :  { %v3880_v27 = vpop.xlane.xlu0 %3879 }
0x1cbe   :  { %v3881_v53 = vsub.f32 %v3877_v28, %v3880_v27 }
0x1cc0   :  { %v3882_v26 = vmul.f32 1.442695, %v3881_v53 }
0x1cc1   :  { %v1466_v58 = vpop.xlane.xlu0 %1465 }
0x1cc2   :  { %4366 = vpow2.f32 %v3882_v26 }
0x1cc5   :  { %v1469_v15 = vpop.xlane.xlu0 %1468 }
0x1cc6   :  { %v1488_v51 = vadd.f32 %v1469_v15, %v1466_v58 }
0x1cc9   :  { %v1475_v54 = vpop.xlane.xlu0 %1474 }
0x1ccd   :  { %v1481_v3 = vpop.xlane.xlu0 %1480 }
0x1ccf   :  { %v4367_v5 = vpop.eup %4366 }
0x1cd0   :  { %v3884_v1 = vsel %vm1463_vm3, %v4367_v5, 0.0 }
0x1cd1   :  { %3885 = vadd.xlane.f32.xlu1 %v3884_v1  ;;  %v1487_v7 = vpop.xlane.xlu0 %1486 }
0x1cd5   :  { %1471 = vadd.xlane.f32.xlu1 %v1470_v23 }
0x1cd9   :  { %1477 = vadd.xlane.f32.xlu1 %v1476_v21 }
0x1cdd   :  { %1483 = vadd.xlane.f32.xlu1 %v1482_v62 }
0x1d5a   :  { %v3886_v9 = vpop.xlane.xlu1 %3885 }
0x1d5b   :  { %4368 = vlog2.f32 %v3886_v9 }
0x1d5e   :  { %v1472_v25 = vpop.xlane.xlu1 %1471 }
0x1d5f   :  { %v1489_v46 = vadd.f32 %v1488_v51, %v1472_v25 }
0x1d61   :  { %v1490_v18 = vadd.f32 %v1489_v46, %v1475_v54 }
0x1d62   :  { %v1478_v13 = vpop.xlane.xlu1 %1477 }
0x1d63   :  { %v1491_v11 = vadd.f32 %v1490_v18, %v1478_v13 }
0x1d65   :  { %v1492_v39 = vadd.f32 %v1491_v11, %v1481_v3 }
0x1d66   :  { %v1484_v50 = vpop.xlane.xlu1 %1483 }
0x1d67   :  { %v1493_v44 = vadd.f32 %v1492_v39, %v1484_v50 }
0x1d68   :  { %v4369_v0 = vpop.eup %4368 }
0x1d69   :  { %v3888_v10 = vmul.f32 0.6931472, %v4369_v0  ;;  %v1494_v56 = vadd.f32 %v1493_v44, %v1487_v7 }
0x1d6b   :  { %v3889_v33 = vadd.f32 %v3888_v10, %v3880_v27  ;;  %v1496_v12 = vadd.f32 %v1495_v2, %v1494_v56 }
0x1d6d   :  { %v3890_v60 = vsub.f32 %v3889_v33, %v1496_v12 }
0x1d6f   :  { %3892 = vst.msk [vmem:[%s6110_s10] sm:$0xff] %vm3891_vm0, %v3890_v60 }

</bundles_post_ra>
